<compile_context>
chip_gen: v7x
topology: tpu7x:2x2x1
jax: 0.10.0
libtpu: 0.0.40
codegen_flags: <defaults>
</compile_context>

<pallas_src>
import functools

import jax
import jax.numpy as jnp
import numpy as np
from jax.experimental import pallas as pl
from jax.experimental.pallas import tpu as pltpu


# ----------------------------------------------------------------------------
# Kernel 1: fused conv1 + ReLU + conv2 + ReLU   (one grid step per batch item)
# ----------------------------------------------------------------------------
def _conv_kernel(xf_ref, m1_ref, b1f_ref, m2_ref, b2f_ref, o_ref, y1p_ref, *, H):
    """W-folded channels-last layout: lanes = W*C.

    xf_ref : (H+2, (W+2)*Ci)          f32   spatially zero-padded input board
    m1_ref : (3, (W+2)*Ci, (W+2)*C1)  bf16  block-banded conv1 weight (per dh)
    b1f_ref: (1, (W+2)*C1)            f32   conv1 bias tiled over w (0 in pads)
    m2_ref : (3, (W+2)*C1, W*C2)      bf16  block-banded conv2 weight (per dh)
    b2f_ref: (1, W*C2)                f32
    o_ref  : (H, W*C2)                bf16  conv2 output, flatten order (h,w,c)
    y1p_ref: (H+2, (W+2)*C1)          f32   scratch: padded conv1 output
    """
    # conv1: three shifted MXU matmuls over the folded lane dim.  The W (lane)
    # zero padding of y1 is already baked into m1's output column layout.
    acc1 = b1f_ref[...]
    for dh in range(3):
        lhs = xf_ref[dh:dh + H, :].astype(jnp.bfloat16)
        acc1 = acc1 + jnp.dot(lhs, m1_ref[dh],
                              preferred_element_type=jnp.float32)

    # ReLU + materialize the H (row) zero padding for conv2 in VMEM scratch.
    y1p_ref[...] = jnp.zeros_like(y1p_ref)
    y1p_ref[1:H + 1, :] = jnp.maximum(acc1, 0.0)

    # conv2: three more shifted MXU matmuls, then ReLU; lane-dense bf16 output.
    acc2 = b2f_ref[...]
    for dh in range(3):
        lhs = y1p_ref[dh:dh + H, :].astype(jnp.bfloat16)
        acc2 = acc2 + jnp.dot(lhs, m2_ref[dh],
                              preferred_element_type=jnp.float32)
    o_ref[...] = jnp.maximum(acc2, 0.0).astype(o_ref.dtype)


def conv_stack(xf, kp):
    """xf: (N, H+2, (W+2)*Ci) f32  ->  (N, H, W*C2) bf16."""
    N, Hp, WpCi = xf.shape
    H = Hp - 2
    WpC1 = kp["conv1_m"].shape[2]
    WC2 = kp["conv2_m"].shape[2]
    return pl.pallas_call(
        functools.partial(_conv_kernel, H=H),
        out_shape=jax.ShapeDtypeStruct((N, H, WC2), jnp.bfloat16),
        grid=(N,),
        in_specs=[
            pl.BlockSpec((None, Hp, WpCi), lambda n: (n, 0, 0)),
            pl.BlockSpec((3, WpCi, WpC1), lambda n: (0, 0, 0)),
            pl.BlockSpec((1, WpC1), lambda n: (0, 0)),
            pl.BlockSpec((3, WpC1, WC2), lambda n: (0, 0, 0)),
            pl.BlockSpec((1, WC2), lambda n: (0, 0)),
        ],
        out_specs=pl.BlockSpec((None, H, WC2), lambda n: (n, 0, 0)),
        scratch_shapes=[pltpu.VMEM((Hp, WpC1), jnp.float32)],
        compiler_params=pltpu.CompilerParams(
            dimension_semantics=("parallel",)),
    )(xf, kp["conv1_m"], kp["conv1_bf"], kp["conv2_m"], kp["conv2_bf"])


# ----------------------------------------------------------------------------
# Kernel 2: fused fc1 + ReLU + dropout(p=0, identity) + fc2
# ----------------------------------------------------------------------------
def _fc_kernel(feat_ref, lin_ref, w1a_ref, w1b_ref, b1_ref, w2_ref, b2_ref,
               o_ref):
    h = jnp.dot(feat_ref[...], w1a_ref[...],
                preferred_element_type=jnp.float32)
    h = h + jnp.dot(lin_ref[...], w1b_ref[...],
                    preferred_element_type=jnp.float32)
    h = jnp.maximum(h + b1_ref[...], 0.0)
    # dropout(rate=0.0) is the identity.
    out = jnp.dot(h.astype(w2_ref.dtype), w2_ref[...],
                  preferred_element_type=jnp.float32)
    o_ref[...] = (out + b2_ref[...]).astype(o_ref.dtype)


def fc_stack(feat_conv, lin, kp):
    N = feat_conv.shape[0]
    A = kp["fc2_b"].shape[1]

    def full(shape):
        return pl.BlockSpec(shape, lambda i, _s=shape: (0,) * len(_s))

    return pl.pallas_call(
        _fc_kernel,
        out_shape=jax.ShapeDtypeStruct((N, A), jnp.float32),
        grid=(1,),
        in_specs=[
            full(feat_conv.shape), full(lin.shape),
            full(kp["fc1_wa"].shape), full(kp["fc1_wb"].shape),
            full(kp["fc1_b"].shape), full(kp["fc2_wt"].shape),
            full(kp["fc2_b"].shape),
        ],
        out_specs=full((N, A)),
    )(feat_conv, lin, kp["fc1_wa"], kp["fc1_wb"], kp["fc1_b"],
      kp["fc2_wt"], kp["fc2_b"])


# ----------------------------------------------------------------------------
# Forward
# ----------------------------------------------------------------------------
def tetris_cnn_forward(kparams, x_nchw, linear_layer_input):
    N, Ci, H, W = x_nchw.shape
    Hp, Wp = H + 2, W + 2
    WC2 = kparams["conv2_m"].shape[2]

    # NCHW -> NHWC -> zero-pad spatially -> fold (W, C) into the lane dim.
    xf = jnp.pad(x_nchw.astype(jnp.float32).transpose(0, 2, 3, 1),
                 ((0, 0), (1, 1), (1, 1), (0, 0))).reshape(N, Hp, Wp * Ci)

    y2 = conv_stack(xf, kparams)                 # (N, H, W*C2) bf16
    feat_conv = y2.reshape(N, H * WC2)           # flatten order (h, w, c)

    # Mirror the PyTorch broadcast / squeeze handling of linear_layer_input.
    lin = linear_layer_input
    if lin.ndim == 3 and lin.shape[0] == 1:
        lin = jnp.squeeze(lin, axis=1)
    if lin.shape[0] != N:
        lin = jnp.broadcast_to(lin, (N,) + lin.shape[1:])
    lin = lin.astype(jnp.bfloat16)

    return fc_stack(feat_conv, lin, kparams)     # (N, action_dim) f32


# ----------------------------------------------------------------------------
# Parameters: PyTorch-layout init + one-time conversion to kernel layouts
# ----------------------------------------------------------------------------
def init_params(key, *, input_channels, board_height, board_width,
                linear_layer_input_dim, action_dim):
    """PyTorch-layout parameters (same shapes as the nn.Module)."""
    conv_out_size = 64 * board_height * board_width
    fc1_in = conv_out_size + linear_layer_input_dim

    def uniform_fan_in(k, shape, fan_in):
        bound = 1.0 / jnp.sqrt(fan_in)
        return jax.random.uniform(k, shape, jnp.float32, -bound, bound)

    ks = jax.random.split(key, 8)
    return {
        "conv1_w": uniform_fan_in(ks[0], (32, input_channels, 3, 3),
                                  input_channels * 9),
        "conv1_b": uniform_fan_in(ks[1], (32,), input_channels * 9),
        "conv2_w": uniform_fan_in(ks[2], (64, 32, 3, 3), 32 * 9),
        "conv2_b": uniform_fan_in(ks[3], (64,), 32 * 9),
        "fc1_w": uniform_fan_in(ks[4], (128, fc1_in), fc1_in),
        "fc1_b": uniform_fan_in(ks[5], (128,), fc1_in),
        "fc2_w": uniform_fan_in(ks[6], (action_dim, 128), 128),
        "fc2_b": uniform_fan_in(ks[7], (action_dim,), 128),
    }


def _banded_conv_matrices(w_oihw, W_out, out_block_offset, out_blocks):
    """Build 3 block-banded matrices M[dh] so a 3x3/s1/p1 conv over a W-folded,
    spatially padded activation X (rows = padded H, lanes = (W+2)*Ci) becomes
        y[h, :] = bias + sum_dh X[h+dh, :] @ M[dh].
    Output for spatial column w is written at lane block (w + out_block_offset)
    of an out_blocks-wide folded output (offset 1 keeps one zero block on each
    side so the next conv's W padding is already materialized)."""
    w = np.asarray(w_oihw, np.float32)           # (Co, Ci, 3, 3)
    Co, Ci, _, _ = w.shape
    m = np.zeros((3, (W_out + 2) * Ci, out_blocks * Co), np.float32)
    for dh in range(3):
        for dw in range(3):
            blk = w[:, :, dh, dw].T              # (Ci, Co)
            for wcol in range(W_out):
                r0 = (wcol + dw) * Ci
                c0 = (wcol + out_block_offset) * Co
                m[dh, r0:r0 + Ci, c0:c0 + Co] = blk
    return m


def prepare_params(params, *, board_height, board_width):
    """One-time conversion of PyTorch-layout weights into kernel layouts:
    block-banded folded conv matrices, pre-permuted / pre-transposed / bf16 fc
    weights (no per-call .T and no NCHW<->NHWC transposes in the forward)."""
    H, W = board_height, board_width
    Wp = W + 2
    w1 = np.asarray(params["conv1_w"], np.float32)   # (C1, Ci, 3, 3)
    w2 = np.asarray(params["conv2_w"], np.float32)   # (C2, C1, 3, 3)
    C1, C2 = w1.shape[0], w2.shape[0]

    m1 = _banded_conv_matrices(w1, W, out_block_offset=1, out_blocks=Wp)
    m2 = _banded_conv_matrices(w2, W, out_block_offset=0, out_blocks=W)

    b1f = np.zeros((1, Wp * C1), np.float32)
    b1f[0, C1:(W + 1) * C1] = np.tile(np.asarray(params["conv1_b"],
                                                 np.float32), W)
    b2f = np.tile(np.asarray(params["conv2_b"], np.float32), W)[None, :]

    # fc1: permute conv-feature columns from the PyTorch NCHW flatten order
    # (c*H*W + h*W + w) to the kernel's (h*W*C2 + w*C2 + c) order, split off
    # the linear_layer_input columns, and pre-transpose.
    fc1_w = np.asarray(params["fc1_w"], np.float32)  # (F1, conv_cols + L)
    F1 = fc1_w.shape[0]
    conv_cols = C2 * H * W
    wa = fc1_w[:, :conv_cols].reshape(F1, C2, H, W)
    wa = wa.transpose(0, 2, 3, 1).reshape(F1, conv_cols)
    wb = fc1_w[:, conv_cols:]
    fc2_w = np.asarray(params["fc2_w"], np.float32)  # (A, F1)

    return {
        "conv1_m": jnp.asarray(m1, jnp.bfloat16),
        "conv1_bf": jnp.asarray(b1f, jnp.float32),
        "conv2_m": jnp.asarray(m2, jnp.bfloat16),
        "conv2_bf": jnp.asarray(b2f, jnp.float32),
        "fc1_wa": jnp.asarray(wa.T, jnp.bfloat16),              # (H*W*C2, F1)
        "fc1_wb": jnp.asarray(wb.T, jnp.bfloat16),              # (L, F1)
        "fc1_b": jnp.asarray(params["fc1_b"], jnp.float32).reshape(1, F1),
        "fc2_wt": jnp.asarray(fc2_w.T, jnp.bfloat16),           # (F1, A)
        "fc2_b": jnp.asarray(params["fc2_b"], jnp.float32).reshape(1, -1),
    }


# ----------------------------------------------------------------------------
# Plain-JAX f32 reference (mirrors the PyTorch module) for a sanity check
# ----------------------------------------------------------------------------
def reference_forward(params, x_nchw, linear_layer_input):
    y1 = jax.lax.conv_general_dilated(
        x_nchw, params["conv1_w"], window_strides=(1, 1),
        padding=((1, 1), (1, 1)), dimension_numbers=("NCHW", "OIHW", "NCHW"))
    y1 = jnp.maximum(y1 + params["conv1_b"][None, :, None, None], 0.0)
    y2 = jax.lax.conv_general_dilated(
        y1, params["conv2_w"], window_strides=(1, 1),
        padding=((1, 1), (1, 1)), dimension_numbers=("NCHW", "OIHW", "NCHW"))
    y2 = jnp.maximum(y2 + params["conv2_b"][None, :, None, None], 0.0)
    flat = y2.reshape(y2.shape[0], -1)
    lin = linear_layer_input
    if lin.shape[0] != flat.shape[0]:
        lin = jnp.broadcast_to(lin, (flat.shape[0],) + lin.shape[1:])
    feat = jnp.concatenate([flat, lin], axis=1)
    h = jnp.maximum(feat @ params["fc1_w"].T + params["fc1_b"], 0.0)
    return h @ params["fc2_w"].T + params["fc2_b"]


if __name__ == "__main__":
    # Module-consistent small shapes: batch=2, input_channels=1, board 20x10,
    # linear_layer_input_dim=8, action_dim=40.
    BATCH, CIN, H, W = 2, 1, 20, 10
    LIN_DIM, ACTION_DIM = 8, 40

    root = jax.random.PRNGKey(0)
    k_params, k_x, k_lin = jax.random.split(root, 3)

    params = init_params(k_params, input_channels=CIN, board_height=H,
                         board_width=W, linear_layer_input_dim=LIN_DIM,
                         action_dim=ACTION_DIM)
    kparams = prepare_params(params, board_height=H, board_width=W)

    x = (jax.random.uniform(k_x, (BATCH, CIN, H, W)) > 0.5).astype(jnp.float32)
    lin = jax.random.normal(k_lin, (BATCH, LIN_DIM), jnp.float32)

    fwd = jax.jit(tetris_cnn_forward)
    out = fwd(kparams, x, lin)
    jax.block_until_ready(out)
    assert out.shape == (BATCH, ACTION_DIM), out.shape

    # Loose-tolerance check vs. a plain-XLA f32 reference (kernels use bf16
    # weights/activations with f32 accumulation).
    ref = reference_forward(params, x, lin)
    max_err = float(jnp.max(jnp.abs(out - ref.astype(jnp.float32))))
    assert max_err < 3e-2, f"max abs error vs reference: {max_err}"

    # TODO(synk): intermediate_data capture and x_2.register_hook gradient
    # hooks are training-time PyTorch side effects with no forward-pass Pallas
    # equivalent.
    print("KERNEL_OK")
</pallas_src>

<mosaic_0001>
module attributes {stable_mosaic.version = 11 : i64} {
  func.func @_conv_kernel(%arg0: i32, %arg1: memref<1x22x12xf32, #tpu.memory_space<vmem>>, %arg2: memref<3x12x384xbf16, #tpu.memory_space<vmem>>, %arg3: memref<1x384xf32, #tpu.memory_space<vmem>>, %arg4: memref<3x384x640xbf16, #tpu.memory_space<vmem>>, %arg5: memref<1x640xf32, #tpu.memory_space<vmem>>, %arg6: memref<1x20x640xbf16, #tpu.memory_space<vmem>>, %arg7: memref<22x384xf32, #tpu.memory_space<vmem>>) attributes {dimension_semantics = [#tpu.dimension_semantics<parallel>], iteration_bounds = array<i64: 2>, scalar_prefetch = 0 : i64, scratch_operands = 1 : i64, tpu.core_type = #tpu.core_type<tc>, window_params = [{transform_indices = @transform_0, window_bounds = array<i64: 1, 22, 12>}, {pipeline_mode = #tpu.pipeline_mode<synchronous>, transform_indices = @transform_1, window_bounds = array<i64: 3, 12, 384>}, {pipeline_mode = #tpu.pipeline_mode<synchronous>, transform_indices = @transform_2, window_bounds = array<i64: 1, 384>}, {pipeline_mode = #tpu.pipeline_mode<synchronous>, transform_indices = @transform_3, window_bounds = array<i64: 3, 384, 640>}, {pipeline_mode = #tpu.pipeline_mode<synchronous>, transform_indices = @transform_4, window_bounds = array<i64: 1, 640>}, {transform_indices = @transform_5, window_bounds = array<i64: 1, 20, 640>}]} {
    %c0 = arith.constant 0 : index
    %c0_0 = arith.constant 0 : index
    %0 = vector.load %arg3[%c0, %c0_0] : memref<1x384xf32, #tpu.memory_space<vmem>>, vector<1x384xf32>
    %c0_1 = arith.constant 0 : index
    %c0_2 = arith.constant 0 : index
    %c0_3 = arith.constant 0 : index
    %1 = vector.load %arg1[%c0_1, %c0_2, %c0_3] : memref<1x22x12xf32, #tpu.memory_space<vmem>>, vector<1x20x12xf32>
    %2 = vector.shape_cast %1 : vector<1x20x12xf32> to vector<20x12xf32>
    %3 = arith.truncf %2 : vector<20x12xf32> to vector<20x12xbf16>
    %c0_4 = arith.constant 0 : index
    %c0_5 = arith.constant 0 : index
    %c0_6 = arith.constant 0 : index
    %4 = vector.load %arg2[%c0_4, %c0_5, %c0_6] : memref<3x12x384xbf16, #tpu.memory_space<vmem>>, vector<1x12x384xbf16>
    %5 = vector.shape_cast %4 : vector<1x12x384xbf16> to vector<12x384xbf16>
    %cst = arith.constant dense<0.000000e+00> : vector<20x384xf32>
    %6 = tpu.matmul %3, %5, %cst {dimension_numbers = #tpu.dot_dimension_numbers<[1], [0], [0], [1], [0, 0, 1, 1], [], []>} : vector<20x12xbf16>, vector<12x384xbf16>, vector<20x384xf32> -> vector<20x384xf32>
    %7 = vector.broadcast %0 : vector<1x384xf32> to vector<20x384xf32>
    %8 = arith.addf %7, %6 : vector<20x384xf32>
    %c0_7 = arith.constant 0 : index
    %c1 = arith.constant 1 : index
    %c0_8 = arith.constant 0 : index
    %9 = vector.load %arg1[%c0_7, %c1, %c0_8] : memref<1x22x12xf32, #tpu.memory_space<vmem>>, vector<1x20x12xf32>
    %10 = vector.shape_cast %9 : vector<1x20x12xf32> to vector<20x12xf32>
    %11 = arith.truncf %10 : vector<20x12xf32> to vector<20x12xbf16>
    %c1_9 = arith.constant 1 : index
    %c0_10 = arith.constant 0 : index
    %c0_11 = arith.constant 0 : index
    %12 = vector.load %arg2[%c1_9, %c0_10, %c0_11] : memref<3x12x384xbf16, #tpu.memory_space<vmem>>, vector<1x12x384xbf16>
    %13 = vector.shape_cast %12 : vector<1x12x384xbf16> to vector<12x384xbf16>
    %cst_12 = arith.constant dense<0.000000e+00> : vector<20x384xf32>
    %14 = tpu.matmul %11, %13, %cst_12 {dimension_numbers = #tpu.dot_dimension_numbers<[1], [0], [0], [1], [0, 0, 1, 1], [], []>} : vector<20x12xbf16>, vector<12x384xbf16>, vector<20x384xf32> -> vector<20x384xf32>
    %15 = arith.addf %8, %14 : vector<20x384xf32>
    %c0_13 = arith.constant 0 : index
    %c2 = arith.constant 2 : index
    %c0_14 = arith.constant 0 : index
    %16 = vector.load %arg1[%c0_13, %c2, %c0_14] : memref<1x22x12xf32, #tpu.memory_space<vmem>>, vector<1x20x12xf32>
    %17 = vector.shape_cast %16 : vector<1x20x12xf32> to vector<20x12xf32>
    %18 = arith.truncf %17 : vector<20x12xf32> to vector<20x12xbf16>
    %c2_15 = arith.constant 2 : index
    %c0_16 = arith.constant 0 : index
    %c0_17 = arith.constant 0 : index
    %19 = vector.load %arg2[%c2_15, %c0_16, %c0_17] : memref<3x12x384xbf16, #tpu.memory_space<vmem>>, vector<1x12x384xbf16>
    %20 = vector.shape_cast %19 : vector<1x12x384xbf16> to vector<12x384xbf16>
    %cst_18 = arith.constant dense<0.000000e+00> : vector<20x384xf32>
    %21 = tpu.matmul %18, %20, %cst_18 {dimension_numbers = #tpu.dot_dimension_numbers<[1], [0], [0], [1], [0, 0, 1, 1], [], []>} : vector<20x12xbf16>, vector<12x384xbf16>, vector<20x384xf32> -> vector<20x384xf32>
    %22 = arith.addf %15, %21 : vector<20x384xf32>
    %cst_19 = arith.constant 0.000000e+00 : f32
    %23 = vector.broadcast %cst_19 : f32 to vector<22x384xf32>
    %c0_20 = arith.constant 0 : index
    %c0_21 = arith.constant 0 : index
    %24 = vector.load %arg7[%c0_20, %c0_21] : memref<22x384xf32, #tpu.memory_space<vmem>>, vector<22x384xf32>
    tpu.vector_store %arg7[%c0_20, %c0_21], %23 {strides = array<i32>} : memref<22x384xf32, #tpu.memory_space<vmem>>, vector<22x384xf32>,
    %cst_22 = arith.constant 0.000000e+00 : f32
    %25 = vector.broadcast %cst_22 : f32 to vector<20x384xf32>
    %26 = arith.maximumf %22, %25 : vector<20x384xf32>
    %c1_23 = arith.constant 1 : index
    %c0_24 = arith.constant 0 : index
    %27 = vector.load %arg7[%c1_23, %c0_24] : memref<22x384xf32, #tpu.memory_space<vmem>>, vector<20x384xf32>
    tpu.vector_store %arg7[%c1_23, %c0_24], %26 {strides = array<i32>} : memref<22x384xf32, #tpu.memory_space<vmem>>, vector<20x384xf32>,
    %c0_25 = arith.constant 0 : index
    %c0_26 = arith.constant 0 : index
    %28 = vector.load %arg5[%c0_25, %c0_26] : memref<1x640xf32, #tpu.memory_space<vmem>>, vector<1x640xf32>
    %c0_27 = arith.constant 0 : index
    %c0_28 = arith.constant 0 : index
    %29 = vector.load %arg7[%c0_27, %c0_28] : memref<22x384xf32, #tpu.memory_space<vmem>>, vector<20x384xf32>
    %30 = arith.truncf %29 : vector<20x384xf32> to vector<20x384xbf16>
    %c0_29 = arith.constant 0 : index
    %c0_30 = arith.constant 0 : index
    %c0_31 = arith.constant 0 : index
    %31 = vector.load %arg4[%c0_29, %c0_30, %c0_31] : memref<3x384x640xbf16, #tpu.memory_space<vmem>>, vector<1x384x640xbf16>
    %32 = vector.shape_cast %31 : vector<1x384x640xbf16> to vector<384x640xbf16>
    %cst_32 = arith.constant dense<0.000000e+00> : vector<20x640xf32>
    %33 = tpu.matmul %30, %32, %cst_32 {dimension_numbers = #tpu.dot_dimension_numbers<[1], [0], [0], [1], [0, 0, 1, 1], [], []>} : vector<20x384xbf16>, vector<384x640xbf16>, vector<20x640xf32> -> vector<20x640xf32>
    %34 = vector.broadcast %28 : vector<1x640xf32> to vector<20x640xf32>
    %35 = arith.addf %34, %33 : vector<20x640xf32>
    %c1_33 = arith.constant 1 : index
    %c0_34 = arith.constant 0 : index
    %36 = vector.load %arg7[%c1_33, %c0_34] : memref<22x384xf32, #tpu.memory_space<vmem>>, vector<20x384xf32>
    %37 = arith.truncf %36 : vector<20x384xf32> to vector<20x384xbf16>
    %c1_35 = arith.constant 1 : index
    %c0_36 = arith.constant 0 : index
    %c0_37 = arith.constant 0 : index
    %38 = vector.load %arg4[%c1_35, %c0_36, %c0_37] : memref<3x384x640xbf16, #tpu.memory_space<vmem>>, vector<1x384x640xbf16>
    %39 = vector.shape_cast %38 : vector<1x384x640xbf16> to vector<384x640xbf16>
    %cst_38 = arith.constant dense<0.000000e+00> : vector<20x640xf32>
    %40 = tpu.matmul %37, %39, %cst_38 {dimension_numbers = #tpu.dot_dimension_numbers<[1], [0], [0], [1], [0, 0, 1, 1], [], []>} : vector<20x384xbf16>, vector<384x640xbf16>, vector<20x640xf32> -> vector<20x640xf32>
    %41 = arith.addf %35, %40 : vector<20x640xf32>
    %c2_39 = arith.constant 2 : index
    %c0_40 = arith.constant 0 : index
    %42 = vector.load %arg7[%c2_39, %c0_40] : memref<22x384xf32, #tpu.memory_space<vmem>>, vector<20x384xf32>
    %43 = arith.truncf %42 : vector<20x384xf32> to vector<20x384xbf16>
    %c2_41 = arith.constant 2 : index
    %c0_42 = arith.constant 0 : index
    %c0_43 = arith.constant 0 : index
    %44 = vector.load %arg4[%c2_41, %c0_42, %c0_43] : memref<3x384x640xbf16, #tpu.memory_space<vmem>>, vector<1x384x640xbf16>
    %45 = vector.shape_cast %44 : vector<1x384x640xbf16> to vector<384x640xbf16>
    %cst_44 = arith.constant dense<0.000000e+00> : vector<20x640xf32>
    %46 = tpu.matmul %43, %45, %cst_44 {dimension_numbers = #tpu.dot_dimension_numbers<[1], [0], [0], [1], [0, 0, 1, 1], [], []>} : vector<20x384xbf16>, vector<384x640xbf16>, vector<20x640xf32> -> vector<20x640xf32>
    %47 = arith.addf %41, %46 : vector<20x640xf32>
    %cst_45 = arith.constant 0.000000e+00 : f32
    %48 = vector.broadcast %cst_45 : f32 to vector<20x640xf32>
    %49 = arith.maximumf %47, %48 : vector<20x640xf32>
    %50 = arith.truncf %49 : vector<20x640xf32> to vector<20x640xbf16>
    %c0_46 = arith.constant 0 : index
    %c0_47 = arith.constant 0 : index
    %c0_48 = arith.constant 0 : index
    %51 = vector.load %arg6[%c0_46, %c0_47, %c0_48] : memref<1x20x640xbf16, #tpu.memory_space<vmem>>, vector<1x20x640xbf16>
    %52 = vector.shape_cast %51 : vector<1x20x640xbf16> to vector<20x640xbf16>
    %53 = vector.shape_cast %50 : vector<20x640xbf16> to vector<1x20x640xbf16>
    tpu.vector_store %arg6[%c0_46, %c0_47, %c0_48], %53 {strides = array<i32>} : memref<1x20x640xbf16, #tpu.memory_space<vmem>>, vector<1x20x640xbf16>,
    return
  }
  func.func @transform_0(%arg0: i32) -> (i32, i32, i32) {
    %c0_i32 = arith.constant 0 : i32
    %c0_i32_0 = arith.constant 0 : i32
    %c0_i32_1 = arith.constant 0 : i32
    return %arg0, %c0_i32, %c0_i32_0 : i32, i32, i32
  }
  func.func @transform_1(%arg0: i32) -> (i32, i32, i32) {
    %c0_i32 = arith.constant 0 : i32
    %c0_i32_0 = arith.constant 0 : i32
    %c0_i32_1 = arith.constant 0 : i32
    %c0_i32_2 = arith.constant 0 : i32
    return %c0_i32, %c0_i32_0, %c0_i32_1 : i32, i32, i32
  }
  func.func @transform_2(%arg0: i32) -> (i32, i32) {
    %c0_i32 = arith.constant 0 : i32
    %c0_i32_0 = arith.constant 0 : i32
    %c0_i32_1 = arith.constant 0 : i32
    return %c0_i32, %c0_i32_0 : i32, i32
  }
  func.func @transform_3(%arg0: i32) -> (i32, i32, i32) {
    %c0_i32 = arith.constant 0 : i32
    %c0_i32_0 = arith.constant 0 : i32
    %c0_i32_1 = arith.constant 0 : i32
    %c0_i32_2 = arith.constant 0 : i32
    return %c0_i32, %c0_i32_0, %c0_i32_1 : i32, i32, i32
  }
  func.func @transform_4(%arg0: i32) -> (i32, i32) {
    %c0_i32 = arith.constant 0 : i32
    %c0_i32_0 = arith.constant 0 : i32
    %c0_i32_1 = arith.constant 0 : i32
    return %c0_i32, %c0_i32_0 : i32, i32
  }
  func.func @transform_5(%arg0: i32) -> (i32, i32, i32) {
    %c0_i32 = arith.constant 0 : i32
    %c0_i32_0 = arith.constant 0 : i32
    %c0_i32_1 = arith.constant 0 : i32
    return %arg0, %c0_i32, %c0_i32_0 : i32, i32, i32
  }
}

module attributes {stable_mosaic.version = 11 : i64} {
  func.func @_fc_kernel(%arg0: i32, %arg1: memref<2x12800xbf16, #tpu.memory_space<vmem>>, %arg2: memref<2x8xbf16, #tpu.memory_space<vmem>>, %arg3: memref<12800x128xbf16, #tpu.memory_space<vmem>>, %arg4: memref<8x128xbf16, #tpu.memory_space<vmem>>, %arg5: memref<1x128xf32, #tpu.memory_space<vmem>>, %arg6: memref<128x40xbf16, #tpu.memory_space<vmem>>, %arg7: memref<1x40xf32, #tpu.memory_space<vmem>>, %arg8: memref<2x40xf32, #tpu.memory_space<vmem>>) attributes {dimension_semantics = [#tpu.dimension_semantics<arbitrary>], iteration_bounds = array<i64: 1>, scalar_prefetch = 0 : i64, scratch_operands = 0 : i64, tpu.core_type = #tpu.core_type<tc>, window_params = [{pipeline_mode = #tpu.pipeline_mode<synchronous>, transform_indices = @transform_0, window_bounds = array<i64: 2, 12800>}, {pipeline_mode = #tpu.pipeline_mode<synchronous>, transform_indices = @transform_1, window_bounds = array<i64: 2, 8>}, {pipeline_mode = #tpu.pipeline_mode<synchronous>, transform_indices = @transform_2, window_bounds = array<i64: 12800, 128>}, {pipeline_mode = #tpu.pipeline_mode<synchronous>, transform_indices = @transform_3, window_bounds = array<i64: 8, 128>}, {pipeline_mode = #tpu.pipeline_mode<synchronous>, transform_indices = @transform_4, window_bounds = array<i64: 1, 128>}, {pipeline_mode = #tpu.pipeline_mode<synchronous>, transform_indices = @transform_5, window_bounds = array<i64: 128, 40>}, {pipeline_mode = #tpu.pipeline_mode<synchronous>, transform_indices = @transform_6, window_bounds = array<i64: 1, 40>}, {pipeline_mode = #tpu.pipeline_mode<synchronous>, transform_indices = @transform_7, window_bounds = array<i64: 2, 40>}]} {
    %c0 = arith.constant 0 : index
    %c0_0 = arith.constant 0 : index
    %0 = vector.load %arg1[%c0, %c0_0] : memref<2x12800xbf16, #tpu.memory_space<vmem>>, vector<2x12800xbf16>
    %c0_1 = arith.constant 0 : index
    %c0_2 = arith.constant 0 : index
    %1 = vector.load %arg3[%c0_1, %c0_2] : memref<12800x128xbf16, #tpu.memory_space<vmem>>, vector<12800x128xbf16>
    %cst = arith.constant dense<0.000000e+00> : vector<2x128xf32>
    %2 = tpu.matmul %0, %1, %cst {dimension_numbers = #tpu.dot_dimension_numbers<[1], [0], [0], [1], [0, 0, 1, 1], [], []>} : vector<2x12800xbf16>, vector<12800x128xbf16>, vector<2x128xf32> -> vector<2x128xf32>
    %c0_3 = arith.constant 0 : index
    %c0_4 = arith.constant 0 : index
    %3 = vector.load %arg2[%c0_3, %c0_4] : memref<2x8xbf16, #tpu.memory_space<vmem>>, vector<2x8xbf16>
    %c0_5 = arith.constant 0 : index
    %c0_6 = arith.constant 0 : index
    %4 = vector.load %arg4[%c0_5, %c0_6] : memref<8x128xbf16, #tpu.memory_space<vmem>>, vector<8x128xbf16>
    %cst_7 = arith.constant dense<0.000000e+00> : vector<2x128xf32>
    %5 = tpu.matmul %3, %4, %cst_7 {dimension_numbers = #tpu.dot_dimension_numbers<[1], [0], [0], [1], [0, 0, 1, 1], [], []>} : vector<2x8xbf16>, vector<8x128xbf16>, vector<2x128xf32> -> vector<2x128xf32>
    %6 = arith.addf %2, %5 : vector<2x128xf32>
    %c0_8 = arith.constant 0 : index
    %c0_9 = arith.constant 0 : index
    %7 = vector.load %arg5[%c0_8, %c0_9] : memref<1x128xf32, #tpu.memory_space<vmem>>, vector<1x128xf32>
    %8 = vector.broadcast %7 : vector<1x128xf32> to vector<2x128xf32>
    %9 = arith.addf %6, %8 : vector<2x128xf32>
    %cst_10 = arith.constant 0.000000e+00 : f32
    %10 = vector.broadcast %cst_10 : f32 to vector<2x128xf32>
    %11 = arith.maximumf %9, %10 : vector<2x128xf32>
    %12 = arith.truncf %11 : vector<2x128xf32> to vector<2x128xbf16>
    %c0_11 = arith.constant 0 : index
    %c0_12 = arith.constant 0 : index
    %13 = vector.load %arg6[%c0_11, %c0_12] : memref<128x40xbf16, #tpu.memory_space<vmem>>, vector<128x40xbf16>
    %cst_13 = arith.constant dense<0.000000e+00> : vector<2x40xf32>
    %14 = tpu.matmul %12, %13, %cst_13 {dimension_numbers = #tpu.dot_dimension_numbers<[1], [0], [0], [1], [0, 0, 1, 1], [], []>} : vector<2x128xbf16>, vector<128x40xbf16>, vector<2x40xf32> -> vector<2x40xf32>
    %c0_14 = arith.constant 0 : index
    %c0_15 = arith.constant 0 : index
    %15 = vector.load %arg7[%c0_14, %c0_15] : memref<1x40xf32, #tpu.memory_space<vmem>>, vector<1x40xf32>
    %16 = vector.broadcast %15 : vector<1x40xf32> to vector<2x40xf32>
    %17 = arith.addf %14, %16 : vector<2x40xf32>
    %c0_16 = arith.constant 0 : index
    %c0_17 = arith.constant 0 : index
    %18 = vector.load %arg8[%c0_16, %c0_17] : memref<2x40xf32, #tpu.memory_space<vmem>>, vector<2x40xf32>
    tpu.vector_store %arg8[%c0_16, %c0_17], %17 {strides = array<i32>} : memref<2x40xf32, #tpu.memory_space<vmem>>, vector<2x40xf32>,
    return
  }
  func.func @transform_0(%arg0: i32) -> (i32, i32) {
    %c0_i32 = arith.constant 0 : i32
    %c0_i32_0 = arith.constant 0 : i32
    %c0_i32_1 = arith.constant 0 : i32
    return %c0_i32, %c0_i32_0 : i32, i32
  }
  func.func @transform_1(%arg0: i32) -> (i32, i32) {
    %c0_i32 = arith.constant 0 : i32
    %c0_i32_0 = arith.constant 0 : i32
    %c0_i32_1 = arith.constant 0 : i32
    return %c0_i32, %c0_i32_0 : i32, i32
  }
  func.func @transform_2(%arg0: i32) -> (i32, i32) {
    %c0_i32 = arith.constant 0 : i32
    %c0_i32_0 = arith.constant 0 : i32
    %c0_i32_1 = arith.constant 0 : i32
    return %c0_i32, %c0_i32_0 : i32, i32
  }
  func.func @transform_3(%arg0: i32) -> (i32, i32) {
    %c0_i32 = arith.constant 0 : i32
    %c0_i32_0 = arith.constant 0 : i32
    %c0_i32_1 = arith.constant 0 : i32
    return %c0_i32, %c0_i32_0 : i32, i32
  }
  func.func @transform_4(%arg0: i32) -> (i32, i32) {
    %c0_i32 = arith.constant 0 : i32
    %c0_i32_0 = arith.constant 0 : i32
    %c0_i32_1 = arith.constant 0 : i32
    return %c0_i32, %c0_i32_0 : i32, i32
  }
  func.func @transform_5(%arg0: i32) -> (i32, i32) {
    %c0_i32 = arith.constant 0 : i32
    %c0_i32_0 = arith.constant 0 : i32
    %c0_i32_1 = arith.constant 0 : i32
    return %c0_i32, %c0_i32_0 : i32, i32
  }
  func.func @transform_6(%arg0: i32) -> (i32, i32) {
    %c0_i32 = arith.constant 0 : i32
    %c0_i32_0 = arith.constant 0 : i32
    %c0_i32_1 = arith.constant 0 : i32
    return %c0_i32, %c0_i32_0 : i32, i32
  }
  func.func @transform_7(%arg0: i32) -> (i32, i32) {
    %c0_i32 = arith.constant 0 : i32
    %c0_i32_0 = arith.constant 0 : i32
    %c0_i32_1 = arith.constant 0 : i32
    return %c0_i32, %c0_i32_0 : i32, i32
  }
}

</mosaic_0001>

<bundles_post_ra>
// kernel: tetris_cnn_forward.2
= control target key start
LH: loop header
LB: loop body
LE: loop exit
PB: predicated region body
PF: predicated region fallthrough
CT: control target
= control target key end

     0   :  { %10 = vsyncpa [#allocation4], 0  ;;  %s6242_s0 = inlined_call_operand.vmem [shape: f32[2,22,12], index: 0, kind: input, shape index: {}]   ;;  %s6243_s1 = inlined_call_operand.hbm [shape: bf16[3,12,384], index: 1, kind: input, shape index: {}]   ;;  %s6244_s2 = inlined_call_operand.hbm [shape: f32[1,384], index: 2, kind: input, shape index: {}]   ;;  %s6245_s3 = inlined_call_operand.hbm [shape: bf16[3,384,640], index: 3, kind: input, shape index: {}]   ;;  %s6246_s4 = inlined_call_operand.hbm [shape: f32[1,640], index: 4, kind: input, shape index: {}]   ;;  %s6247_s5 = inlined_call_operand.vmem [shape: bf16[2,20,640], index: 5, kind: output, shape index: {}]  }
   0x1   :  { %11 = vsyncpa [#allocation6], 0 }
   0x2   :  { %12 = vsyncpa [#allocation9], 0  ;;  %s5876_s18 = smov 0  }
   0x3 LB: > { %s5836_s19 = smov [#allocation5]   ;;  %s5882_s21 = sadd.s32 4294967295, %s5834_s18   ;;  %s5834_s18 = sphi %s5876_s18, %s18_s18  }
   0x4   : > { %s185_s20 = sshll.u32 %s5836_s19, 4  ;;  %p4364_p0 = scmp.ge.s32.totalorder %s5834_s18, 1  ;;  %s186_s20 = int_to_ptr.vmem [resolvable:$true] %s185_s20 }
   0x5   : > { %p159_p1 = scmp.lt.s32.totalorder %s5834_s18, 3  ;;  %p6248_p2 = scmp.eq.s32.totalorder %s5882_s21, 0 }
   0x6   : > { %s5837_s23 = smov [#allocation3]   ;;  %s5838_s26 = smov [#allocation7]  }
   0x7   : > { %p5887_p3 = pnand %p4364_p0, %p159_p1  ;;  %s171_s24 = sshll.u32 %s5837_s23, 4  ;;  %s5893_s24 = int_to_ptr.vmem [resolvable:$true] %s171_s24 }
   0x8   : > { %s195_s27 = sshll.u32 %s5838_s26, 4  ;;  %s5704_s30 = scalar_lea.hbm %s6244_s2, 48  ;;  %s5901_s27 = int_to_ptr.vmem [resolvable:$true] %s195_s27 }
   0x9   : > { %s6250_s22 = scalar_select %p5887_p3, 1, 0 }
   0xa   : > { %p5148_p4 = pneg %p5887_p3  ;;  %p5705_p6 = scmp.ne.s32.totalorder %s6244_s2, %s5704_s30 }
   0xb   : > { %p5711_p10 = scmp.lt.u32.totalorder %s5704_s30, %s6244_s2 }
   0xc   : > { %p5897_p5 = pnand %p6248_p2, %p5148_p4 }
   0xe   : > { %p5911_p7 = pneg %p5897_p5 }
  0x10   : > { %p5707_p8 = pnand %p5911_p7, %p5705_p6 }
  0x12   : > { %p5708_p9 = pneg %p5707_p8 }
  0x14   : > { %p5713_p11 = pnand %p5711_p10, %p5708_p9 }
  0x16   : > { %5716 = shalt.err (!%p5713_p11)
}
  0x17   : > { %s5717_s11 = scalar_lea.vmem %s186_s20, 48  ;;  %s5724_s12 = scalar_lea.vmem %s186_s20, 64 }
  0x18   : > { %p5718_p12 = scmp.ne.s32.totalorder %s186_s20, %s5717_s11  ;;  %p5725_p1 = scmp.lt.s32.totalorder %s186_s20, %s186_s20 }
  0x19   : > { %p5726_p4 = scmp.lt.s32.totalorder %s5724_s12, %s5717_s11 }
  0x1a   : > { %p5720_p13 = pnand %p5718_p12, %p5911_p7 }
  0x1b   : > { %p5727_p2 = por %p5726_p4, %p5725_p1 }
  0x1c   : > { %p5721_p0 = pneg %p5720_p13 }
  0x1e   : > { %p5728_p3 = pnand %p5727_p2, %p5721_p0 }
  0x20   : > { %5731 = shalt.err (!%p5728_p3)
}
  0x21   : > { %5154 = dma.hbm_to_vmem [thread:$0]  (!%p5897_p5), %s6244_s2, 48, %s186_s20, [#allocation6]  }
  0x22   : > { %s5732_s17 = scalar_lea.hbm %s6243_s1, 1152 }
  0x23   : > { %p5733_p6 = scmp.ne.s32.totalorder %s6243_s1, %s5732_s17  ;;  %p5739_p2 = scmp.lt.u32.totalorder %s5732_s17, %s6243_s1 }
  0x25   : > { %p5735_p8 = pnand %p5733_p6, %p5911_p7 }
  0x27   : > { %p5736_p9 = pneg %p5735_p8 }
  0x29   : > { %p5741_p3 = pnand %p5739_p2, %p5736_p9 }
  0x2b   : > { %5744 = shalt.err (!%p5741_p3)
}
  0x2c   : > { %s5745_s20 = scalar_lea.vmem %s5893_s24, 1152  ;;  %p5753_p13 = scmp.lt.s32.totalorder %s5893_s24, %s5893_s24 }
  0x2d   : > { %p5746_p10 = scmp.ne.s32.totalorder %s5893_s24, %s5745_s20  ;;  %p5754_p0 = scmp.lt.s32.totalorder %s5745_s20, %s5745_s20 }
  0x2f   : > { %p5748_p11 = pnand %p5746_p10, %p5911_p7  ;;  %p5755_p1 = por %p5754_p0, %p5753_p13 }
  0x31   : > { %p5749_p12 = pneg %p5748_p11 }
  0x33   : > { %p5756_p4 = pnand %p5755_p1, %p5749_p12 }
  0x35   : > { %5759 = shalt.err (!%p5756_p4)
}
  0x36   : > { %s5839_s29 = smov 192   ;;  %s5840_s30 = smov 12  }
  0x37   : > { %5151 = dma.hbm_to_vmem [thread:$0]  (!%p5897_p5), %s6243_s1, 1152, %s5893_s24, [#allocation4], %s5839_s29, %s5839_s29, %s5840_s30  }
  0x38   : > { %s5760_s11 = scalar_lea.hbm %s6245_s3, 46080 }
  0x39   : > { %p5761_p6 = scmp.ne.s32.totalorder %s6245_s3, %s5760_s11  ;;  %p5767_p2 = scmp.lt.u32.totalorder %s5760_s11, %s6245_s3 }
  0x3b   : > { %p5763_p8 = pnand %p5761_p6, %p5911_p7 }
  0x3d   : > { %p5764_p9 = pneg %p5763_p8 }
  0x3f   : > { %p5769_p3 = pnand %p5767_p2, %p5764_p9 }
  0x41   : > { %5772 = shalt.err (!%p5769_p3)
}
  0x42   : > { %s5773_s24 = scalar_lea.vmem %s5901_s27, 46080  ;;  %p5781_p13 = scmp.lt.s32.totalorder %s5901_s27, %s5901_s27 }
  0x43   : > { %p5774_p10 = scmp.ne.s32.totalorder %s5901_s27, %s5773_s24  ;;  %p5782_p0 = scmp.lt.s32.totalorder %s5773_s24, %s5773_s24 }
  0x45   : > { %p5776_p11 = pnand %p5774_p10, %p5911_p7  ;;  %p5783_p1 = por %p5782_p0, %p5781_p13 }
  0x47   : > { %p5777_p12 = pneg %p5776_p11 }
  0x49   : > { %p5784_p4 = pnand %p5783_p1, %p5777_p12 }
  0x4b   : > { %5787 = shalt.err (!%p5784_p4)
}
  0x4c   : > { %s5841_s16 = smov 320   ;;  %s5842_s17 = smov 20  }
  0x4d   : > { %5157 = dma.hbm_to_vmem [thread:$0]  (!%p5897_p5), %s6245_s3, 46080, %s5901_s27, [#allocation6], %s5841_s16, %s5841_s16, %s5842_s17  }
  0x4e   : > { %s5843_s26 = smov [#allocation8]   ;;  %s5788_s30 = scalar_lea.hbm %s6246_s4, 80 }
  0x4f   : > { %s209_s28 = sshll.u32 %s5843_s26, 4  ;;  %p5789_p6 = scmp.ne.s32.totalorder %s6246_s4, %s5788_s30  ;;  %s210_s28 = int_to_ptr.vmem [resolvable:$true] %s209_s28 }
  0x50   : > { %p5795_p2 = scmp.lt.u32.totalorder %s5788_s30, %s6246_s4 }
  0x51   : > { %p5791_p8 = pnand %p5789_p6, %p5911_p7 }
  0x53   : > { %p5792_p9 = pneg %p5791_p8 }
  0x55   : > { %p5797_p3 = pnand %p5795_p2, %p5792_p9 }
  0x57   : > { %5800 = shalt.err (!%p5797_p3)
}
  0x58   : > { %s5801_s27 = scalar_lea.vmem %s210_s28, 80  ;;  %s5808_s11 = scalar_lea.vmem %s210_s28, 96 }
  0x59   : > { %p5802_p10 = scmp.ne.s32.totalorder %s210_s28, %s5801_s27  ;;  %p5809_p13 = scmp.lt.s32.totalorder %s210_s28, %s210_s28 }
  0x5a   : > { %p5810_p0 = scmp.lt.s32.totalorder %s5808_s11, %s5801_s27 }
  0x5b   : > { %p5804_p11 = pnand %p5802_p10, %p5911_p7 }
  0x5c   : > { %p5811_p1 = por %p5810_p0, %p5809_p13 }
  0x5d   : > { %p5805_p12 = pneg %p5804_p11 }
  0x5f   : > { %p5812_p4 = pnand %p5811_p1, %p5805_p12 }
  0x61   : > { %5815 = shalt.err (!%p5812_p4)
}
  0x62   : > { %5160 = dma.hbm_to_vmem [thread:$0]  (!%p5897_p5), %s6246_s4, 80, %s210_s28, [#allocation9]  }
  0x63   : > { %p6253_p6 = scmp.ne.s32.totalorder %s6250_s22, 0 }
  0x64   : > { %p6254_p8 = scmp.eq.s32.totalorder (!%p6253_p6), %s5882_s21, 0 }
  0x65   : > { %230 = sbr.rel (%p6253_p6) target bundleno = 942 (0x3ae), region = 40 }
  0x6c   : > { %5821 = dma.done.wait (%p6254_p8), [#allocation4], 1152   ;;  %p6255_p7 = pmov %p6254_p8 }
  0x6e   : > { %5823 = vsyncadd (%p6255_p7), [#allocation4], 4294966144  ;;  %p6256_p9 = pmov %p6255_p7 }
  0x6f   : > { %p6257_p2 = pmov %p6255_p7 }
  0x70   : > { %5825 = dma.done.wait (%p6256_p9), [#allocation6], 46128  }
  0x71   : > { %5827 = vsyncadd (%p6257_p2), [#allocation6], 4294921168  ;;  %p6258_p3 = pmov %p6257_p2 }
  0x72   : > { %p6259_p5 = pmov %p6257_p2 }
  0x73   : > { %5829 = dma.done.wait (%p6258_p3), [#allocation9], 80  }
  0x74   : > { %5831 = vsyncadd (%p6259_p5), [#allocation9], 4294967216  ;;  %p270_p10 = scmp.lt.s32.totalorder %s5882_s21, 1  ;;  %v5844_v0 = vmov 0   ;;  %vm311_vm0 = vcmask 1045504   ;;  %vm304_vm1 = vcmask 97280  }
  0x75   : > { %353 = vmatprep.mubr.bf16.mxu0 %v5844_v0  ;;  %v5187_v1 = vld [vmem:[#allocation3 + $0x4] ss:$12 sps:$4 sm:$0x3f]   ;;  %v5189_v2 = vld [vmem:[#allocation3] ss:$12 sps:$4 sm:$0x3f]  }
  0x76   : > { %s6261_s21 = smov (!%p270_p10, %s5882_s21), 1  ;;  %4380 = vmatprep.subr.msk.bf16.mxu0 %vm311_vm0, %v5187_v1  ;;  %v5190_v6 = vld [vmem:[#allocation3 + $0x1c] ss:$12 sps:$4 sm:$0x3f]   ;;  %v313_v7 = vsel %vm311_vm0, %v5189_v2, 0  ;;  %vm764_vm2 = vcmask 1040384  }
  0x77   : > { %s5130_s22 = smul.u32 24, %s6261_s21  ;;  %v5192_v8 = vld [vmem:[#allocation3 + $0x18] ss:$12 sps:$4 sm:$0x3f]   ;;  %322 = vmatpush1.bf16.msra.mxu0 %v313_v7  ;;  %v5199_v33 = vld [vmem:[#allocation7] ss:$20 sps:$4 sm:$0xff]  }
  0x78   : > { %4388 = vmatprep.subr.msk.bf16.mxu0 %vm311_vm0, %v5190_v6  ;;  %v475_v10 = vsel %vm311_vm0, %v5192_v8, 0  ;;  %v5193_v11 = vld [vmem:[#allocation3 + $0x8] ss:$12 sps:$4 sm:$0x3f]   ;;  %v5204_v27 = vld [vmem:[#allocation7 + $0xc] ss:$20 sps:$4 sm:$0xff]  }
  0x79   : > { %s6014_s14 = scalar_lea.vmem %s6242_s0, %s5130_s22  ;;  %v5194_v14 = vld [vmem:[#allocation3 + $0x34] ss:$12 sps:$4 sm:$0x3f]   ;;  %5127 = vmatprep.subr.msk.bf16.mxu1 %vm311_vm0, %v5193_v11  ;;  %v319_v15 = vsel %vm311_vm0, %v5193_v11, 0  ;;  %v5201_v30 = vld [vmem:[#allocation7 + $0x4] ss:$20 sps:$4 sm:$0xff]  }
  0x7a   : > { %v282_v3 = vld [vmem:[%s6014_s14] sm:$0xff]  ;;  %v283_v4 = vld [vmem:[%s6014_s14 + $0x8] sm:$0xff]  ;;  %v284_v9 = vld [vmem:[%s6014_s14 + $0x10] sm:$0xf]  ;;  %4905 = vmatpush3.bf16.msra.mxu1 %v319_v15  ;;  %vm2080_vm3 = vsmask.f32 7424 }
  0x7b   : > { %v285_v5 = vpack.c.bf16 %v283_v4, %v282_v3  ;;  %v445_v12 = vld [vmem:[%s6014_s14 + $0x1] sm:$0xff]  ;;  %v446_v13 = vld [vmem:[%s6014_s14 + $0x9] sm:$0xff]  ;;  %v286_v16 = vpack.c.bf16 %v284_v9, %v284_v9  ;;  %v447_v22 = vld [vmem:[%s6014_s14 + $0x11] sm:$0xf]  ;;  %vm3234_vm4 = vcmask 1046528   ;;  %s5131_s15 = smul.u32 60, %s6261_s21 }
  0x7c   : > { %v5197_v17 = vld [vmem:[#allocation3 + $0x20] ss:$12 sps:$4 sm:$0x3f]   ;;  %v448_v18 = vpack.c.bf16 %v446_v13, %v445_v12  ;;  %v5198_v20 = vld [vmem:[#allocation3 + $0x38] ss:$12 sps:$4 sm:$0x3f]   ;;  %v449_v26 = vpack.c.bf16 %v447_v22, %v447_v22 }
  0x7d   : > { %4906 = vmatprep.mubr.msk.bf16.mxu1 %vm304_vm1, %v285_v5  ;;  %4381 = vmatmul.mubr.msk.bf16.vlgmr.msra.gmra.mrb[0].mxu0 %vm304_vm1, %v285_v5  ;;  %v481_v19 = vsel %vm311_vm0, %v5197_v17, 0  ;;  %v5196_v21 = vld [vmem:[#allocation3 + $0x30] ss:$12 sps:$4 sm:$0x3f]   ;;  %v592_v24 = vld [vmem:[%s6014_s14 + $0xa] sm:$0xff]  ;;  %v627_v29 = vsel %vm311_vm0, %v5198_v20, 0  ;;  %s6225_s17 = scalar_lea.vmem %s6247_s5, %s5131_s15 }
  0x7e   : > { %484 = vmatpush1.bf16.msra.mxu0 %v475_v10  ;;  %363 = vmatprep.mubr.bf16.mxu0 %v5844_v0  ;;  %v591_v23 = vld [vmem:[%s6014_s14 + $0x2] sm:$0xff]  ;;  %v621_v25 = vsel %vm311_vm0, %v5196_v21, 0  ;;  %v593_v31 = vld [vmem:[%s6014_s14 + $0x12] sm:$0xf]  ;;  %v5222_v44 = vld [vmem:[#allocation7 + $0x84] ss:$20 sps:$4 sm:$0xff]  }
  0x7f   : > { %4396 = vmatprep.subr.msk.bf16.mxu0 %vm311_vm0, %v5194_v14  ;;  %5128 = vmatprep.subr.msk.bf16.mxu1 %vm311_vm0, %v5197_v17  ;;  %v594_v28 = vpack.c.bf16 %v592_v24, %v591_v23  ;;  %v595_v32 = vpack.c.bf16 %v593_v31, %v593_v31  ;;  %v5207_v34 = vld [vmem:[#allocation7 + $0x2c] ss:$20 sps:$4 sm:$0xff]   ;;  %v5202_v35 = vld [vmem:[#allocation7 + $0x8] ss:$20 sps:$4 sm:$0xff]   ;;  %v5208_v38 = vld [vmem:[#allocation7 + $0x30] ss:$20 sps:$4 sm:$0xff]  }
  0x80   : > { %4907 = vmatmul.mubr.msk.bf16.vlgmr.msra.gmra.mrb[0].mxu1 %vm304_vm1, %v286_v16  ;;  %v5210_v36 = vld [vmem:[#allocation7 + $0x34] ss:$20 sps:$4 sm:$0xff]   ;;  %v5211_v40 = vld [vmem:[#allocation7 + $0x50] ss:$20 sps:$4 sm:$0xff]   ;;  %v5214_v43 = vld [vmem:[#allocation7 + $0x58] ss:$20 sps:$4 sm:$0xff]  }
  0x81   : > { %4911 = vmatpush3.bf16.msra.mxu1 %v481_v19  ;;  %4912 = vmatprep.mubr.msk.bf16.mxu1 %vm304_vm1, %v448_v18  ;;  %v5205_v37 = vld [vmem:[#allocation7 + $0x28] ss:$20 sps:$4 sm:$0xff]   ;;  %v5217_v45 = vld [vmem:[#allocation7 + $0x78] ss:$20 sps:$4 sm:$0xff]   ;;  %v5220_v47 = vld [vmem:[#allocation7 + $0x80] ss:$20 sps:$4 sm:$0xff]  }
  0x82   : > { %5129 = vmatprep.subr.msk.bf16.mxu1 %vm311_vm0, %v5198_v20  ;;  %v5213_v39 = vld [vmem:[#allocation7 + $0x54] ss:$20 sps:$4 sm:$0xff]   ;;  %v5216_v41 = vld [vmem:[#allocation7 + $0x5c] ss:$20 sps:$4 sm:$0xff]   ;;  %v5225_v46 = vld [vmem:[#allocation7 + $0xa4] ss:$20 sps:$4 sm:$0xff]  }
  0x83   : > { %v5219_v42 = vld [vmem:[#allocation7 + $0x7c] ss:$20 sps:$4 sm:$0xff]   ;;  %v5228_v48 = vld [vmem:[#allocation7 + $0xac] ss:$20 sps:$4 sm:$0xff]   ;;  %v5234_v52 = vld [vmem:[#allocation7 + $0xd4] ss:$20 sps:$4 sm:$0xff]  }
  0x84   : > { %v5223_v49 = vld [vmem:[#allocation7 + $0xa0] ss:$20 sps:$4 sm:$0xff]   ;;  %v5226_v51 = vld [vmem:[#allocation7 + $0xa8] ss:$20 sps:$4 sm:$0xff]   ;;  %v5232_v55 = vld [vmem:[#allocation7 + $0xd0] ss:$20 sps:$4 sm:$0xff]  }
  0x85   : > { %4382 = vmatmul.mubr.msk.bf16.gmra.mrb[4].mxu0 %vm304_vm1, %v286_v16  ;;  %v5231_v50 = vld [vmem:[#allocation7 + $0xcc] ss:$20 sps:$4 sm:$0xff]   ;;  %v5229_v53 = vld [vmem:[#allocation7 + $0xc8] ss:$20 sps:$4 sm:$0xff]   ;;  %v5235_v57 = vld [vmem:[#allocation7 + $0xf0] ss:$20 sps:$4 sm:$0xff]  }
  0x86   : > { %515 = vmatprep.mubr.bf16.mxu0 %v5844_v0  ;;  %v5237_v54 = vld [vmem:[#allocation7 + $0xf4] ss:$20 sps:$4 sm:$0xff]   ;;  %v5240_v56 = vld [vmem:[#allocation7 + $0xfc] ss:$20 sps:$4 sm:$0xff]   ;;  %v5238_v59 = vld [vmem:[#allocation7 + $0xf8] ss:$20 sps:$4 sm:$0xff]  }
  0x87   : > { %v5243_v58 = vld [vmem:[#allocation7 + $0x11c] ss:$20 sps:$4 sm:$0xff]   ;;  %v5246_v60 = vld [vmem:[#allocation7 + $0x124] ss:$20 sps:$4 sm:$0xff]   ;;  %v5244_v63 = vld [vmem:[#allocation7 + $0x120] ss:$20 sps:$4 sm:$0xff]  }
  0x88   : > { %v5241_v61 = vld [vmem:[#allocation7 + $0x118] ss:$20 sps:$4 sm:$0xff]   ;;  %v5247_v2 = vld [vmem:[#allocation7 + $0x140] ss:$20 sps:$4 sm:$0xff]   ;;  %v5250_v4 = vld [vmem:[#allocation7 + $0x148] ss:$20 sps:$4 sm:$0xff]  }
  0x89   : > { %v5249_v62 = vld [vmem:[#allocation7 + $0x144] ss:$20 sps:$4 sm:$0xff]   ;;  %v5252_v1 = vld [vmem:[#allocation7 + $0x14c] ss:$20 sps:$4 sm:$0xff]   ;;  %v5258_v5 = vld [vmem:[#allocation7 + $0x174] ss:$20 sps:$4 sm:$0xff]  }
  0x8a   : > { %v5255_v3 = vld [vmem:[#allocation7 + $0x16c] ss:$20 sps:$4 sm:$0xff]   ;;  %v5253_v6 = vld [vmem:[#allocation7 + $0x168] ss:$20 sps:$4 sm:$0xff]   ;;  %v5256_v8 = vld [vmem:[#allocation7 + $0x170] ss:$20 sps:$4 sm:$0xff]  }
  0x8b   : > { %v5261_v7 = vld [vmem:[#allocation7 + $0x194] ss:$20 sps:$4 sm:$0xff]   ;;  %v5264_v9 = vld [vmem:[#allocation7 + $0x19c] ss:$20 sps:$4 sm:$0xff]   ;;  %v5262_v11 = vld [vmem:[#allocation7 + $0x198] ss:$20 sps:$4 sm:$0xff]  }
  0x8c   : > { %4913 = vmatmul.mubr.msk.bf16.vlgmr.msra.gmra.mrb[0].mxu1 %vm304_vm1, %v449_v26  ;;  %v5259_v10 = vld [vmem:[#allocation7 + $0x190] ss:$20 sps:$4 sm:$0xff]   ;;  %v5265_v14 = vld [vmem:[#allocation7 + $0x1b8] ss:$20 sps:$4 sm:$0xff]   ;;  %v5268_v15 = vld [vmem:[#allocation7 + $0x1c0] ss:$20 sps:$4 sm:$0xff]  }
  0x8d   : > { %4389 = vmatmul.mubr.msk.bf16.vlgmr.msra.gmra.mrb[0].mxu0 %vm304_vm1, %v448_v18  ;;  %4917 = vmatpush3.bf16.msra.mxu1 %v627_v29  ;;  %v5267_v12 = vld [vmem:[#allocation7 + $0x1bc] ss:$20 sps:$4 sm:$0xff]   ;;  %v5270_v13 = vld [vmem:[#allocation7 + $0x1c4] ss:$20 sps:$4 sm:$0xff]   ;;  %v5276_v17 = vld [vmem:[#allocation7 + $0x1ec] ss:$20 sps:$4 sm:$0xff]  }
  0x8e   : > { %630 = vmatpush1.bf16.msra.mxu0 %v621_v25  ;;  %525 = vmatprep.mubr.bf16.mxu0 %v5844_v0  ;;  %v5273_v16 = vld [vmem:[#allocation7 + $0x1e4] ss:$20 sps:$4 sm:$0xff]   ;;  %v5271_v18 = vld [vmem:[#allocation7 + $0x1e0] ss:$20 sps:$4 sm:$0xff]   ;;  %v5274_v19 = vld [vmem:[#allocation7 + $0x1e8] ss:$20 sps:$4 sm:$0xff]  }
  0x8f   : > { %1684 = vmatprep.subr.bf16.mxu0 %v5204_v27  ;;  %4918 = vmatprep.mubr.msk.bf16.mxu1 %vm304_vm1, %v594_v28  ;;  %v5845_v20 = vmov 0.0   ;;  %v5279_v21 = vld [vmem:[#allocation7 + $0x20c] ss:$20 sps:$4 sm:$0xff]   ;;  %v5282_v22 = vld [vmem:[#allocation7 + $0x214] ss:$20 sps:$4 sm:$0xff]  }
  0x90   : > { %1582 = vmatprep.subr.bf16.mxu1 %v5201_v30  ;;  %737 = vst [vmem:[#allocation2] sm:$0xff] %v5845_v20  ;;  %738 = vst [vmem:[#allocation2 + $0x8] sm:$0xff] %v5845_v20  ;;  %v5277_v23 = vld [vmem:[#allocation7 + $0x208] ss:$20 sps:$4 sm:$0xff]   ;;  %v5280_v24 = vld [vmem:[#allocation7 + $0x210] ss:$20 sps:$4 sm:$0xff]  }
  0x91   : > { %739 = vst [vmem:[#allocation2 + $0x10] sm:$0xff] %v5845_v20  ;;  %743 = vst [vmem:[#allocation2 + $0x30] sm:$0x3f] %v5845_v20  ;;  %v5285_v25 = vld [vmem:[#allocation7 + $0x234] ss:$20 sps:$4 sm:$0xff]  }
  0x92   : > { %744 = vst [vmem:[#allocation2 + $0x38] sm:$0x3f] %v5845_v20  ;;  %745 = vst [vmem:[#allocation2 + $0x40] sm:$0x3f] %v5845_v20  ;;  %v5283_v27 = vld [vmem:[#allocation7 + $0x230] ss:$20 sps:$4 sm:$0xff]  }
  0x93   : > { %v5291_v29 = vld [vmem:[#allocation7 + $0x25c] ss:$20 sps:$4 sm:$0xff]   ;;  %v5294_v30 = vld [vmem:[#allocation7 + $0x264] ss:$20 sps:$4 sm:$0xff]  }
  0x94   : > { %v5289_v31 = vld [vmem:[#allocation7 + $0x258] ss:$20 sps:$4 sm:$0xff]  }
  0x95   : > { %4390 = vmatmul.mubr.msk.bf16.gmra.mrb[4].mxu0 %vm304_vm1, %v449_v26  ;;  %v5288_v26 = vld [vmem:[#allocation7 + $0x23c] ss:$20 sps:$4 sm:$0xff]  }
  0x96   : > { %661 = vmatprep.mubr.bf16.mxu0 %v5844_v0 }
  0x98   : > { %4919 = vmatmul.mubr.msk.bf16.vlgmr.msra.gmra.mrb[0].mxu1 %vm304_vm1, %v595_v32 }
  0x99   : > { %1583 = vmatpush1.bf16.msra.mxu1 %v5199_v33  ;;  %v5297_v33 = vld [vmem:[#allocation7 + $0x284] ss:$20 sps:$4 sm:$0xff]  }
  0x9a   : > { %1584 = vmatprep.subr.bf16.mxu1 %v5207_v34  ;;  %v5300_v34 = vld [vmem:[#allocation7 + $0x28c] ss:$20 sps:$4 sm:$0xff]  }
  0x9d   : > { %4397 = vmatmul.mubr.msk.bf16.vlgmr.msra.gmra.mrb[0].mxu0 %vm304_vm1, %v594_v28  ;;  %1585 = vmatpush1.bf16.msra.mxu1 %v5205_v37  ;;  %v5286_v28 = vld [vmem:[#allocation7 + $0x238] ss:$20 sps:$4 sm:$0xff]  }
  0x9e   : > { %671 = vmatprep.mubr.bf16.mxu0 %v5844_v0  ;;  %1685 = vmatpush1.bf16.msra.mxu0 %v5202_v35  ;;  %v421_v35 = vlaneseq }
  0x9f   : > { %1686 = vmatprep.subr.bf16.mxu0 %v5210_v36  ;;  %1586 = vmatprep.subr.bf16.mxu1 %v5213_v39 }
  0xa0   : > { %v6054_v36 = vshrl.u32 %v421_v35, 7  ;;  %v5306_v35 = vld [vmem:[#allocation7 + $0x2b4] ss:$20 sps:$4 sm:$0xff]  }
  0xa1   : > { %1587 = vmatpush1.bf16.msra.mxu1 %v5211_v40 }
  0xa2   : > { %1687 = vmatpush1.bf16.msra.mxu0 %v5208_v38  ;;  %1588 = vmatprep.subr.bf16.mxu1 %v5219_v42  ;;  %v431_v37 = vsub.s32 2, %v6054_v36  ;;  %v281_v38 = vld [vmem:[#allocation5] sm:$0x7]  ;;  %v423_v39 = vsub.s32 0, %v6054_v36  ;;  %v427_v40 = vsub.s32 1, %v6054_v36 }
  0xa3   : > { %1688 = vmatprep.subr.bf16.mxu0 %v5216_v41 }
  0xa4   : > { %v432_v41 = vrot.slane %v281_v38, %v431_v37  ;;  %v424_v42 = vrot.slane %v281_v38, %v423_v39 }
  0xa5   : > { %4398 = vmatmul.mubr.msk.bf16.gmra.mrb[4].mxu0 %vm304_vm1, %v595_v32  ;;  %1589 = vmatpush1.bf16.msra.mxu1 %v5217_v45  ;;  %v5292_v32 = vld [vmem:[#allocation7 + $0x260] ss:$20 sps:$4 sm:$0xff]  }
  0xa6   : > { %1689 = vmatpush1.bf16.msra.mxu0 %v5214_v43  ;;  %1590 = vmatprep.subr.bf16.mxu1 %v5225_v46  ;;  %v428_v43 = vrot.slane %v281_v38, %v427_v40 }
  0xa7   : > { %1690 = vmatprep.subr.bf16.mxu0 %v5222_v44 }
  0xa9   : > { %1591 = vmatpush1.bf16.msra.mxu1 %v5223_v49 }
  0xaa   : > { %1691 = vmatpush1.bf16.msra.mxu0 %v5220_v47  ;;  %1592 = vmatprep.subr.bf16.mxu1 %v5231_v50 }
  0xab   : > { %1692 = vmatprep.subr.bf16.mxu0 %v5228_v48 }
  0xad   : > { %1593 = vmatpush1.bf16.msra.mxu1 %v5229_v53 }
  0xae   : > { %1693 = vmatpush1.bf16.msra.mxu0 %v5226_v51  ;;  %1594 = vmatprep.subr.bf16.mxu1 %v5237_v54 }
  0xaf   : > { %1694 = vmatprep.subr.bf16.mxu0 %v5234_v52 }
  0xb1   : > { %1595 = vmatpush1.bf16.msra.mxu1 %v5235_v57 }
  0xb2   : > { %1695 = vmatpush1.bf16.msra.mxu0 %v5232_v55  ;;  %1596 = vmatprep.subr.bf16.mxu1 %v5243_v58 }
  0xb3   : > { %1696 = vmatprep.subr.bf16.mxu0 %v5240_v56 }
  0xb5   : > { %1597 = vmatpush1.bf16.msra.mxu1 %v5241_v61 }
  0xb6   : > { %1697 = vmatpush1.bf16.msra.mxu0 %v5238_v59  ;;  %1598 = vmatprep.subr.bf16.mxu1 %v5249_v62 }
  0xb7   : > { %1698 = vmatprep.subr.bf16.mxu0 %v5246_v60 }
  0xb9   : > { %1599 = vmatpush1.bf16.msra.mxu1 %v5247_v2 }
  0xba   : > { %1699 = vmatpush1.bf16.msra.mxu0 %v5244_v63  ;;  %1600 = vmatprep.subr.bf16.mxu1 %v5255_v3 }
  0xbb   : > { %1700 = vmatprep.subr.bf16.mxu0 %v5252_v1 }
  0xbd   : > { %1601 = vmatpush1.bf16.msra.mxu1 %v5253_v6 }
  0xbe   : > { %1701 = vmatpush1.bf16.msra.mxu0 %v5250_v4  ;;  %1602 = vmatprep.subr.bf16.mxu1 %v5261_v7 }
  0xbf   : > { %1702 = vmatprep.subr.bf16.mxu0 %v5258_v5 }
  0xc1   : > { %1603 = vmatpush1.bf16.msra.mxu1 %v5259_v10 }
  0xc2   : > { %1703 = vmatpush1.bf16.msra.mxu0 %v5256_v8  ;;  %1604 = vmatprep.subr.bf16.mxu1 %v5267_v12 }
  0xc3   : > { %1704 = vmatprep.subr.bf16.mxu0 %v5264_v9 }
  0xc5   : > { %1605 = vmatpush1.bf16.msra.mxu1 %v5265_v14 }
  0xc6   : > { %1705 = vmatpush1.bf16.msra.mxu0 %v5262_v11  ;;  %1606 = vmatprep.subr.bf16.mxu1 %v5273_v16 }
  0xc7   : > { %1706 = vmatprep.subr.bf16.mxu0 %v5270_v13 }
  0xc9   : > { %1607 = vmatpush1.bf16.msra.mxu1 %v5271_v18 }
  0xca   : > { %1707 = vmatpush1.bf16.msra.mxu0 %v5268_v15  ;;  %1608 = vmatprep.subr.bf16.mxu1 %v5279_v21 }
  0xcb   : > { %1708 = vmatprep.subr.bf16.mxu0 %v5276_v17 }
  0xcd   : > { %1609 = vmatpush1.bf16.msra.mxu1 %v5277_v23 }
  0xce   : > { %1709 = vmatpush1.bf16.msra.mxu0 %v5274_v19  ;;  %1610 = vmatprep.subr.bf16.mxu1 %v5285_v25 }
  0xcf   : > { %1710 = vmatprep.subr.bf16.mxu0 %v5282_v22 }
  0xd1   : > { %1611 = vmatpush1.bf16.msra.mxu1 %v5283_v27 }
  0xd2   : > { %1711 = vmatpush1.bf16.msra.mxu0 %v5280_v24  ;;  %1612 = vmatprep.subr.bf16.mxu1 %v5291_v29 }
  0xd3   : > { %1712 = vmatprep.subr.bf16.mxu0 %v5288_v26 }
  0xd5   : > { %1613 = vmatpush1.bf16.msra.mxu1 %v5289_v31  ;;  %v5295_v31 = vld [vmem:[#allocation7 + $0x280] ss:$20 sps:$4 sm:$0xff]  }
  0xd6   : > { %1713 = vmatpush1.bf16.msra.mxu0 %v5286_v28  ;;  %1633 = vmatprep.subr.bf16.mxu1 %v5297_v33  ;;  %v5303_v33 = vld [vmem:[#allocation7 + $0x2ac] ss:$20 sps:$4 sm:$0xff]  }
  0xd7   : > { %1714 = vmatprep.subr.bf16.mxu0 %v5294_v30 }
  0xda   : > { %1715 = vmatpush1.bf16.msra.mxu0 %v5292_v32  ;;  %v5298_v32 = vld [vmem:[#allocation7 + $0x288] ss:$20 sps:$4 sm:$0xff]  }
  0xdb   : > { %1735 = vmatprep.subr.bf16.mxu0 %v5300_v34 }
 0x16b   : > { %v4920_v44 = vpop.f32.mrb[0].mxu1 }
 0x16c   : > { %v4988_v45 = vadd.f32 %v4920_v44, %v432_v41  ;;  %v714_v46 = vpop.f32.mrb[1].mxu1 }
 0x16d   : > { %v4989_v48 = vadd.f32 %v714_v46, %v432_v41  ;;  %v4921_v49 = vpop.f32.mrb[2].mxu1  ;;  %v5301_v46 = vld [vmem:[#allocation7 + $0x2a8] ss:$20 sps:$4 sm:$0xff]  }
 0x16e   : > { %v754_v52 = vmax.f32 %v4988_v45, 0.0  ;;  %v717_v53 = vpop.f32.mrb[3].mxu1 }
 0x16f   : > { %v748_v56 = vmax.f32 %v4989_v48, 0.0  ;;  %v4990_v57 = vadd.f32 %v717_v53, %v432_v41 }
 0x170   : > { %v663_v47 = vpop.f32.mrb[0].mxu0  ;;  %v778_v61 = vrot.slane %v754_v52, 7 }
 0x171   : > { %v4982_v50 = vadd.f32 %v663_v47, %v424_v42  ;;  %v665_v51 = vpop.f32.mrb[1].mxu0  ;;  %v767_v1 = vrot.slane %v748_v56, 7  ;;  %v751_v2 = vmax.f32 %v4990_v57, 0.0  ;;  %v5304_v47 = vld [vmem:[#allocation7 + $0x2b0] ss:$20 sps:$4 sm:$0xff]  }
 0x172   : > { %v4983_v54 = vadd.f32 %v665_v51, %v428_v43  ;;  %v667_v55 = vpop.f32.mrb[2].mxu0  ;;  %v5312_v51 = vld [vmem:[#allocation7 + $0x2dc] ss:$20 sps:$4 sm:$0xff]  }
 0x173   : > { %v746_v58 = vmax.f32 %v4982_v50, 0.0  ;;  %v4984_v59 = vadd.f32 %v667_v55, %v424_v42  ;;  %v669_v60 = vpop.f32.mrb[3].mxu0  ;;  %791 = vst [vmem:[#allocation2 + $0x10] sm:$0xfe] %v767_v1  ;;  %v772_v7 = vrot.slane %v751_v2, 7 }
 0x174   : > { %v747_v62 = vmax.f32 %v4983_v54, 0.0  ;;  %v4985_v63 = vadd.f32 %v669_v60, %v428_v43  ;;  %v5309_v50 = vld [vmem:[#allocation7 + $0x2d4] ss:$20 sps:$4 sm:$0xff]   ;;  %v5307_v57 = vld [vmem:[#allocation7 + $0x2d0] ss:$20 sps:$4 sm:$0xff]  }
 0x175   : > { %v765_v3 = vrot.slane %v746_v58, 7  ;;  %v749_v4 = vmax.f32 %v4984_v59, 0.0  ;;  %v6066_v10 = vsel %vm764_vm2, %v767_v1, %v772_v7  ;;  %v779_v11 = vsel %vm764_vm2, %v772_v7, %v778_v61  ;;  %v5310_v60 = vld [vmem:[#allocation7 + $0x2d8] ss:$20 sps:$4 sm:$0xff]   ;;  %v5315_v1 = vld [vmem:[#allocation7 + $0x2fc] ss:$20 sps:$4 sm:$0xff]  }
 0x176   : > { %v766_v5 = vrot.slane %v747_v62, 7  ;;  %v750_v6 = vmax.f32 %v4985_v63, 0.0  ;;  %797 = vst [vmem:[#allocation2 + $0x40] sm:$0x1f] %v779_v11  ;;  %v5318_v2 = vld [vmem:[#allocation7 + $0x304] ss:$20 sps:$4 sm:$0xff]  }
 0x177   : > { %789 = vst [vmem:[#allocation2] sm:$0xfe] %v765_v3  ;;  %v768_v8 = vrot.slane %v749_v4, 7  ;;  %v5321_v7 = vld [vmem:[#allocation7 + $0x324] ss:$20 sps:$4 sm:$0xff]  }
 0x178   : > { %790 = vst [vmem:[#allocation2 + $0x8] sm:$0xfe] %v766_v5  ;;  %v770_v9 = vrot.slane %v750_v6, 7  ;;  %v673_v12 = vpop.f32.mrb[4].mxu0  ;;  %v5316_v6 = vld [vmem:[#allocation7 + $0x300] ss:$20 sps:$4 sm:$0xff]  }
 0x179   : > { %v6070_v13 = vsel %vm764_vm2, %v765_v3, %v768_v8  ;;  %v4986_v14 = vadd.f32 %v673_v12, %v424_v42  ;;  %v675_v15 = vpop.f32.mrb[5].mxu0  ;;  %v5322_v11 = vld [vmem:[#allocation7 + $0x328] ss:$20 sps:$4 sm:$0xff]   ;;  %v5327_v12 = vld [vmem:[#allocation7 + $0x34c] ss:$20 sps:$4 sm:$0xff]  }
 0x17a   : > { %792 = vst [vmem:[#allocation2 + $0x18] sm:$0xff] %v6070_v13  ;;  %v6074_v16 = vsel %vm764_vm2, %v766_v5, %v770_v9  ;;  %v4987_v17 = vadd.f32 %v675_v15, %v428_v43  ;;  %v677_v18 = vpop.f32.mrb[6].mxu0  ;;  %v1925_v23 = vld [vmem:[#allocation2 + $0x10] sm:$0xfe]  ;;  %v5313_v5 = vld [vmem:[#allocation7 + $0x2f8] ss:$20 sps:$4 sm:$0xff]  }
 0x17b   : > { %v752_v19 = vmax.f32 %v4986_v14, 0.0  ;;  %v678_v20 = vpop.f32.mrb[7].mxu0  ;;  %v1931_v26 = vpack.c.bf16 %v6066_v10, %v1925_v23  ;;  %v3073_v41 = vld [vmem:[#allocation2 + $0x10] sm:$0xfc]  ;;  %v5330_v14 = vld [vmem:[#allocation7 + $0x354] ss:$20 sps:$4 sm:$0xff]  }
 0x17c   : > { %v753_v21 = vmax.f32 %v4987_v17, 0.0  ;;  %v3079_v49 = vpack.c.bf16 %v6066_v10, %v3073_v41  ;;  %v5325_v15 = vld [vmem:[#allocation7 + $0x348] ss:$20 sps:$4 sm:$0xff]   ;;  %v5328_v17 = vld [vmem:[#allocation7 + $0x350] ss:$20 sps:$4 sm:$0xff]  }
 0x17d   : > { %v774_v22 = vrot.slane %v752_v19, 7  ;;  %v1928_v38 = vld [vmem:[#allocation2 + $0x40] sm:$0x1f]  ;;  %v2108_v43 = vshll.u32 %v1931_v26, 16  ;;  %v2106_v44 = vshrl.u32 %v1931_v26, 16 }
 0x17e   : > { %v776_v24 = vrot.slane %v753_v21, 7  ;;  %v799_v25 = vld [vmem:[#allocation2] sm:$0xff]  ;;  %v6087_v42 = vpack.c.bf16 %v1928_v38, %v1928_v38  ;;  %v3241_v58 = vrot.slane %v3079_v49, 1  ;;  %v5333_v18 = vld [vmem:[#allocation7 + $0x374] ss:$20 sps:$4 sm:$0xff]  }
 0x17f   : > { %v775_v27 = vsel %vm764_vm2, %v768_v8, %v774_v22  ;;  %v800_v28 = vld [vmem:[#allocation2 + $0x8] sm:$0xff]  ;;  %v6083_v34 = vpack.c.bf16 %v6070_v13, %v799_v25  ;;  %v3076_v45 = vld [vmem:[#allocation2 + $0x40] sm:$0x3f]  ;;  %v2110_v48 = vrot.slane %v2108_v43, 1 }
 0x180   : > { %795 = vst [vmem:[#allocation2 + $0x30] sm:$0x1f] %v775_v27  ;;  %v777_v29 = vsel %vm764_vm2, %v770_v9, %v776_v24  ;;  %v6080_v30 = vpack.c.bf16 %v6074_v16, %v800_v28  ;;  %v2113_v52 = vshll.u32 %v6087_v42, 16  ;;  %v3082_v53 = vpack.c.bf16 %v3076_v45, %v3076_v45  ;;  %v5324_v8 = vld [vmem:[#allocation7 + $0x32c] ss:$20 sps:$4 sm:$0xff]  }
 0x181   : > { %796 = vst [vmem:[#allocation2 + $0x38] sm:$0x1f] %v777_v29  ;;  %v2111_v55 = vor.u32 %v2110_v48, %v2106_v44  ;;  %v5319_v9 = vld [vmem:[#allocation7 + $0x320] ss:$20 sps:$4 sm:$0xff]   ;;  %v5336_v19 = vld [vmem:[#allocation7 + $0x37c] ss:$20 sps:$4 sm:$0xff]  }
 0x182   : > { %1614 = vmatprep.mubr.bf16.mxu1 %v6080_v30  ;;  %1716 = vmatprep.mubr.bf16.mxu0 %v6080_v30  ;;  %v6095_v61 = vrot.slane %v2113_v52, 1  ;;  %v6097_v62 = vrot.slane %v3082_v53, 1  ;;  %v5331_v20 = vld [vmem:[#allocation7 + $0x370] ss:$20 sps:$4 sm:$0xff]   ;;  %v5334_v21 = vld [vmem:[#allocation7 + $0x378] ss:$20 sps:$4 sm:$0xff]  }
 0x183   : > { %1615 = vmatmul.mubr.bf16.vlgmr.msra.gmra.mrb[4].mxu1 %v6083_v34  ;;  %1717 = vmatmul.mubr.bf16.vlgmr.msra.gmra.mrb[8].mxu0 %v6083_v34  ;;  %v5339_v22 = vld [vmem:[#allocation7 + $0x39c] ss:$20 sps:$4 sm:$0xff]   ;;  %v5342_v23 = vld [vmem:[#allocation7 + $0x3a4] ss:$20 sps:$4 sm:$0xff]   ;;  %v5340_v25 = vld [vmem:[#allocation7 + $0x3a0] ss:$20 sps:$4 sm:$0xff]  }
 0x184   : > { %1634 = vmatpush1.bf16.msra.mxu1 %v5295_v31  ;;  %1736 = vmatpush1.bf16.msra.mxu0 %v5298_v32  ;;  %v6105_v3 = vsel %vm2080_vm3, %v2111_v55, %v6095_v61  ;;  %v6111_v4 = vsel %vm3234_vm4, %v3241_v58, %v6097_v62  ;;  %v5337_v24 = vld [vmem:[#allocation7 + $0x398] ss:$20 sps:$4 sm:$0xff]   ;;  %v5343_v26 = vld [vmem:[#allocation7 + $0x150] ss:$20 sps:$4 sm:$0xff]   ;;  %v801_v28 = vld [vmem:[#allocation2 + $0x10] sm:$0xff] }
 0x185   : > { %1635 = vmatprep.subr.bf16.mxu1 %v5303_v33  ;;  %1737 = vmatprep.subr.bf16.mxu0 %v5306_v35  ;;  %v5344_v27 = vld [vmem:[#allocation7 + $0x290] ss:$20 sps:$4 sm:$0xff]   ;;  %v810_v31 = vpack.c.bf16 %v6066_v10, %v801_v28  ;;  %v5346_v32 = vld [vmem:[#allocation7 + $0x178] ss:$20 sps:$4 sm:$0xff]   ;;  %v5349_v38 = vld [vmem:[#allocation7 + $0x1a0] ss:$20 sps:$4 sm:$0xff]  }
 0x186   : > { %v5345_v29 = vld [vmem:[#allocation7 + $0x10] ss:$20 sps:$4 sm:$0xff]   ;;  %v5347_v33 = vld [vmem:[#allocation7 + $0x2b8] ss:$20 sps:$4 sm:$0xff]   ;;  %v5350_v41 = vld [vmem:[#allocation7 + $0x2e0] ss:$20 sps:$4 sm:$0xff]  }
 0x187   : > { %v805_v54 = vld [vmem:[#allocation2 + $0x30] sm:$0xf]  ;;  %v5348_v35 = vld [vmem:[#allocation7 + $0x38] ss:$20 sps:$4 sm:$0xff]   ;;  %v5351_v10 = vld [vmem:[#allocation7 + $0x60] ss:$20 sps:$4 sm:$0xff]  }
 0x188   : > { %1636 = vmatpush1.bf16.msra.mxu1 %v5301_v46  ;;  %1738 = vmatpush1.bf16.msra.mxu0 %v5304_v47  ;;  %v806_v56 = vld [vmem:[#allocation2 + $0x38] sm:$0xf]  ;;  %v6099_v63 = vpack.c.bf16 %v805_v54, %v805_v54  ;;  %v807_v43 = vld [vmem:[#allocation2 + $0x40] sm:$0xf]  ;;  %v5352_v45 = vld [vmem:[#allocation7 + $0x1c8] ss:$20 sps:$4 sm:$0xff]  }
 0x189   : > { %v6093_v59 = vpack.c.bf16 %v806_v56, %v806_v56  ;;  %1637 = vmatprep.subr.bf16.mxu1 %v5309_v50  ;;  %1739 = vmatprep.subr.bf16.mxu0 %v5312_v51  ;;  %v813_v44 = vpack.c.bf16 %v807_v43, %v807_v43  ;;  %v5353_v46 = vld [vmem:[#allocation7 + $0x308] ss:$20 sps:$4 sm:$0xff]   ;;  %v5355_v48 = vld [vmem:[#allocation7 + $0x1f0] ss:$20 sps:$4 sm:$0xff]   ;;  %v5358_v51 = vld [vmem:[#allocation7 + $0x218] ss:$20 sps:$4 sm:$0xff]  }
 0x18a   : > { %v5354_v47 = vld [vmem:[#allocation7 + $0x88] ss:$20 sps:$4 sm:$0xff]   ;;  %v5356_v49 = vld [vmem:[#allocation7 + $0x330] ss:$20 sps:$4 sm:$0xff]   ;;  %v5359_v52 = vld [vmem:[#allocation7 + $0x358] ss:$20 sps:$4 sm:$0xff]  }
 0x18b   : > { %1624 = vmatprep.mubr.bf16.mxu1 %v6093_v59  ;;  %1726 = vmatprep.mubr.bf16.mxu0 %v6093_v59  ;;  %v5357_v50 = vld [vmem:[#allocation7 + $0xb0] ss:$20 sps:$4 sm:$0xff]   ;;  %v1924_v53 = vld [vmem:[#allocation2 + $0x8] sm:$0xfe] }
 0x18c   : > { %1625 = vmatmul.mubr.bf16.gmra.mrb[8].mxu1 %v6099_v63  ;;  %1727 = vmatmul.mubr.bf16.gmra.mrb[12].mxu0 %v6099_v63  ;;  %v5360_v54 = vld [vmem:[#allocation7 + $0xd8] ss:$20 sps:$4 sm:$0xff]   ;;  %v5362_v55 = vld [vmem:[#allocation7 + $0x380] ss:$20 sps:$4 sm:$0xff]   ;;  %v1927_v56 = vld [vmem:[#allocation2 + $0x38] sm:$0x1f] }
 0x18d   : > { %1638 = vmatpush1.bf16.msra.mxu1 %v5307_v57  ;;  %1740 = vmatpush1.bf16.msra.mxu0 %v5310_v60  ;;  %v1930_v57 = vpack.c.bf16 %v6074_v16, %v1924_v53  ;;  %v5363_v58 = vld [vmem:[#allocation7 + $0x100] ss:$20 sps:$4 sm:$0xff]   ;;  %v5364_v60 = vld [vmem:[#allocation7 + $0x268] ss:$20 sps:$4 sm:$0xff]   ;;  %v5385_v28 = vld [vmem:[#allocation7 + $0x438] ss:$20 sps:$4 sm:$0xff]  }
 0x18e   : > { %1639 = vmatprep.subr.bf16.mxu1 %v5315_v1  ;;  %1741 = vmatprep.subr.bf16.mxu0 %v5318_v2  ;;  %v6120_v1 = vpack.c.bf16 %v1927_v56, %v1927_v56  ;;  %v5365_v2 = vld [vmem:[#allocation7 + $0x3a8] ss:$20 sps:$4 sm:$0xff]   ;;  %v5400_v43 = vld [vmem:[#allocation7 + $0x490] ss:$20 sps:$4 sm:$0xff]   ;;  %v5415_v53 = vld [vmem:[#allocation7 + $0x500] ss:$20 sps:$4 sm:$0xff]  }
 0x18f   : > { %1665 = vmatprep.mubr.bf16.mxu1 %v5844_v0  ;;  %1767 = vmatprep.mubr.bf16.mxu0 %v5844_v0  ;;  %v5421_v56 = vld [vmem:[#allocation7 + $0x528] ss:$20 sps:$4 sm:$0xff]  }
 0x191   : > { %1640 = vmatpush1.bf16.msra.mxu1 %v5313_v5  ;;  %1742 = vmatpush1.bf16.msra.mxu0 %v5316_v6  ;;  %v2096_v5 = vshll.u32 %v1930_v57, 16  ;;  %v5366_v6 = vld [vmem:[#allocation7 + $0x128] ss:$20 sps:$4 sm:$0xff]  }
 0x192   : > { %1641 = vmatprep.subr.bf16.mxu1 %v5321_v7  ;;  %1743 = vmatprep.subr.bf16.mxu0 %v5324_v8  ;;  %v5369_v7 = vld [vmem:[#allocation7 + $0x3c4] ss:$20 sps:$4 sm:$0xff]   ;;  %v2101_v8 = vshll.u32 %v6120_v1, 16 }
 0x195   : > { %1642 = vmatpush1.bf16.msra.mxu1 %v5319_v9  ;;  %1744 = vmatpush1.bf16.msra.mxu0 %v5322_v11  ;;  %v5372_v9 = vld [vmem:[#allocation7 + $0x3cc] ss:$20 sps:$4 sm:$0xff]   ;;  %v2098_v11 = vrot.slane %v2096_v5, 1 }
 0x196   : > { %1643 = vmatprep.subr.bf16.mxu1 %v5327_v12  ;;  %1745 = vmatprep.subr.bf16.mxu0 %v5330_v14  ;;  %v5367_v12 = vld [vmem:[#allocation7 + $0x3c0] ss:$20 sps:$4 sm:$0xff]   ;;  %v5370_v14 = vld [vmem:[#allocation7 + $0x3c8] ss:$20 sps:$4 sm:$0xff]   ;;  %v5430_v5 = vld [vmem:[#allocation7 + $0x558] ss:$20 sps:$4 sm:$0xff]  }
 0x199   : > { %1644 = vmatpush1.bf16.msra.mxu1 %v5325_v15  ;;  %1746 = vmatpush1.bf16.msra.mxu0 %v5328_v17  ;;  %v2094_v15 = vshrl.u32 %v1930_v57, 16  ;;  %v6123_v17 = vrot.slane %v2101_v8, 1  ;;  %v5424_v57 = vld [vmem:[#allocation7 + $0x530] ss:$20 sps:$4 sm:$0xff]   ;;  %v5433_v8 = vld [vmem:[#allocation7 + $0x578] ss:$20 sps:$4 sm:$0xff]  }
 0x19a   : > { %1645 = vmatprep.subr.bf16.mxu1 %v5333_v18  ;;  %1747 = vmatprep.subr.bf16.mxu0 %v5336_v19  ;;  %v5375_v18 = vld [vmem:[#allocation7 + $0x3ec] ss:$20 sps:$4 sm:$0xff]  }
 0x19b   : > { %v2099_v19 = vor.u32 %v2098_v11, %v2094_v15  ;;  %v5441_v11 = vld [vmem:[#allocation7 + $0x5a4] ss:$20 sps:$4 sm:$0xff]   ;;  %v5442_v15 = vld [vmem:[#allocation7 + $0x5a8] ss:$20 sps:$4 sm:$0xff]  }
 0x19d   : > { %1646 = vmatpush1.bf16.msra.mxu1 %v5331_v20  ;;  %1748 = vmatpush1.bf16.msra.mxu0 %v5334_v21  ;;  %v5378_v20 = vld [vmem:[#allocation7 + $0x3f4] ss:$20 sps:$4 sm:$0xff]   ;;  %v6129_v21 = vsel %vm2080_vm3, %v2099_v19, %v6123_v17  ;;  %v5447_v19 = vld [vmem:[#allocation7 + $0x5cc] ss:$20 sps:$4 sm:$0xff]  }
 0x19e   : > { %1647 = vmatprep.subr.bf16.mxu1 %v5339_v22  ;;  %1749 = vmatprep.subr.bf16.mxu0 %v5342_v23  ;;  %v5373_v22 = vld [vmem:[#allocation7 + $0x3e8] ss:$20 sps:$4 sm:$0xff]   ;;  %v5376_v23 = vld [vmem:[#allocation7 + $0x3f0] ss:$20 sps:$4 sm:$0xff]  }
 0x1a1   : > { %1648 = vmatpush1.bf16.msra.mxu1 %v5337_v24  ;;  %1750 = vmatpush1.bf16.msra.mxu0 %v5340_v25  ;;  %v5381_v24 = vld [vmem:[#allocation7 + $0x414] ss:$20 sps:$4 sm:$0xff]   ;;  %v5384_v25 = vld [vmem:[#allocation7 + $0x41c] ss:$20 sps:$4 sm:$0xff]  }
 0x1a2   : > { %4790 = vmatprep.subr.bf16.mxu1 %v5343_v26  ;;  %4922 = vmatprep.subr.bf16.mxu0 %v5344_v27  ;;  %v5382_v26 = vld [vmem:[#allocation7 + $0x418] ss:$20 sps:$4 sm:$0xff]  }
 0x1a4   : > { %1666 = vmatmul.mubr.bf16.vlgmr.msra.gmra.mrb[4].mxu1 %v810_v31  ;;  %1768 = vmatmul.mubr.bf16.vlgmr.msra.gmra.mrb[8].mxu0 %v810_v31 }
 0x1a5   : > { %4791 = vmatpush3.bf16.msra.mxu1 %v5345_v29  ;;  %4923 = vmatpush3.bf16.msra.mxu0 %v5344_v27  ;;  %v5390_v27 = vld [vmem:[#allocation7 + $0x444] ss:$20 sps:$4 sm:$0xff]   ;;  %v5388_v29 = vld [vmem:[#allocation7 + $0x440] ss:$20 sps:$4 sm:$0xff]  }
 0x1a6   : > { %4792 = vmatprep.subr.bf16.mxu1 %v5346_v32  ;;  %4924 = vmatprep.subr.bf16.mxu0 %v5347_v33  ;;  %v5396_v32 = vld [vmem:[#allocation7 + $0x46c] ss:$20 sps:$4 sm:$0xff]  }
 0x1a7   : > { %1675 = vmatprep.mubr.bf16.mxu1 %v5844_v0  ;;  %1777 = vmatprep.mubr.bf16.mxu0 %v5844_v0 }
 0x1a9   : > { %4793 = vmatpush3.bf16.msra.mxu1 %v5348_v35  ;;  %4925 = vmatpush3.bf16.msra.mxu0 %v5347_v33  ;;  %v5391_v33 = vld [vmem:[#allocation7 + $0x460] ss:$20 sps:$4 sm:$0xff]   ;;  %v5394_v35 = vld [vmem:[#allocation7 + $0x468] ss:$20 sps:$4 sm:$0xff]  }
 0x1aa   : > { %4794 = vmatprep.subr.bf16.mxu1 %v5349_v38  ;;  %4926 = vmatprep.subr.bf16.mxu0 %v5350_v41  ;;  %v5399_v38 = vld [vmem:[#allocation7 + $0x48c] ss:$20 sps:$4 sm:$0xff]  }
 0x1ac   : > { %1676 = vmatmul.mubr.bf16.gmra.mrb[8].mxu1 %v813_v44  ;;  %1778 = vmatmul.mubr.bf16.gmra.mrb[12].mxu0 %v813_v44 }
 0x1ad   : > { %4795 = vmatpush3.bf16.msra.mxu1 %v5351_v10  ;;  %1818 = vmatprep.mubr.bf16.mxu1 %v6080_v30  ;;  %v5361_v30 = vld [vmem:[#allocation7 + $0x240] ss:$20 sps:$4 sm:$0xff]  }
 0x1ae   : > { %4927 = vmatpush3.bf16.msra.mxu0 %v5350_v41  ;;  %4938 = vmatprep.mubr.bf16.mxu0 %v810_v31  ;;  %v5393_v31 = vld [vmem:[#allocation7 + $0x464] ss:$20 sps:$4 sm:$0xff]   ;;  %v5402_v41 = vld [vmem:[#allocation7 + $0x494] ss:$20 sps:$4 sm:$0xff]  }
 0x1af   : > { %4796 = vmatprep.subr.bf16.mxu1 %v5352_v45  ;;  %4928 = vmatprep.subr.bf16.mxu0 %v5353_v46  ;;  %v5405_v10 = vld [vmem:[#allocation7 + $0x4b4] ss:$20 sps:$4 sm:$0xff]   ;;  %v5403_v45 = vld [vmem:[#allocation7 + $0x4b0] ss:$20 sps:$4 sm:$0xff]  }
 0x1b1   : > { %4797 = vmatpush3.bf16.msra.mxu1 %v5354_v47  ;;  %v5411_v47 = vld [vmem:[#allocation7 + $0x4dc] ss:$20 sps:$4 sm:$0xff]  }
 0x1b2   : > { %4929 = vmatpush3.bf16.msra.mxu0 %v5353_v46  ;;  %4798 = vmatprep.subr.bf16.mxu1 %v5355_v48  ;;  %v5406_v46 = vld [vmem:[#allocation7 + $0x4b8] ss:$20 sps:$4 sm:$0xff]  }
 0x1b3   : > { %4930 = vmatprep.subr.bf16.mxu0 %v5356_v49  ;;  %v5414_v48 = vld [vmem:[#allocation7 + $0x4e4] ss:$20 sps:$4 sm:$0xff]  }
 0x1b5   : > { %4799 = vmatpush3.bf16.msra.mxu1 %v5357_v50  ;;  %v5412_v50 = vld [vmem:[#allocation7 + $0x4e0] ss:$20 sps:$4 sm:$0xff]  }
 0x1b6   : > { %4931 = vmatpush3.bf16.msra.mxu0 %v5356_v49  ;;  %4800 = vmatprep.subr.bf16.mxu1 %v5358_v51  ;;  %v5409_v49 = vld [vmem:[#allocation7 + $0x4d8] ss:$20 sps:$4 sm:$0xff]  }
 0x1b7   : > { %4932 = vmatprep.subr.bf16.mxu0 %v5359_v52  ;;  %v5417_v51 = vld [vmem:[#allocation7 + $0x504] ss:$20 sps:$4 sm:$0xff]  }
 0x1b9   : > { %4801 = vmatpush3.bf16.msra.mxu1 %v5360_v54  ;;  %v5418_v54 = vld [vmem:[#allocation7 + $0x508] ss:$20 sps:$4 sm:$0xff]  }
 0x1ba   : > { %4933 = vmatpush3.bf16.msra.mxu0 %v5359_v52  ;;  %4802 = vmatprep.subr.bf16.mxu1 %v5361_v30  ;;  %v5420_v52 = vld [vmem:[#allocation7 + $0x50c] ss:$20 sps:$4 sm:$0xff]  }
 0x1bb   : > { %4934 = vmatprep.subr.bf16.mxu0 %v5362_v55  ;;  %v5423_v30 = vld [vmem:[#allocation7 + $0x52c] ss:$20 sps:$4 sm:$0xff]  }
 0x1bd   : > { %4803 = vmatpush3.bf16.msra.mxu1 %v5363_v58  ;;  %v5429_v58 = vld [vmem:[#allocation7 + $0x554] ss:$20 sps:$4 sm:$0xff]  }
 0x1be   : > { %4935 = vmatpush3.bf16.msra.mxu0 %v5362_v55  ;;  %4804 = vmatprep.subr.bf16.mxu1 %v5364_v60  ;;  %v5426_v55 = vld [vmem:[#allocation7 + $0x534] ss:$20 sps:$4 sm:$0xff]   ;;  %v5432_v60 = vld [vmem:[#allocation7 + $0x55c] ss:$20 sps:$4 sm:$0xff]  }
 0x1bf   : > { %4936 = vmatprep.subr.bf16.mxu0 %v5365_v2 }
 0x1c1   : > { %4805 = vmatpush3.bf16.msra.mxu1 %v5366_v6  ;;  %v5435_v6 = vld [vmem:[#allocation7 + $0x57c] ss:$20 sps:$4 sm:$0xff]  }
 0x1c2   : > { %4937 = vmatpush3.bf16.msra.mxu0 %v5365_v2  ;;  %2756 = vmatprep.subr.bf16.mxu1 %v5369_v7  ;;  %v5427_v2 = vld [vmem:[#allocation7 + $0x550] ss:$20 sps:$4 sm:$0xff]  }
 0x1c3   : > { %2858 = vmatprep.subr.bf16.mxu0 %v5372_v9  ;;  %v5438_v7 = vld [vmem:[#allocation7 + $0x584] ss:$20 sps:$4 sm:$0xff]   ;;  %v5436_v9 = vld [vmem:[#allocation7 + $0x580] ss:$20 sps:$4 sm:$0xff]  }
 0x1c4   : > { %1819 = vmatmul.mubr.bf16.vlgmr.msra.gmra.mrb[12].mxu1 %v6083_v34  ;;  %v5379_v34 = vld [vmem:[#allocation7 + $0x410] ss:$20 sps:$4 sm:$0xff]  }
 0x1c5   : > { %4939 = vmatmul.mubr.bf16.vlgmr.msra.gmra.mrb[16].mxu0 %v813_v44  ;;  %1826 = vmatprep.mubr.bf16.mxu1 %v6093_v59  ;;  %v5387_v59 = vld [vmem:[#allocation7 + $0x43c] ss:$20 sps:$4 sm:$0xff]  }
 0x1c6   : > { %2757 = vmatpush1.bf16.msra.mxu1 %v5367_v12  ;;  %2859 = vmatpush1.bf16.msra.mxu0 %v5370_v14  ;;  %v5408_v44 = vld [vmem:[#allocation7 + $0x4bc] ss:$20 sps:$4 sm:$0xff]   ;;  %v5444_v12 = vld [vmem:[#allocation7 + $0x5ac] ss:$20 sps:$4 sm:$0xff]  }
 0x1c7   : > { %2890 = vmatprep.mubr.bf16.mxu0 %v6129_v21  ;;  %2758 = vmatprep.subr.bf16.mxu1 %v5375_v18  ;;  %v5439_v14 = vld [vmem:[#allocation7 + $0x5a0] ss:$20 sps:$4 sm:$0xff]   ;;  %v1923_v18 = vld [vmem:[#allocation2] sm:$0xfe] }
 0x1c8   : > { %2860 = vmatprep.subr.bf16.mxu0 %v5378_v20  ;;  %v5450_v20 = vld [vmem:[#allocation7 + $0x5d4] ss:$20 sps:$4 sm:$0xff]  }
 0x1ca   : > { %2759 = vmatpush1.bf16.msra.mxu1 %v5373_v22  ;;  %2861 = vmatpush1.bf16.msra.mxu0 %v5376_v23  ;;  %v1926_v22 = vld [vmem:[#allocation2 + $0x30] sm:$0x1f]  ;;  %v1929_v23 = vpack.c.bf16 %v6070_v13, %v1923_v18  ;;  %v5457_v13 = vld [vmem:[#allocation7 + $0x618] ss:$20 sps:$4 sm:$0xff]  }
 0x1cb   : > { %2760 = vmatprep.subr.bf16.mxu1 %v5381_v24  ;;  %2862 = vmatprep.subr.bf16.mxu0 %v5384_v25  ;;  %v5445_v24 = vld [vmem:[#allocation7 + $0x5c8] ss:$20 sps:$4 sm:$0xff]   ;;  %v5448_v25 = vld [vmem:[#allocation7 + $0x5d0] ss:$20 sps:$4 sm:$0xff]  }
 0x1cc   : > { %1827 = vmatmul.mubr.bf16.gmra.mrb[16].mxu1 %v6099_v63  ;;  %v5397_v63 = vld [vmem:[#allocation7 + $0x488] ss:$20 sps:$4 sm:$0xff]  }
 0x1cd   : > { %2788 = vmatprep.mubr.bf16.mxu1 %v6129_v21  ;;  %v5504_v18 = vld [vmem:[#allocation7 + $0x73c] ss:$20 sps:$4 sm:$0xff]  }
 0x1ce   : > { %2761 = vmatpush1.bf16.msra.mxu1 %v5379_v34  ;;  %2863 = vmatpush1.bf16.msra.mxu0 %v5382_v26  ;;  %v5453_v34 = vld [vmem:[#allocation7 + $0x5f4] ss:$20 sps:$4 sm:$0xff]   ;;  %v5456_v26 = vld [vmem:[#allocation7 + $0x5fc] ss:$20 sps:$4 sm:$0xff]  }
 0x1cf   : > { %2762 = vmatprep.subr.bf16.mxu1 %v5387_v59  ;;  %2864 = vmatprep.subr.bf16.mxu0 %v5390_v27  ;;  %v1932_v59 = vpack.c.bf16 %v1926_v22, %v1926_v22  ;;  %v5451_v27 = vld [vmem:[#allocation7 + $0x5f0] ss:$20 sps:$4 sm:$0xff]  }
 0x1d0   : > { %v5507_v22 = vld [vmem:[#allocation7 + $0x75c] ss:$20 sps:$4 sm:$0xff]  }
 0x1d2   : > { %2763 = vmatpush1.bf16.msra.mxu1 %v5385_v28  ;;  %2865 = vmatpush1.bf16.msra.mxu0 %v5388_v29  ;;  %v5454_v28 = vld [vmem:[#allocation7 + $0x5f8] ss:$20 sps:$4 sm:$0xff]   ;;  %v2084_v29 = vshll.u32 %v1929_v23, 16 }
 0x1d3   : > { %2764 = vmatprep.subr.bf16.mxu1 %v5393_v31  ;;  %2866 = vmatprep.subr.bf16.mxu0 %v5396_v32  ;;  %v5459_v31 = vld [vmem:[#allocation7 + $0x61c] ss:$20 sps:$4 sm:$0xff]   ;;  %v5462_v32 = vld [vmem:[#allocation7 + $0x624] ss:$20 sps:$4 sm:$0xff]  }
 0x1d6   : > { %2765 = vmatpush1.bf16.msra.mxu1 %v5391_v33  ;;  %2867 = vmatpush1.bf16.msra.mxu0 %v5394_v35  ;;  %v2089_v33 = vshll.u32 %v1932_v59, 16  ;;  %v5460_v35 = vld [vmem:[#allocation7 + $0x620] ss:$20 sps:$4 sm:$0xff]  }
 0x1d7   : > { %2766 = vmatprep.subr.bf16.mxu1 %v5399_v38  ;;  %2868 = vmatprep.subr.bf16.mxu0 %v5402_v41  ;;  %v2086_v38 = vrot.slane %v2084_v29, 1  ;;  %v5465_v41 = vld [vmem:[#allocation7 + $0x644] ss:$20 sps:$4 sm:$0xff]  }
 0x1d8   : > { %v5516_v29 = vld [vmem:[#allocation7 + $0x3f8] ss:$20 sps:$4 sm:$0xff]  }
 0x1da   : > { %2767 = vmatpush1.bf16.msra.mxu1 %v5397_v63  ;;  %2869 = vmatpush1.bf16.msra.mxu0 %v5400_v43  ;;  %v5468_v63 = vld [vmem:[#allocation7 + $0x64c] ss:$20 sps:$4 sm:$0xff]   ;;  %v2082_v43 = vshrl.u32 %v1929_v23, 16  ;;  %v5510_v23 = vld [vmem:[#allocation7 + $0x764] ss:$20 sps:$4 sm:$0xff]  }
 0x1db   : > { %2768 = vmatprep.subr.bf16.mxu1 %v5405_v10  ;;  %2870 = vmatprep.subr.bf16.mxu0 %v5408_v44  ;;  %v2091_v10 = vrot.slane %v2089_v33, 1  ;;  %v5518_v33 = vld [vmem:[#allocation7 + $0x6a0] ss:$20 sps:$4 sm:$0xff]  }
 0x1dc   : > { %v2087_v44 = vor.u32 %v2086_v38, %v2082_v43  ;;  %v5520_v38 = vld [vmem:[#allocation7 + $0x588] ss:$20 sps:$4 sm:$0xff]   ;;  %v5524_v43 = vld [vmem:[#allocation7 + $0x6f0] ss:$20 sps:$4 sm:$0xff]  }
 0x1de   : > { %2769 = vmatpush1.bf16.msra.mxu1 %v5403_v45  ;;  %2871 = vmatpush1.bf16.msra.mxu0 %v5406_v46  ;;  %v5463_v45 = vld [vmem:[#allocation7 + $0x640] ss:$20 sps:$4 sm:$0xff]   ;;  %v2120_v46 = vshrl.u32 %v6120_v1, 16  ;;  %v5472_v1 = vld [vmem:[#allocation7 + $0x670] ss:$20 sps:$4 sm:$0xff]  }
 0x1df   : > { %2770 = vmatprep.subr.bf16.mxu1 %v5411_v47  ;;  %2872 = vmatprep.subr.bf16.mxu0 %v5414_v48  ;;  %v5466_v47 = vld [vmem:[#allocation7 + $0x648] ss:$20 sps:$4 sm:$0xff]   ;;  %v6137_v48 = vsel %vm2080_vm3, %v2087_v44, %v2091_v10  ;;  %v5527_v44 = vld [vmem:[#allocation7 + $0x718] ss:$20 sps:$4 sm:$0xff]  }
 0x1e2   : > { %2771 = vmatpush1.bf16.msra.mxu1 %v5409_v49  ;;  %2873 = vmatpush1.bf16.msra.mxu0 %v5412_v50  ;;  %v6140_v49 = vor.u32 %v2120_v46, %v6123_v17  ;;  %v5471_v50 = vld [vmem:[#allocation7 + $0x66c] ss:$20 sps:$4 sm:$0xff]   ;;  %v2117_v17 = vshrl.u32 %v1932_v59, 16  ;;  %v5513_v59 = vld [vmem:[#allocation7 + $0x3d0] ss:$20 sps:$4 sm:$0xff]  }
 0x1e3   : > { %2772 = vmatprep.subr.bf16.mxu1 %v5417_v51  ;;  %2874 = vmatprep.subr.bf16.mxu0 %v5420_v52  ;;  %v5474_v51 = vld [vmem:[#allocation7 + $0x674] ss:$20 sps:$4 sm:$0xff]  }
 0x1e4   : > { %v5469_v52 = vld [vmem:[#allocation7 + $0x668] ss:$20 sps:$4 sm:$0xff]   ;;  %v5529_v46 = vld [vmem:[#allocation7 + $0x600] ss:$20 sps:$4 sm:$0xff]  }
 0x1e6   : > { %2773 = vmatpush1.bf16.msra.mxu1 %v5415_v53  ;;  %2875 = vmatpush1.bf16.msra.mxu0 %v5418_v54  ;;  %v5477_v53 = vld [vmem:[#allocation7 + $0x694] ss:$20 sps:$4 sm:$0xff]   ;;  %v5480_v54 = vld [vmem:[#allocation7 + $0x69c] ss:$20 sps:$4 sm:$0xff]  }
 0x1e7   : > { %2774 = vmatprep.subr.bf16.mxu1 %v5423_v30  ;;  %2876 = vmatprep.subr.bf16.mxu0 %v5426_v55  ;;  %v5475_v30 = vld [vmem:[#allocation7 + $0x690] ss:$20 sps:$4 sm:$0xff]   ;;  %v6146_v55 = vor.u32 %v2117_v17, %v2091_v10  ;;  %v5540_v17 = vld [vmem:[#allocation7 + $0x78c] ss:$20 sps:$4 sm:$0xff]  }
 0x1e8   : > { %v5525_v10 = vld [vmem:[#allocation7 + $0x470] ss:$20 sps:$4 sm:$0xff]  }
 0x1ea   : > { %2775 = vmatpush1.bf16.msra.mxu1 %v5421_v56  ;;  %2877 = vmatpush1.bf16.msra.mxu0 %v5424_v57  ;;  %v5478_v56 = vld [vmem:[#allocation7 + $0x698] ss:$20 sps:$4 sm:$0xff]   ;;  %v5483_v57 = vld [vmem:[#allocation7 + $0x6bc] ss:$20 sps:$4 sm:$0xff]  }
 0x1eb   : > { %2776 = vmatprep.subr.bf16.mxu1 %v5429_v58  ;;  %2878 = vmatprep.subr.bf16.mxu0 %v5432_v60  ;;  %v5486_v58 = vld [vmem:[#allocation7 + $0x6c4] ss:$20 sps:$4 sm:$0xff]  }
 0x1ec   : > { %v5481_v60 = vld [vmem:[#allocation7 + $0x6b8] ss:$20 sps:$4 sm:$0xff]  }
 0x1ee   : > { %2777 = vmatpush1.bf16.msra.mxu1 %v5427_v2  ;;  %2879 = vmatpush1.bf16.msra.mxu0 %v5430_v5  ;;  %v5484_v2 = vld [vmem:[#allocation7 + $0x6c0] ss:$20 sps:$4 sm:$0xff]   ;;  %v5489_v5 = vld [vmem:[#allocation7 + $0x6e4] ss:$20 sps:$4 sm:$0xff]  }
 0x1ef   : > { %2778 = vmatprep.subr.bf16.mxu1 %v5435_v6  ;;  %2880 = vmatprep.subr.bf16.mxu0 %v5438_v7  ;;  %v5492_v6 = vld [vmem:[#allocation7 + $0x6ec] ss:$20 sps:$4 sm:$0xff]  }
 0x1f0   : > { %v5487_v7 = vld [vmem:[#allocation7 + $0x6e0] ss:$20 sps:$4 sm:$0xff]  }
 0x1f2   : > { %2779 = vmatpush1.bf16.msra.mxu1 %v5433_v8  ;;  %2881 = vmatpush1.bf16.msra.mxu0 %v5436_v9  ;;  %v5490_v8 = vld [vmem:[#allocation7 + $0x6e8] ss:$20 sps:$4 sm:$0xff]   ;;  %v5495_v9 = vld [vmem:[#allocation7 + $0x70c] ss:$20 sps:$4 sm:$0xff]  }
 0x1f3   : > { %2780 = vmatprep.subr.bf16.mxu1 %v5441_v11  ;;  %2882 = vmatprep.subr.bf16.mxu0 %v5444_v12  ;;  %v5498_v11 = vld [vmem:[#allocation7 + $0x714] ss:$20 sps:$4 sm:$0xff]  }
 0x1f4   : > { %v5493_v12 = vld [vmem:[#allocation7 + $0x708] ss:$20 sps:$4 sm:$0xff]  }
 0x1f6   : > { %2781 = vmatpush1.bf16.msra.mxu1 %v5439_v14  ;;  %2883 = vmatpush1.bf16.msra.mxu0 %v5442_v15  ;;  %v5496_v14 = vld [vmem:[#allocation7 + $0x710] ss:$20 sps:$4 sm:$0xff]   ;;  %v5501_v15 = vld [vmem:[#allocation7 + $0x734] ss:$20 sps:$4 sm:$0xff]  }
 0x1f7   : > { %2782 = vmatprep.subr.bf16.mxu1 %v5447_v19  ;;  %2884 = vmatprep.subr.bf16.mxu0 %v5450_v20  ;;  %v5499_v19 = vld [vmem:[#allocation7 + $0x730] ss:$20 sps:$4 sm:$0xff]   ;;  %v5502_v20 = vld [vmem:[#allocation7 + $0x738] ss:$20 sps:$4 sm:$0xff]  }
 0x1fa   : > { %2783 = vmatpush1.bf16.msra.mxu1 %v5445_v24  ;;  %2885 = vmatpush1.bf16.msra.mxu0 %v5448_v25  ;;  %v5505_v24 = vld [vmem:[#allocation7 + $0x758] ss:$20 sps:$4 sm:$0xff]   ;;  %v5508_v25 = vld [vmem:[#allocation7 + $0x760] ss:$20 sps:$4 sm:$0xff]  }
 0x1fb   : > { %2784 = vmatprep.subr.bf16.mxu1 %v5453_v34  ;;  %2886 = vmatprep.subr.bf16.mxu0 %v5456_v26  ;;  %v5511_v34 = vld [vmem:[#allocation7 + $0x510] ss:$20 sps:$4 sm:$0xff]  }
 0x1fc   : > { %v5512_v26 = vld [vmem:[#allocation7 + $0x650] ss:$20 sps:$4 sm:$0xff]  }
 0x1fe   : > { %2785 = vmatpush1.bf16.msra.mxu1 %v5451_v27  ;;  %2887 = vmatpush1.bf16.msra.mxu0 %v5454_v28  ;;  %v5514_v27 = vld [vmem:[#allocation7 + $0x538] ss:$20 sps:$4 sm:$0xff]  }
 0x1ff   : > { %2786 = vmatprep.subr.bf16.mxu1 %v5459_v31  ;;  %2888 = vmatprep.subr.bf16.mxu0 %v5462_v32  ;;  %v5515_v28 = vld [vmem:[#allocation7 + $0x678] ss:$20 sps:$4 sm:$0xff]   ;;  %v2123_v31 = vshrl.u32 %v6087_v42, 16  ;;  %v5517_v32 = vld [vmem:[#allocation7 + $0x560] ss:$20 sps:$4 sm:$0xff]  }
 0x200   : > { %v5522_v42 = vld [vmem:[#allocation7 + $0x448] ss:$20 sps:$4 sm:$0xff]  }
 0x202   : > { %2787 = vmatpush1.bf16.msra.mxu1 %v5457_v13  ;;  %2889 = vmatpush1.bf16.msra.mxu0 %v5460_v35  ;;  %v5519_v13 = vld [vmem:[#allocation7 + $0x420] ss:$20 sps:$4 sm:$0xff]   ;;  %v2125_v35 = vor.u32 %v2123_v31, %v6095_v61  ;;  %v5526_v61 = vld [vmem:[#allocation7 + $0x5d8] ss:$20 sps:$4 sm:$0xff]  }
 0x203   : > { %2807 = vmatprep.subr.bf16.mxu1 %v5465_v41  ;;  %2909 = vmatprep.subr.bf16.mxu0 %v5468_v63  ;;  %v5521_v41 = vld [vmem:[#allocation7 + $0x6c8] ss:$20 sps:$4 sm:$0xff]   ;;  %v5523_v63 = vld [vmem:[#allocation7 + $0x5b0] ss:$20 sps:$4 sm:$0xff]   ;;  %v5577_v31 = vld [vmem:[#allocation7 + $0x898] ss:$20 sps:$4 sm:$0xff]  }
 0x205   : > { %2789 = vmatmul.mubr.bf16.vlgmr.msra.gmra.mrb[4].mxu1 %v6137_v48  ;;  %2891 = vmatmul.mubr.bf16.vlgmr.msra.gmra.mrb[8].mxu0 %v6137_v48 }
 0x206   : > { %2798 = vmatprep.mubr.bf16.mxu1 %v6140_v49  ;;  %2808 = vmatpush1.bf16.msra.mxu1 %v5463_v45  ;;  %v5528_v45 = vld [vmem:[#allocation7 + $0x498] ss:$20 sps:$4 sm:$0xff]  }
 0x207   : > { %2900 = vmatprep.mubr.bf16.mxu0 %v6140_v49  ;;  %2910 = vmatpush1.bf16.msra.mxu0 %v5466_v47  ;;  %v5531_v47 = vld [vmem:[#allocation7 + $0x4c0] ss:$20 sps:$4 sm:$0xff]  }
 0x208   : > { %2809 = vmatprep.subr.bf16.mxu1 %v5471_v50  ;;  %2911 = vmatprep.subr.bf16.mxu0 %v5474_v51  ;;  %v5533_v50 = vld [vmem:[#allocation7 + $0x768] ss:$20 sps:$4 sm:$0xff]  }
 0x209   : > { %v3075_v51 = vld [vmem:[#allocation2 + $0x38] sm:$0x3f] }
 0x20a   : > { %2810 = vmatpush1.bf16.msra.mxu1 %v5469_v52  ;;  %v5534_v52 = vld [vmem:[#allocation7 + $0x4e8] ss:$20 sps:$4 sm:$0xff]  }
 0x20b   : > { %2912 = vmatpush1.bf16.msra.mxu0 %v5472_v1  ;;  %2811 = vmatprep.subr.bf16.mxu1 %v5477_v53  ;;  %v3072_v1 = vld [vmem:[#allocation2 + $0x8] sm:$0xfc] }
 0x20c   : > { %2913 = vmatprep.subr.bf16.mxu0 %v5480_v54  ;;  %v5537_v53 = vld [vmem:[#allocation7 + $0x784] ss:$20 sps:$4 sm:$0xff]   ;;  %v3081_v54 = vpack.c.bf16 %v3075_v51, %v3075_v51  ;;  %v5612_v51 = vld [vmem:[#allocation7 + $0x96c] ss:$20 sps:$4 sm:$0xff]  }
 0x20d   : > { %2799 = vmatmul.mubr.bf16.gmra.mrb[8].mxu1 %v6146_v55  ;;  %2901 = vmatmul.mubr.bf16.gmra.mrb[12].mxu0 %v6146_v55 }
 0x20e   : > { %2812 = vmatpush1.bf16.msra.mxu1 %v5475_v30  ;;  %2839 = vmatprep.mubr.bf16.mxu1 %v5844_v0  ;;  %v3078_v30 = vpack.c.bf16 %v6074_v16, %v3072_v1  ;;  %v5610_v1 = vld [vmem:[#allocation7 + $0x968] ss:$20 sps:$4 sm:$0xff]  }
 0x20f   : > { %2914 = vmatpush1.bf16.msra.mxu0 %v5478_v56  ;;  %2813 = vmatprep.subr.bf16.mxu1 %v5483_v57  ;;  %v5535_v56 = vld [vmem:[#allocation7 + $0x780] ss:$20 sps:$4 sm:$0xff]   ;;  %v5538_v57 = vld [vmem:[#allocation7 + $0x788] ss:$20 sps:$4 sm:$0xff]  }
 0x210   : > { %2915 = vmatprep.subr.bf16.mxu0 %v5486_v58  ;;  %2941 = vmatprep.mubr.bf16.mxu0 %v5844_v0  ;;  %v6161_v58 = vrot.slane %v3081_v54, 1  ;;  %v5618_v54 = vld [vmem:[#allocation7 + $0x994] ss:$20 sps:$4 sm:$0xff]  }
 0x212   : > { %2814 = vmatpush1.bf16.msra.mxu1 %v5481_v60  ;;  %v5543_v60 = vld [vmem:[#allocation7 + $0x7ac] ss:$20 sps:$4 sm:$0xff]  }
 0x213   : > { %2916 = vmatpush1.bf16.msra.mxu0 %v5484_v2  ;;  %2815 = vmatprep.subr.bf16.mxu1 %v5489_v5  ;;  %v3238_v2 = vrot.slane %v3078_v30, 1  ;;  %v5546_v5 = vld [vmem:[#allocation7 + $0x7b4] ss:$20 sps:$4 sm:$0xff]   ;;  %v5616_v30 = vld [vmem:[#allocation7 + $0x990] ss:$20 sps:$4 sm:$0xff]  }
 0x214   : > { %2917 = vmatprep.subr.bf16.mxu0 %v5492_v6  ;;  %v5541_v6 = vld [vmem:[#allocation7 + $0x7a8] ss:$20 sps:$4 sm:$0xff]  }
 0x215   : > { %v6167_v16 = vsel %vm3234_vm4, %v3238_v2, %v6161_v58  ;;  %v5619_v2 = vld [vmem:[#allocation7 + $0x9b0] ss:$20 sps:$4 sm:$0xff]  }
 0x216   : > { %2816 = vmatpush1.bf16.msra.mxu1 %v5487_v7  ;;  %v5544_v7 = vld [vmem:[#allocation7 + $0x7b0] ss:$20 sps:$4 sm:$0xff]  }
 0x217   : > { %2918 = vmatpush1.bf16.msra.mxu0 %v5490_v8  ;;  %2817 = vmatprep.subr.bf16.mxu1 %v5495_v9  ;;  %v5549_v8 = vld [vmem:[#allocation7 + $0x7d4] ss:$20 sps:$4 sm:$0xff]   ;;  %v5552_v9 = vld [vmem:[#allocation7 + $0x7dc] ss:$20 sps:$4 sm:$0xff]  }
 0x218   : > { %2919 = vmatprep.subr.bf16.mxu0 %v5498_v11  ;;  %v5550_v11 = vld [vmem:[#allocation7 + $0x7d8] ss:$20 sps:$4 sm:$0xff]  }
 0x21a   : > { %2818 = vmatpush1.bf16.msra.mxu1 %v5493_v12  ;;  %v5558_v12 = vld [vmem:[#allocation7 + $0x804] ss:$20 sps:$4 sm:$0xff]  }
 0x21b   : > { %2920 = vmatpush1.bf16.msra.mxu0 %v5496_v14  ;;  %2819 = vmatprep.subr.bf16.mxu1 %v5501_v15  ;;  %v5553_v14 = vld [vmem:[#allocation7 + $0x7f8] ss:$20 sps:$4 sm:$0xff]   ;;  %v5556_v15 = vld [vmem:[#allocation7 + $0x800] ss:$20 sps:$4 sm:$0xff]  }
 0x21c   : > { %2921 = vmatprep.subr.bf16.mxu0 %v5504_v18  ;;  %v5561_v18 = vld [vmem:[#allocation7 + $0x824] ss:$20 sps:$4 sm:$0xff]  }
 0x21e   : > { %2820 = vmatpush1.bf16.msra.mxu1 %v5499_v19  ;;  %v5564_v19 = vld [vmem:[#allocation7 + $0x82c] ss:$20 sps:$4 sm:$0xff]  }
 0x21f   : > { %2922 = vmatpush1.bf16.msra.mxu0 %v5502_v20  ;;  %2821 = vmatprep.subr.bf16.mxu1 %v5507_v22  ;;  %v5559_v20 = vld [vmem:[#allocation7 + $0x820] ss:$20 sps:$4 sm:$0xff]   ;;  %v5562_v22 = vld [vmem:[#allocation7 + $0x828] ss:$20 sps:$4 sm:$0xff]  }
 0x220   : > { %2923 = vmatprep.subr.bf16.mxu0 %v5510_v23  ;;  %v5567_v23 = vld [vmem:[#allocation7 + $0x84c] ss:$20 sps:$4 sm:$0xff]  }
 0x222   : > { %2822 = vmatpush1.bf16.msra.mxu1 %v5505_v24  ;;  %v5570_v24 = vld [vmem:[#allocation7 + $0x854] ss:$20 sps:$4 sm:$0xff]  }
 0x223   : > { %2924 = vmatpush1.bf16.msra.mxu0 %v5508_v25  ;;  %4828 = vmatprep.subr.bf16.mxu1 %v5511_v34  ;;  %v5568_v25 = vld [vmem:[#allocation7 + $0x850] ss:$20 sps:$4 sm:$0xff]   ;;  %v5573_v34 = vld [vmem:[#allocation7 + $0x874] ss:$20 sps:$4 sm:$0xff]  }
 0x224   : > { %4942 = vmatprep.subr.bf16.mxu0 %v5512_v26 }
 0x225   : > { %2840 = vmatmul.mubr.bf16.vlgmr.msra.gmra.mrb[4].mxu1 %v6105_v3 }
 0x226   : > { %2942 = vmatmul.mubr.bf16.vlgmr.msra.gmra.mrb[8].mxu0 %v6105_v3  ;;  %4829 = vmatpush3.bf16.msra.mxu1 %v5513_v59  ;;  %v5571_v59 = vld [vmem:[#allocation7 + $0x870] ss:$20 sps:$4 sm:$0xff]  }
 0x227   : > { %4943 = vmatpush3.bf16.msra.mxu0 %v5512_v26  ;;  %4830 = vmatprep.subr.bf16.mxu1 %v5514_v27  ;;  %v5576_v26 = vld [vmem:[#allocation7 + $0x87c] ss:$20 sps:$4 sm:$0xff]   ;;  %v5574_v27 = vld [vmem:[#allocation7 + $0x878] ss:$20 sps:$4 sm:$0xff]  }
 0x228   : > { %4944 = vmatprep.subr.bf16.mxu0 %v5515_v28  ;;  %2849 = vmatprep.mubr.bf16.mxu1 %v5844_v0 }
 0x229   : > { %2951 = vmatprep.mubr.bf16.mxu0 %v5844_v0 }
 0x22a   : > { %4831 = vmatpush3.bf16.msra.mxu1 %v5516_v29  ;;  %v5582_v29 = vld [vmem:[#allocation7 + $0x8a4] ss:$20 sps:$4 sm:$0xff]  }
 0x22b   : > { %4945 = vmatpush3.bf16.msra.mxu0 %v5515_v28  ;;  %4832 = vmatprep.subr.bf16.mxu1 %v5517_v32  ;;  %v5579_v28 = vld [vmem:[#allocation7 + $0x89c] ss:$20 sps:$4 sm:$0xff]   ;;  %v5580_v32 = vld [vmem:[#allocation7 + $0x8a0] ss:$20 sps:$4 sm:$0xff]  }
 0x22c   : > { %4946 = vmatprep.subr.bf16.mxu0 %v5518_v33 }
 0x22d   : > { %2850 = vmatmul.mubr.bf16.gmra.mrb[8].mxu1 %v2125_v35 }
 0x22e   : > { %2952 = vmatmul.mubr.bf16.gmra.mrb[12].mxu0 %v2125_v35  ;;  %4833 = vmatpush3.bf16.msra.mxu1 %v5519_v13  ;;  %v5588_v13 = vld [vmem:[#allocation7 + $0x8cc] ss:$20 sps:$4 sm:$0xff]  }
 0x22f   : > { %2992 = vmatprep.mubr.bf16.mxu1 %v6129_v21  ;;  %4947 = vmatpush3.bf16.msra.mxu0 %v5518_v33  ;;  %v5530_v21 = vld [vmem:[#allocation7 + $0x740] ss:$20 sps:$4 sm:$0xff]   ;;  %v5585_v33 = vld [vmem:[#allocation7 + $0x8c4] ss:$20 sps:$4 sm:$0xff]  }
 0x230   : > { %4958 = vmatprep.mubr.bf16.mxu0 %v6105_v3  ;;  %4834 = vmatprep.subr.bf16.mxu1 %v5520_v38  ;;  %v5532_v3 = vld [vmem:[#allocation7 + $0x628] ss:$20 sps:$4 sm:$0xff]  }
 0x231   : > { %4948 = vmatprep.subr.bf16.mxu0 %v5521_v41  ;;  %v5586_v38 = vld [vmem:[#allocation7 + $0x8c8] ss:$20 sps:$4 sm:$0xff]  }
 0x232   : > { %4835 = vmatpush3.bf16.msra.mxu1 %v5522_v42  ;;  %v5594_v42 = vld [vmem:[#allocation7 + $0x8f4] ss:$20 sps:$4 sm:$0xff]  }
 0x233   : > { %4949 = vmatpush3.bf16.msra.mxu0 %v5521_v41  ;;  %4836 = vmatprep.subr.bf16.mxu1 %v5523_v63  ;;  %v5591_v41 = vld [vmem:[#allocation7 + $0x8ec] ss:$20 sps:$4 sm:$0xff]   ;;  %v5589_v63 = vld [vmem:[#allocation7 + $0x8e8] ss:$20 sps:$4 sm:$0xff]  }
 0x234   : > { %4950 = vmatprep.subr.bf16.mxu0 %v5524_v43 }
 0x236   : > { %4837 = vmatpush3.bf16.msra.mxu1 %v5525_v10  ;;  %v5597_v10 = vld [vmem:[#allocation7 + $0x914] ss:$20 sps:$4 sm:$0xff]  }
 0x237   : > { %4951 = vmatpush3.bf16.msra.mxu0 %v5524_v43  ;;  %4838 = vmatprep.subr.bf16.mxu1 %v5526_v61  ;;  %v5592_v43 = vld [vmem:[#allocation7 + $0x8f0] ss:$20 sps:$4 sm:$0xff]  }
 0x238   : > { %4952 = vmatprep.subr.bf16.mxu0 %v5527_v44  ;;  %v5600_v61 = vld [vmem:[#allocation7 + $0x91c] ss:$20 sps:$4 sm:$0xff]  }
 0x23a   : > { %4839 = vmatpush3.bf16.msra.mxu1 %v5528_v45  ;;  %v5598_v45 = vld [vmem:[#allocation7 + $0x918] ss:$20 sps:$4 sm:$0xff]  }
 0x23b   : > { %4953 = vmatpush3.bf16.msra.mxu0 %v5527_v44  ;;  %4840 = vmatprep.subr.bf16.mxu1 %v5529_v46  ;;  %v5595_v44 = vld [vmem:[#allocation7 + $0x910] ss:$20 sps:$4 sm:$0xff]  }
 0x23c   : > { %4954 = vmatprep.subr.bf16.mxu0 %v5530_v21  ;;  %v5603_v46 = vld [vmem:[#allocation7 + $0x93c] ss:$20 sps:$4 sm:$0xff]  }
 0x23e   : > { %4841 = vmatpush3.bf16.msra.mxu1 %v5531_v47  ;;  %v5601_v47 = vld [vmem:[#allocation7 + $0x938] ss:$20 sps:$4 sm:$0xff]  }
 0x23f   : > { %4955 = vmatpush3.bf16.msra.mxu0 %v5530_v21  ;;  %4842 = vmatprep.subr.bf16.mxu1 %v5532_v3  ;;  %v5606_v21 = vld [vmem:[#allocation7 + $0x944] ss:$20 sps:$4 sm:$0xff]   ;;  %v5604_v3 = vld [vmem:[#allocation7 + $0x940] ss:$20 sps:$4 sm:$0xff]  }
 0x240   : > { %4956 = vmatprep.subr.bf16.mxu0 %v5533_v50 }
 0x242   : > { %4843 = vmatpush3.bf16.msra.mxu1 %v5534_v52  ;;  %v5607_v52 = vld [vmem:[#allocation7 + $0x960] ss:$20 sps:$4 sm:$0xff]  }
 0x243   : > { %4957 = vmatpush3.bf16.msra.mxu0 %v5533_v50  ;;  %3874 = vmatprep.subr.bf16.mxu1 %v5537_v53  ;;  %v5609_v50 = vld [vmem:[#allocation7 + $0x964] ss:$20 sps:$4 sm:$0xff]   ;;  %v5615_v53 = vld [vmem:[#allocation7 + $0x98c] ss:$20 sps:$4 sm:$0xff]  }
 0x244   : > { %3976 = vmatprep.subr.bf16.mxu0 %v5540_v17  ;;  %v5613_v17 = vld [vmem:[#allocation7 + $0x988] ss:$20 sps:$4 sm:$0xff]  }
 0x245   : > { %2993 = vmatmul.mubr.bf16.vlgmr.msra.gmra.mrb[20].mxu1 %v6137_v48  ;;  %v5547_v48 = vld [vmem:[#allocation7 + $0x7d0] ss:$20 sps:$4 sm:$0xff]  }
 0x246   : > { %4959 = vmatmul.mubr.bf16.vlgmr.msra.gmra.mrb[16].mxu0 %v2125_v35  ;;  %3000 = vmatprep.mubr.bf16.mxu1 %v6140_v49  ;;  %v5555_v49 = vld [vmem:[#allocation7 + $0x7fc] ss:$20 sps:$4 sm:$0xff]   ;;  %v5583_v35 = vld [vmem:[#allocation7 + $0x8c0] ss:$20 sps:$4 sm:$0xff]  }
 0x247   : > { %3875 = vmatpush1.bf16.msra.mxu1 %v5535_v56  ;;  %3977 = vmatpush1.bf16.msra.mxu0 %v5538_v57  ;;  %v5621_v56 = vld [vmem:[#allocation7 + $0x9b4] ss:$20 sps:$4 sm:$0xff]   ;;  %v5624_v57 = vld [vmem:[#allocation7 + $0x9bc] ss:$20 sps:$4 sm:$0xff]  }
 0x248   : > { %4008 = vmatprep.mubr.bf16.mxu0 %v6167_v16  ;;  %3876 = vmatprep.subr.bf16.mxu1 %v5543_v60  ;;  %v3074_v60 = vld [vmem:[#allocation2 + $0x30] sm:$0x3f] }
 0x249   : > { %3978 = vmatprep.subr.bf16.mxu0 %v5546_v5  ;;  %v5622_v5 = vld [vmem:[#allocation7 + $0x9b8] ss:$20 sps:$4 sm:$0xff]  }
 0x24b   : > { %3877 = vmatpush1.bf16.msra.mxu1 %v5541_v6  ;;  %3979 = vmatpush1.bf16.msra.mxu0 %v5544_v7  ;;  %v5627_v6 = vld [vmem:[#allocation7 + $0x9dc] ss:$20 sps:$4 sm:$0xff]   ;;  %v5630_v7 = vld [vmem:[#allocation7 + $0x9e4] ss:$20 sps:$4 sm:$0xff]  }
 0x24c   : > { %3878 = vmatprep.subr.bf16.mxu1 %v5549_v8  ;;  %3980 = vmatprep.subr.bf16.mxu0 %v5552_v9  ;;  %v3071_v8 = vld [vmem:[#allocation2] sm:$0xfc]  ;;  %v3080_v9 = vpack.c.bf16 %v3074_v60, %v3074_v60 }
 0x24d   : > { %3001 = vmatmul.mubr.bf16.gmra.mrb[24].mxu1 %v6146_v55  ;;  %v5565_v55 = vld [vmem:[#allocation7 + $0x848] ss:$20 sps:$4 sm:$0xff]  }
 0x24e   : > { %3906 = vmatprep.mubr.bf16.mxu1 %v6167_v16 }
 0x24f   : > { %3879 = vmatpush1.bf16.msra.mxu1 %v5547_v48  ;;  %3981 = vmatpush1.bf16.msra.mxu0 %v5550_v11  ;;  %v5625_v48 = vld [vmem:[#allocation7 + $0x9d8] ss:$20 sps:$4 sm:$0xff]   ;;  %v5628_v11 = vld [vmem:[#allocation7 + $0x9e0] ss:$20 sps:$4 sm:$0xff]  }
 0x250   : > { %3880 = vmatprep.subr.bf16.mxu1 %v5555_v49  ;;  %3982 = vmatprep.subr.bf16.mxu0 %v5558_v12  ;;  %v5703_v49 = vld [vmem:[#allocation2 + $0x18] sm:$0xff] }
 0x251   : > { %v3077_v12 = vpack.c.bf16 %v5703_v49, %v3071_v8  ;;  %v5682_v8 = vld [vmem:[#allocation7 + $0x8f8] ss:$20 sps:$4 sm:$0xff]   ;;  %v5686_v49 = vld [vmem:[#allocation7 + $0xa60] ss:$20 sps:$4 sm:$0xff]  }
 0x253   : > { %3881 = vmatpush1.bf16.msra.mxu1 %v5553_v14  ;;  %3983 = vmatpush1.bf16.msra.mxu0 %v5556_v15  ;;  %v5633_v14 = vld [vmem:[#allocation7 + $0xa04] ss:$20 sps:$4 sm:$0xff]   ;;  %v5636_v15 = vld [vmem:[#allocation7 + $0xa0c] ss:$20 sps:$4 sm:$0xff]  }
 0x254   : > { %3882 = vmatprep.subr.bf16.mxu1 %v5561_v18  ;;  %3984 = vmatprep.subr.bf16.mxu0 %v5564_v19  ;;  %v6172_v18 = vrot.slane %v3080_v9, 1  ;;  %v3235_v19 = vrot.slane %v3077_v12, 1  ;;  %v5683_v9 = vld [vmem:[#allocation7 + $0xa38] ss:$20 sps:$4 sm:$0xff]   ;;  %v5687_v12 = vld [vmem:[#allocation7 + $0x7e0] ss:$20 sps:$4 sm:$0xff]  }
 0x257   : > { %3883 = vmatpush1.bf16.msra.mxu1 %v5559_v20  ;;  %3985 = vmatpush1.bf16.msra.mxu0 %v5562_v22  ;;  %v5631_v20 = vld [vmem:[#allocation7 + $0xa00] ss:$20 sps:$4 sm:$0xff]   ;;  %v5634_v22 = vld [vmem:[#allocation7 + $0xa08] ss:$20 sps:$4 sm:$0xff]  }
 0x258   : > { %3884 = vmatprep.subr.bf16.mxu1 %v5567_v23  ;;  %3986 = vmatprep.subr.bf16.mxu0 %v5570_v24  ;;  %v6176_v23 = vsel %vm3234_vm4, %v3235_v19, %v6172_v18  ;;  %v5639_v24 = vld [vmem:[#allocation7 + $0xa2c] ss:$20 sps:$4 sm:$0xff]   ;;  %v5690_v19 = vld [vmem:[#allocation7 + $0x808] ss:$20 sps:$4 sm:$0xff]  }
 0x25b   : > { %3885 = vmatpush1.bf16.msra.mxu1 %v5565_v55  ;;  %3987 = vmatpush1.bf16.msra.mxu0 %v5568_v25  ;;  %v5642_v55 = vld [vmem:[#allocation7 + $0xa34] ss:$20 sps:$4 sm:$0xff]  }
 0x25c   : > { %3886 = vmatprep.subr.bf16.mxu1 %v5573_v34  ;;  %3988 = vmatprep.subr.bf16.mxu0 %v5576_v26  ;;  %v5637_v25 = vld [vmem:[#allocation7 + $0xa28] ss:$20 sps:$4 sm:$0xff]   ;;  %v5640_v34 = vld [vmem:[#allocation7 + $0xa30] ss:$20 sps:$4 sm:$0xff]  }
 0x25d   : > { %v5645_v26 = vld [vmem:[#allocation7 + $0xa54] ss:$20 sps:$4 sm:$0xff]  }
 0x25f   : > { %3887 = vmatpush1.bf16.msra.mxu1 %v5571_v59  ;;  %3989 = vmatpush1.bf16.msra.mxu0 %v5574_v27  ;;  %v5648_v59 = vld [vmem:[#allocation7 + $0xa5c] ss:$20 sps:$4 sm:$0xff]  }
 0x260   : > { %3888 = vmatprep.subr.bf16.mxu1 %v5579_v28  ;;  %3990 = vmatprep.subr.bf16.mxu0 %v5582_v29  ;;  %v5643_v27 = vld [vmem:[#allocation7 + $0xa50] ss:$20 sps:$4 sm:$0xff]   ;;  %v5646_v28 = vld [vmem:[#allocation7 + $0xa58] ss:$20 sps:$4 sm:$0xff]  }
 0x261   : > { %v5651_v29 = vld [vmem:[#allocation7 + $0xa7c] ss:$20 sps:$4 sm:$0xff]  }
 0x263   : > { %3889 = vmatpush1.bf16.msra.mxu1 %v5577_v31  ;;  %3991 = vmatpush1.bf16.msra.mxu0 %v5580_v32  ;;  %v5654_v31 = vld [vmem:[#allocation7 + $0xa84] ss:$20 sps:$4 sm:$0xff]  }
 0x264   : > { %3890 = vmatprep.subr.bf16.mxu1 %v5585_v33  ;;  %3992 = vmatprep.subr.bf16.mxu0 %v5588_v13  ;;  %v5649_v32 = vld [vmem:[#allocation7 + $0xa78] ss:$20 sps:$4 sm:$0xff]   ;;  %v5652_v33 = vld [vmem:[#allocation7 + $0xa80] ss:$20 sps:$4 sm:$0xff]  }
 0x265   : > { %v5657_v13 = vld [vmem:[#allocation7 + $0xaa4] ss:$20 sps:$4 sm:$0xff]  }
 0x267   : > { %3891 = vmatpush1.bf16.msra.mxu1 %v5583_v35  ;;  %3993 = vmatpush1.bf16.msra.mxu0 %v5586_v38  ;;  %v5660_v35 = vld [vmem:[#allocation7 + $0xaac] ss:$20 sps:$4 sm:$0xff]  }
 0x268   : > { %3892 = vmatprep.subr.bf16.mxu1 %v5591_v41  ;;  %3994 = vmatprep.subr.bf16.mxu0 %v5594_v42  ;;  %v5655_v38 = vld [vmem:[#allocation7 + $0xaa0] ss:$20 sps:$4 sm:$0xff]   ;;  %v5658_v41 = vld [vmem:[#allocation7 + $0xaa8] ss:$20 sps:$4 sm:$0xff]  }
 0x269   : > { %v5663_v42 = vld [vmem:[#allocation7 + $0xacc] ss:$20 sps:$4 sm:$0xff]  }
 0x26b   : > { %3893 = vmatpush1.bf16.msra.mxu1 %v5589_v63  ;;  %3995 = vmatpush1.bf16.msra.mxu0 %v5592_v43  ;;  %v5666_v63 = vld [vmem:[#allocation7 + $0xad4] ss:$20 sps:$4 sm:$0xff]  }
 0x26c   : > { %3894 = vmatprep.subr.bf16.mxu1 %v5597_v10  ;;  %3996 = vmatprep.subr.bf16.mxu0 %v5600_v61  ;;  %v5661_v10 = vld [vmem:[#allocation7 + $0xac8] ss:$20 sps:$4 sm:$0xff]  }
 0x26f   : > { %3895 = vmatpush1.bf16.msra.mxu1 %v5595_v44  ;;  %3997 = vmatpush1.bf16.msra.mxu0 %v5598_v45  ;;  %v5664_v44 = vld [vmem:[#allocation7 + $0xad0] ss:$20 sps:$4 sm:$0xff]   ;;  %v5669_v45 = vld [vmem:[#allocation7 + $0xaf4] ss:$20 sps:$4 sm:$0xff]  }
 0x270   : > { %3896 = vmatprep.subr.bf16.mxu1 %v5603_v46  ;;  %3998 = vmatprep.subr.bf16.mxu0 %v5606_v21 }
 0x273   : > { %3897 = vmatpush1.bf16.msra.mxu1 %v5601_v47  ;;  %3999 = vmatpush1.bf16.msra.mxu0 %v5604_v3  ;;  %v5672_v47 = vld [vmem:[#allocation7 + $0xafc] ss:$20 sps:$4 sm:$0xff]  }
 0x274   : > { %3898 = vmatprep.subr.bf16.mxu1 %v5609_v50  ;;  %4000 = vmatprep.subr.bf16.mxu0 %v5612_v51  ;;  %v5667_v51 = vld [vmem:[#allocation7 + $0xaf0] ss:$20 sps:$4 sm:$0xff]  }
 0x277   : > { %3899 = vmatpush1.bf16.msra.mxu1 %v5607_v52  ;;  %4001 = vmatpush1.bf16.msra.mxu0 %v5610_v1  ;;  %v5670_v52 = vld [vmem:[#allocation7 + $0xaf8] ss:$20 sps:$4 sm:$0xff]   ;;  %v5675_v1 = vld [vmem:[#allocation7 + $0xb1c] ss:$20 sps:$4 sm:$0xff]  }
 0x278   : > { %3900 = vmatprep.subr.bf16.mxu1 %v5615_v53  ;;  %4002 = vmatprep.subr.bf16.mxu0 %v5618_v54  ;;  %v5678_v53 = vld [vmem:[#allocation7 + $0xb24] ss:$20 sps:$4 sm:$0xff]  }
 0x27b   : > { %3901 = vmatpush1.bf16.msra.mxu1 %v5613_v17  ;;  %4003 = vmatpush1.bf16.msra.mxu0 %v5616_v30  ;;  %v5673_v17 = vld [vmem:[#allocation7 + $0xb18] ss:$20 sps:$4 sm:$0xff]  }
 0x27c   : > { %3902 = vmatprep.subr.bf16.mxu1 %v5621_v56  ;;  %4004 = vmatprep.subr.bf16.mxu0 %v5624_v57  ;;  %v5676_v56 = vld [vmem:[#allocation7 + $0xb20] ss:$20 sps:$4 sm:$0xff]   ;;  %v5679_v57 = vld [vmem:[#allocation7 + $0x8d0] ss:$20 sps:$4 sm:$0xff]  }
 0x27f   : > { %3903 = vmatpush1.bf16.msra.mxu1 %v5619_v2  ;;  %4005 = vmatpush1.bf16.msra.mxu0 %v5622_v5  ;;  %v5680_v5 = vld [vmem:[#allocation7 + $0xa10] ss:$20 sps:$4 sm:$0xff]  }
 0x280   : > { %3904 = vmatprep.subr.bf16.mxu1 %v5627_v6  ;;  %4006 = vmatprep.subr.bf16.mxu0 %v5630_v7  ;;  %v5681_v7 = vld [vmem:[#allocation7 + $0x790] ss:$20 sps:$4 sm:$0xff]  }
 0x283   : > { %3905 = vmatpush1.bf16.msra.mxu1 %v5625_v48  ;;  %4007 = vmatpush1.bf16.msra.mxu0 %v5628_v11  ;;  %v5684_v48 = vld [vmem:[#allocation7 + $0x7b8] ss:$20 sps:$4 sm:$0xff]   ;;  %v5685_v11 = vld [vmem:[#allocation7 + $0x920] ss:$20 sps:$4 sm:$0xff]  }
 0x284   : > { %3925 = vmatprep.subr.bf16.mxu1 %v5633_v14  ;;  %4027 = vmatprep.subr.bf16.mxu0 %v5636_v15  ;;  %v5688_v14 = vld [vmem:[#allocation7 + $0x948] ss:$20 sps:$4 sm:$0xff]  }
 0x285   : > { %v5689_v15 = vld [vmem:[#allocation7 + $0xa88] ss:$20 sps:$4 sm:$0xff]  }
 0x286   : > { %3907 = vmatmul.mubr.bf16.vlgmr.msra.gmra.mrb[4].mxu1 %v6176_v23  ;;  %4009 = vmatmul.mubr.bf16.vlgmr.msra.gmra.mrb[8].mxu0 %v6176_v23 }
 0x287   : > { %3916 = vmatprep.mubr.bf16.mxu1 %v6161_v58  ;;  %3926 = vmatpush1.bf16.msra.mxu1 %v5631_v20  ;;  %v5691_v20 = vld [vmem:[#allocation7 + $0x970] ss:$20 sps:$4 sm:$0xff]  }
 0x288   : > { %4018 = vmatprep.mubr.bf16.mxu0 %v6161_v58  ;;  %4028 = vmatpush1.bf16.msra.mxu0 %v5634_v22  ;;  %v5693_v22 = vld [vmem:[#allocation7 + $0x830] ss:$20 sps:$4 sm:$0xff]  }
 0x289   : > { %3927 = vmatprep.subr.bf16.mxu1 %v5639_v24  ;;  %4029 = vmatprep.subr.bf16.mxu0 %v5642_v55  ;;  %v5694_v24 = vld [vmem:[#allocation7 + $0x998] ss:$20 sps:$4 sm:$0xff]  }
 0x28a   : > { %v5695_v55 = vld [vmem:[#allocation7 + $0xad8] ss:$20 sps:$4 sm:$0xff]  }
 0x28b   : > { %3928 = vmatpush1.bf16.msra.mxu1 %v5637_v25  ;;  %v5696_v25 = vld [vmem:[#allocation7 + $0x858] ss:$20 sps:$4 sm:$0xff]  }
 0x28c   : > { %4030 = vmatpush1.bf16.msra.mxu0 %v5640_v34  ;;  %3929 = vmatprep.subr.bf16.mxu1 %v5645_v26  ;;  %v5697_v34 = vld [vmem:[#allocation7 + $0x9c0] ss:$20 sps:$4 sm:$0xff]  }
 0x28d   : > { %4031 = vmatprep.subr.bf16.mxu0 %v5648_v59  ;;  %v5699_v26 = vld [vmem:[#allocation7 + $0x880] ss:$20 sps:$4 sm:$0xff]   ;;  %v5701_v59 = vld [vmem:[#allocation7 + $0xb28] ss:$20 sps:$4 sm:$0xff]  }
 0x28e   : > { %3917 = vmatmul.mubr.bf16.gmra.mrb[8].mxu1 %v6172_v18  ;;  %4019 = vmatmul.mubr.bf16.gmra.mrb[12].mxu0 %v6172_v18 }
 0x28f   : > { %3930 = vmatpush1.bf16.msra.mxu1 %v5643_v27  ;;  %3957 = vmatprep.mubr.bf16.mxu1 %v5844_v0  ;;  %v5702_v27 = vld [vmem:[#allocation7 + $0x8a8] ss:$20 sps:$4 sm:$0xff]  }
 0x290   : > { %4032 = vmatpush1.bf16.msra.mxu0 %v5646_v28  ;;  %3931 = vmatprep.subr.bf16.mxu1 %v5651_v29  ;;  %v1901_v28 = vsub.s32 4, %v6054_v36  ;;  %v798_v29 = vld [vmem:[#allocation8] sm:$0x1f] }
 0x291   : > { %4033 = vmatprep.subr.bf16.mxu0 %v5654_v31  ;;  %4059 = vmatprep.mubr.bf16.mxu0 %v5844_v0 }
 0x292   : > { %v1902_v31 = vrot.slane %v798_v29, %v1901_v28 }
 0x293   : > { %3932 = vmatpush1.bf16.msra.mxu1 %v5649_v32 }
 0x294   : > { %4034 = vmatpush1.bf16.msra.mxu0 %v5652_v33  ;;  %3933 = vmatprep.subr.bf16.mxu1 %v5657_v13 }
 0x295   : > { %4035 = vmatprep.subr.bf16.mxu0 %v5660_v35 }
 0x297   : > { %3934 = vmatpush1.bf16.msra.mxu1 %v5655_v38  ;;  %v4806_v43 = vpop.f32.mrb[12].mxu1 }
 0x298   : > { %4036 = vmatpush1.bf16.msra.mxu0 %v5658_v41  ;;  %v4807_v61 = vpop.f32.mrb[13].mxu1  ;;  %3935 = vmatprep.subr.bf16.mxu1 %v5663_v42 }
 0x299   : > { %v6186_v46 = vadd.f32 %v4807_v61, %v4806_v43  ;;  %4037 = vmatprep.subr.bf16.mxu0 %v5666_v63  ;;  %v4809_v21 = vpop.f32.mrb[14].mxu1 }
 0x29a   : > { %v4810_v3 = vpop.f32.mrb[15].mxu1 }
 0x29b   : > { %3936 = vmatpush1.bf16.msra.mxu1 %v5661_v10  ;;  %v6188_v50 = vadd.f32 %v4810_v3, %v4809_v21  ;;  %v5007_v13 = vadd.f32 %v6186_v46, %v1902_v31  ;;  %v1897_v46 = vsub.s32 3, %v6054_v36  ;;  %v1886_v21 = vrot.slane %v798_v29, %v423_v39 }
 0x29c   : > { %4038 = vmatpush1.bf16.msra.mxu0 %v5664_v44  ;;  %3937 = vmatprep.subr.bf16.mxu1 %v5669_v45  ;;  %v1890_v3 = vrot.slane %v798_v29, %v427_v40 }
 0x29d   : > { %4039 = vmatprep.subr.bf16.mxu0 %v5672_v47  ;;  %v5011_v42 = vadd.f32 %v6188_v50, %v1902_v31  ;;  %v1894_v47 = vrot.slane %v798_v29, %v431_v37  ;;  %v1898_v50 = vrot.slane %v798_v29, %v1897_v46 }
 0x29f   : > { %3938 = vmatpush1.bf16.msra.mxu1 %v5667_v51  ;;  %v4812_v54 = vpop.f32.mrb[16].mxu1 }
 0x2a0   : > { %4040 = vmatpush1.bf16.msra.mxu0 %v5670_v52  ;;  %v4813_v30 = vpop.f32.mrb[17].mxu1  ;;  %3939 = vmatprep.subr.bf16.mxu1 %v5675_v1 }
 0x2a1   : > { %v6190_v60 = vadd.f32 %v4813_v30, %v4812_v54  ;;  %4041 = vmatprep.subr.bf16.mxu0 %v5678_v53  ;;  %v4815_v2 = vpop.f32.mrb[18].mxu1 }
 0x2a2   : > { %v4816_v6 = vpop.f32.mrb[19].mxu1 }
 0x2a3   : > { %3940 = vmatpush1.bf16.msra.mxu1 %v5673_v17  ;;  %v5003_v43 = vadd.f32 %v6190_v60, %v1902_v31 }
 0x2a4   : > { %4042 = vmatpush1.bf16.msra.mxu0 %v5676_v56  ;;  %4866 = vmatprep.subr.bf16.mxu1 %v5679_v57 }
 0x2a5   : > { %4962 = vmatprep.subr.bf16.mxu0 %v5680_v5 }
 0x2a6   : > { %3958 = vmatmul.mubr.bf16.vlgmr.msra.gmra.mrb[4].mxu1 %v6111_v4 }
 0x2a7   : > { %4060 = vmatmul.mubr.bf16.vlgmr.msra.gmra.mrb[8].mxu0 %v6111_v4  ;;  %4867 = vmatpush3.bf16.msra.mxu1 %v5681_v7 }
 0x2a8   : > { %4963 = vmatpush3.bf16.msra.mxu0 %v5680_v5  ;;  %4868 = vmatprep.subr.bf16.mxu1 %v5682_v8 }
 0x2a9   : > { %4964 = vmatprep.subr.bf16.mxu0 %v5683_v9  ;;  %3967 = vmatprep.mubr.bf16.mxu1 %v5844_v0 }
 0x2aa   : > { %4069 = vmatprep.mubr.bf16.mxu0 %v5844_v0  ;;  %v5692_v0 = vld [vmem:[#allocation7 + $0xab0] ss:$20 sps:$4 sm:$0xff]  }
 0x2ab   : > { %4869 = vmatpush3.bf16.msra.mxu1 %v5684_v48 }
 0x2ac   : > { %4965 = vmatpush3.bf16.msra.mxu0 %v5683_v9  ;;  %4870 = vmatprep.subr.bf16.mxu1 %v5685_v11 }
 0x2ad   : > { %4966 = vmatprep.subr.bf16.mxu0 %v5686_v49 }
 0x2ae   : > { %3968 = vmatmul.mubr.bf16.gmra.mrb[8].mxu1 %v6097_v62 }
 0x2af   : > { %4070 = vmatmul.mubr.bf16.gmra.mrb[12].mxu0 %v6097_v62  ;;  %4871 = vmatpush3.bf16.msra.mxu1 %v5687_v12 }
 0x2b0   : > { %4110 = vmatprep.mubr.bf16.mxu1 %v6167_v16  ;;  %4967 = vmatpush3.bf16.msra.mxu0 %v5686_v49  ;;  %v5698_v16 = vld [vmem:[#allocation7 + $0xb00] ss:$20 sps:$4 sm:$0xff]  }
 0x2b1   : > { %4978 = vmatprep.mubr.bf16.mxu0 %v6111_v4  ;;  %4872 = vmatprep.subr.bf16.mxu1 %v5688_v14  ;;  %v5700_v4 = vld [vmem:[#allocation7 + $0x9e8] ss:$20 sps:$4 sm:$0xff]  }
 0x2b2   : > { %4968 = vmatprep.subr.bf16.mxu0 %v5689_v15 }
 0x2b3   : > { %4873 = vmatpush3.bf16.msra.mxu1 %v5690_v19 }
 0x2b4   : > { %4969 = vmatpush3.bf16.msra.mxu0 %v5689_v15  ;;  %4874 = vmatprep.subr.bf16.mxu1 %v5691_v20 }
 0x2b5   : > { %4970 = vmatprep.subr.bf16.mxu0 %v5692_v0 }
 0x2b7   : > { %4875 = vmatpush3.bf16.msra.mxu1 %v5693_v22 }
 0x2b8   : > { %4971 = vmatpush3.bf16.msra.mxu0 %v5692_v0  ;;  %4876 = vmatprep.subr.bf16.mxu1 %v5694_v24 }
 0x2b9   : > { %4972 = vmatprep.subr.bf16.mxu0 %v5695_v55 }
 0x2bb   : > { %4877 = vmatpush3.bf16.msra.mxu1 %v5696_v25 }
 0x2bc   : > { %4973 = vmatpush3.bf16.msra.mxu0 %v5695_v55  ;;  %4878 = vmatprep.subr.bf16.mxu1 %v5697_v34 }
 0x2bd   : > { %4974 = vmatprep.subr.bf16.mxu0 %v5698_v16 }
 0x2bf   : > { %4879 = vmatpush3.bf16.msra.mxu1 %v5699_v26 }
 0x2c0   : > { %4975 = vmatpush3.bf16.msra.mxu0 %v5698_v16  ;;  %4880 = vmatprep.subr.bf16.mxu1 %v5700_v4 }
 0x2c1   : > { %4976 = vmatprep.subr.bf16.mxu0 %v5701_v59 }
 0x2c3   : > { %4881 = vmatpush3.bf16.msra.mxu1 %v5702_v27 }
 0x2c4   : > { %4977 = vmatpush3.bf16.msra.mxu0 %v5701_v59 }
 0x2c6   : > { %4111 = vmatmul.mubr.bf16.vlgmr.msra.gmra.mrb[28].mxu1 %v6176_v23 }
 0x2c7   : > { %4979 = vmatmul.mubr.bf16.vlgmr.msra.gmra.mrb[16].mxu0 %v6097_v62  ;;  %4118 = vmatprep.mubr.bf16.mxu1 %v6161_v58 }
 0x2ce   : > { %4119 = vmatmul.mubr.bf16.gmra.mrb[32].mxu1 %v6172_v18 }
 0x318   : > { %v4844_v32 = vpop.f32.mrb[20].mxu1 }
 0x319   : > { %v4845_v33 = vpop.f32.mrb[21].mxu1 }
 0x31a   : > { %v4846_v35 = vadd.f32 %v4845_v33, %v4844_v32  ;;  %v4847_v38 = vpop.f32.mrb[22].mxu1 }
 0x31b   : > { %v4848_v41 = vpop.f32.mrb[23].mxu1 }
 0x31c   : > { %v6207_v23 = vadd.f32 %v5007_v13, %v4846_v35  ;;  %v4849_v62 = vadd.f32 %v4848_v41, %v4847_v38 }
 0x31e   : > { %v6209_v63 = vadd.f32 %v5011_v42, %v4849_v62 }
 0x320   : > { %v4850_v58 = vpop.f32.mrb[24].mxu1 }
 0x321   : > { %v4851_v18 = vpop.f32.mrb[25].mxu1 }
 0x322   : > { %v4852_v10 = vadd.f32 %v4851_v18, %v4850_v58  ;;  %v4853_v61 = vpop.f32.mrb[26].mxu1 }
 0x323   : > { %v4854_v44 = vpop.f32.mrb[27].mxu1 }
 0x324   : > { %v6212_v45 = vadd.f32 %v5003_v43, %v4852_v10 }
 0x379   : > { %v3959_v51 = vpop.f32.mrb[4].mxu1 }
 0x37a   : > { %v4991_v52 = vadd.f32 %v3959_v51, %v1886_v21  ;;  %v4061_v1 = vpop.f32.mrb[8].mxu0  ;;  %v3961_v53 = vpop.f32.mrb[5].mxu1 }
 0x37b   : > { %v4997_v54 = vadd.f32 %v4061_v1, %v1894_v47  ;;  %v4992_v17 = vadd.f32 %v3961_v53, %v1890_v3  ;;  %v4063_v30 = vpop.f32.mrb[9].mxu0  ;;  %v3963_v56 = vpop.f32.mrb[6].mxu1 }
 0x37c   : > { %v4189_v57 = vmax.f32 %v4991_v52, 0.0  ;;  %v4998_v60 = vadd.f32 %v4063_v30, %v1898_v50  ;;  %v4993_v2 = vadd.f32 %v3963_v56, %v1886_v21  ;;  %v4065_v39 = vpop.f32.mrb[10].mxu0  ;;  %v3965_v5 = vpop.f32.mrb[7].mxu1 }
 0x37d   : > { %v4191_v6 = vmax.f32 %v4997_v54, 0.0  ;;  %v4190_v37 = vmax.f32 %v4992_v17, 0.0  ;;  %v4999_v7 = vadd.f32 %v4065_v39, %v1894_v47  ;;  %v4994_v36 = vadd.f32 %v3965_v5, %v1890_v3  ;;  %v4067_v40 = vpop.f32.mrb[11].mxu0 }
 0x37e   : > { %v4192_v8 = vmax.f32 %v4998_v60, 0.0  ;;  %v4194_v9 = vmax.f32 %v4993_v2, 0.0  ;;  %v5000_v48 = vadd.f32 %v4067_v40, %v1898_v50 }
 0x37f   : > { %v4772_v11 = vpack.c.bf16 %v4190_v37, %v4189_v57  ;;  %v4196_v49 = vmax.f32 %v4999_v7, 0.0  ;;  %v4195_v12 = vmax.f32 %v4994_v36, 0.0 }
 0x380   : > { %v4773_v14 = vpack.c.bf16 %v4192_v8, %v4191_v6  ;;  %v4197_v15 = vmax.f32 %v5000_v48, 0.0 }
 0x381   : > { %4257 = vst [vmem:[%s6225_s17] sm:$0xff] %v4772_v11  ;;  %v4775_v19 = vpack.c.bf16 %v4195_v12, %v4194_v9  ;;  %v3969_v20 = vpop.f32.mrb[8].mxu1 }
 0x382   : > { %4258 = vst [vmem:[%s6225_s17 + $0x8] sm:$0xff] %v4773_v14  ;;  %v4776_v0 = vpack.c.bf16 %v4197_v15, %v4196_v49  ;;  %v4995_v22 = vadd.f32 %v3969_v20, %v1886_v21  ;;  %v4071_v24 = vpop.f32.mrb[12].mxu0  ;;  %v3971_v55 = vpop.f32.mrb[9].mxu1 }
 0x383   : > { %4260 = vst [vmem:[%s6225_s17 + $0x14] sm:$0xff] %v4775_v19  ;;  %v5001_v25 = vadd.f32 %v4071_v24, %v1894_v47  ;;  %v4996_v34 = vadd.f32 %v3971_v55, %v1890_v3  ;;  %v4073_v16 = vpop.f32.mrb[13].mxu0  ;;  %v3973_v26 = vpop.f32.mrb[10].mxu1 }
 0x384   : > { %4261 = vst [vmem:[%s6225_s17 + $0x1c] sm:$0xff] %v4776_v0  ;;  %v4199_v4 = vmax.f32 %v4995_v22, 0.0  ;;  %v5002_v59 = vadd.f32 %v4073_v16, %v1898_v50  ;;  %v4075_v27 = vpop.f32.mrb[14].mxu0  ;;  %v3974_v28 = vpop.f32.mrb[11].mxu1 }
 0x385   : > { %v4201_v29 = vmax.f32 %v5001_v25, 0.0  ;;  %v4200_v31 = vmax.f32 %v4996_v34, 0.0  ;;  %v4076_v32 = vpop.f32.mrb[15].mxu0 }
 0x386   : > { %v4202_v33 = vmax.f32 %v5002_v59, 0.0 }
 0x387   : > { %v4778_v13 = vpack.c.bf16 %v4200_v31, %v4199_v4 }
 0x388   : > { %v4779_v35 = vpack.c.bf16 %v4202_v33, %v4201_v29 }
 0x389   : > { %4263 = vst [vmem:[%s6225_s17 + $0x28] sm:$0x33] %v4778_v13 }
 0x38a   : > { %4264 = vst [vmem:[%s6225_s17 + $0x30] sm:$0x33] %v4779_v35 }
 0x399   : > { %v4882_v38 = vpop.f32.mrb[28].mxu1 }
 0x39a   : > { %v4980_v41 = vpop.f32.mrb[16].mxu0  ;;  %v4883_v42 = vpop.f32.mrb[29].mxu1 }
 0x39b   : > { %v4884_v62 = vadd.f32 %v4883_v42, %v4882_v38  ;;  %v4160_v58 = vpop.f32.mrb[17].mxu0  ;;  %v4885_v18 = vpop.f32.mrb[30].mxu1 }
 0x39c   : > { %v4981_v43 = vpop.f32.mrb[18].mxu0  ;;  %v4886_v10 = vpop.f32.mrb[31].mxu1 }
 0x39d   : > { %v5009_v61 = vadd.f32 %v6207_v23, %v4884_v62  ;;  %v4887_v44 = vadd.f32 %v4886_v10, %v4885_v18  ;;  %v4163_v46 = vpop.f32.mrb[19].mxu0 }
 0x39f   : > { %v5010_v21 = vadd.f32 %v5009_v61, %v4160_v58  ;;  %v5013_v47 = vadd.f32 %v6209_v63, %v4887_v44 }
 0x3a1   : > { %v4193_v3 = vmax.f32 %v5010_v21, 0.0  ;;  %v5014_v50 = vadd.f32 %v5013_v47, %v4163_v46  ;;  %v4888_v51 = vpop.f32.mrb[32].mxu1 }
 0x3a2   : > { %v4889_v52 = vpop.f32.mrb[33].mxu1 }
 0x3a3   : > { %v4774_v1 = vpack.c.bf16 %v4193_v3, %v4193_v3  ;;  %v4198_v53 = vmax.f32 %v5014_v50, 0.0  ;;  %v4890_v54 = vadd.f32 %v4889_v52, %v4888_v51  ;;  %v4891_v17 = vpop.f32.mrb[34].mxu1 }
 0x3a4   : > { %v4892_v30 = vpop.f32.mrb[35].mxu1 }
 0x3a5   : > { %4259 = vst [vmem:[%s6225_s17 + $0x10] sm:$0xf] %v4774_v1  ;;  %v4777_v56 = vpack.c.bf16 %v4198_v53, %v4198_v53  ;;  %v5005_v23 = vadd.f32 %v6212_v45, %v4890_v54 }
 0x3a7   : > { %4262 = vst [vmem:[%s6225_s17 + $0x24] sm:$0xf] %v4777_v56  ;;  %v5006_v57 = vadd.f32 %v5005_v23, %v4980_v41 }
 0x3a9   : > { %v4203_v60 = vmax.f32 %v5006_v57, 0.0 }
 0x3ab   : > { %v4780_v2 = vpack.c.bf16 %v4203_v60, %v4203_v60 }
 0x3ad   : > { %4265 = vst [vmem:[%s6225_s17 + $0x38] sm:$0x3] %v4780_v2 }
 0x3ae PF: > { %s18_s18 = sadd.s32 1, %s5834_s18  }
 0x3af   : > { %p15_p11 = scmp.ge.s32.totalorder %s18_s18, 4  }
 0x3b1   :  { %17 = sbr.rel (!%p15_p11) target bundleno = 3 (0x3), region = 91 }
 0x3b8   :  { %4287 = vsyncpa [#allocation4], 1 }
 0x3b9   :  { %4289 = vsyncpa [#allocation4 + $0x1], 1 }
 0x3ba   :  { %4290 = vsyncpa [#allocation6], 1 }
 0x3bb   :  { %4291 = vsyncpa [#allocation9], 1 }

// kernel: tetris_cnn_forward.3
= control target key start
LH: loop header
LB: loop body
LE: loop exit
PB: predicated region body
PF: predicated region fallthrough
CT: control target
= control target key end

     0   :  { %12 = vsyncpa [#allocation3], 0  ;;  %s12688_s0 = inlined_call_operand.vmem [shape: bf16[2,12800], index: 0, kind: input, shape index: {}]   ;;  %s12689_s1 = inlined_call_operand.vmem [shape: bf16[2,8], index: 1, kind: input, shape index: {}]   ;;  %s12690_s2 = inlined_call_operand.hbm [shape: bf16[12800,128], index: 2, kind: input, shape index: {}]   ;;  %s12691_s3 = inlined_call_operand.hbm [shape: bf16[8,128], index: 3, kind: input, shape index: {}]   ;;  %s12692_s4 = inlined_call_operand.hbm [shape: f32[1,128], index: 4, kind: input, shape index: {}]   ;;  %s12693_s5 = inlined_call_operand.vmem [shape: bf16[128,40], index: 5, kind: input, shape index: {}]   ;;  %s12694_s6 = inlined_call_operand.hbm [shape: f32[1,40], index: 6, kind: input, shape index: {}]   ;;  %s12695_s7 = inlined_call_operand.hbm [shape: f32[2,40], index: 7, kind: output, shape index: {}]  }
   0x1   :  { %13 = vsyncpa [#allocation6], 0 }
   0x2   :  { %14 = vsyncpa [#allocation9], 0 }
   0x3   :  { %15 = vsyncpa [#allocation4], 0  ;;  %s12302_s24 = smov [#allocation5]   ;;  %s12303_s26 = smov [#allocation2]  }
   0x4   :  { %s38_s25 = sshll.u32 %s12302_s24, 4  ;;  %s25_s27 = sshll.u32 %s12303_s26, 4  ;;  %s39_s25 = int_to_ptr.vmem [resolvable:$true] %s38_s25  ;;  %s12352_s27 = int_to_ptr.vmem [resolvable:$true] %s25_s27 }
   0x5   :  { %s12184_s30 = scalar_lea.hbm %s12691_s3, 64 }
   0x6   :  { %p12185_p0 = scmp.ne.s32.totalorder %s12691_s3, %s12184_s30  ;;  %p12188_p1 = scmp.lt.u32.totalorder %s12184_s30, %s12691_s3 }
   0x8   :  { %p12190_p2 = pnand %p12188_p1, %p12185_p0 }
   0xa   :  { %12193 = shalt.err (!%p12190_p2)
}
   0xb   :  { %s12194_s12 = scalar_lea.vmem %s39_s25, 64  ;;  %p12199_p4 = scmp.lt.s32.totalorder %s39_s25, %s39_s25 }
   0xc   :  { %p12195_p3 = scmp.ne.s32.totalorder %s39_s25, %s12194_s12  ;;  %p12200_p5 = scmp.lt.s32.totalorder %s12194_s12, %s12194_s12 }
   0xe   :  { %p12201_p6 = por %p12200_p5, %p12199_p4 }
  0x10   :  { %p12202_p7 = pnand %p12201_p6, %p12195_p3 }
  0x12   :  { %12205 = shalt.err (!%p12202_p7)
}
  0x13   :  { %41 = dma.hbm_to_vmem [thread:$0]  %s12691_s3, 64, %s39_s25, [#allocation6]  }
  0x14   :  { %s12206_s17 = scalar_lea.hbm %s12690_s2, 102400 }
  0x15   :  { %p12207_p8 = scmp.ne.s32.totalorder %s12690_s2, %s12206_s17  ;;  %p12210_p9 = scmp.lt.u32.totalorder %s12206_s17, %s12690_s2 }
  0x17   :  { %p12212_p10 = pnand %p12210_p9, %p12207_p8 }
  0x19   :  { %12215 = shalt.err (!%p12212_p10)
}
  0x1a   :  { %s12216_s22 = scalar_lea.vmem %s12352_s27, 102400  ;;  %p12221_p12 = scmp.lt.s32.totalorder %s12352_s27, %s12352_s27 }
  0x1b   :  { %p12217_p11 = scmp.ne.s32.totalorder %s12352_s27, %s12216_s22  ;;  %p12222_p13 = scmp.lt.s32.totalorder %s12216_s22, %s12216_s22 }
  0x1d   :  { %p12223_p0 = por %p12222_p13, %p12221_p12 }
  0x1f   :  { %p12224_p1 = pnand %p12223_p0, %p12217_p11 }
  0x21   :  { %12227 = shalt.err (!%p12224_p1)
}
  0x22   :  { %s12304_s3 = smov 64   ;;  %s12305_s23 = smov 4  }
  0x23   :  { %31 = dma.hbm_to_vmem [thread:$0]  %s12690_s2, 102400, %s12352_s27, [#allocation3], %s12304_s3, %s12304_s3, %s12305_s23  }
  0x24   :  { %s12306_s26 = smov [#allocation7]   ;;  %s12307_s29 = smov [#allocation8]  }
  0x25   :  { %s48_s28 = sshll.u32 %s12306_s26, 4  ;;  %s60_s30 = sshll.u32 %s12307_s29, 4  ;;  %s49_s28 = int_to_ptr.vmem [resolvable:$true] %s48_s28  ;;  %s61_s30 = int_to_ptr.vmem [resolvable:$true] %s60_s30 }
  0x26   :  { %s12228_s10 = scalar_lea.hbm %s12692_s4, 16 }
  0x27   :  { %p12229_p2 = scmp.ne.s32.totalorder %s12692_s4, %s12228_s10  ;;  %p12232_p3 = scmp.lt.u32.totalorder %s12228_s10, %s12692_s4 }
  0x29   :  { %p12234_p4 = pnand %p12232_p3, %p12229_p2 }
  0x2b   :  { %12237 = shalt.err (!%p12234_p4)
}
  0x2c   :  { %s12238_s2 = scalar_lea.vmem %s49_s28, 16  ;;  %s12242_s27 = scalar_lea.vmem %s49_s28, 32 }
  0x2d   :  { %p12239_p5 = scmp.ne.s32.totalorder %s49_s28, %s12238_s2  ;;  %p12243_p6 = scmp.lt.s32.totalorder %s49_s28, %s49_s28 }
  0x2e   :  { %p12244_p7 = scmp.lt.s32.totalorder %s12242_s27, %s12238_s2 }
  0x30   :  { %p12245_p8 = por %p12244_p7, %p12243_p6 }
  0x32   :  { %p12246_p9 = pnand %p12245_p8, %p12239_p5 }
  0x34   :  { %12249 = shalt.err (!%p12246_p9)
}
  0x35   :  { %51 = dma.hbm_to_vmem [thread:$0]  %s12692_s4, 16, %s49_s28, [#allocation6]  }
  0x36   :  { %s12250_s19 = scalar_lea.hbm %s12694_s6, 16 }
  0x37   :  { %p12251_p10 = scmp.ne.s32.totalorder %s12694_s6, %s12250_s19  ;;  %p12254_p11 = scmp.lt.u32.totalorder %s12250_s19, %s12694_s6 }
  0x39   :  { %p12256_p12 = pnand %p12254_p11, %p12251_p10 }
  0x3b   :  { %12259 = shalt.err (!%p12256_p12)
}
  0x3c   :  { %s12260_s23 = scalar_lea.vmem %s61_s30, 16  ;;  %s12264_s24 = scalar_lea.vmem %s61_s30, 32 }
  0x3d   :  { %p12261_p13 = scmp.ne.s32.totalorder %s61_s30, %s12260_s23  ;;  %p12265_p0 = scmp.lt.s32.totalorder %s61_s30, %s61_s30 }
  0x3e   :  { %p12266_p1 = scmp.lt.s32.totalorder %s12264_s24, %s12260_s23 }
  0x40   :  { %p12267_p2 = por %p12266_p1, %p12265_p0 }
  0x42   :  { %p12268_p3 = pnand %p12267_p2, %p12261_p13 }
  0x44   :  { %12271 = shalt.err (!%p12268_p3)
}
  0x45   :  { %63 = dma.hbm_to_vmem [thread:$0]  %s12694_s6, 16, %s61_s30, [#allocation9]  }
  0x46   :  { %12294 = dma.done.wait [#allocation3], 102400  }
  0x47   :  { %12295 = vsyncadd [#allocation3], 4294864896 }
  0x48   :  { %12296 = dma.done.wait [#allocation6], 80  }
  0x49   :  { %12297 = vsyncadd [#allocation6], 4294967216 }
  0x4a   :  { %12298 = dma.done.wait [#allocation9], 16  }
  0x4b   :  { %12299 = vsyncadd [#allocation9], 4294967280  ;;  %v12308_v0 = vmov 0.0   ;;  %vm12309_vm0 = vmmov 0   ;;  %vm1696_vm1 = vcmask 1043456   ;;  %v11364_v3 = vld [vmem:[#allocation2 + $0x40] sm:$0xff]   ;;  %v1757_v26 = vlaneseq }
  0x4c   :  { %11328 = vmatprep.subr.bf16.mxu0 %v12308_v0  ;;  %11330 = vmatprep.mubr.msk.bf16.mxu0 %vm12309_vm0, %v12308_v0  ;;  %v1691_v1 = vld [vmem:[#allocation5] sm:$0xf]  ;;  %vm1692_vm2 = vcmask 64512   ;;  %v11368_v8 = vld [vmem:[#allocation2 + $0x48] sm:$0xff]   ;;  %v11372_v12 = vld [vmem:[#allocation2 + $0x50] sm:$0xff]   ;;  %vm9386_vm3 = vcmask 320512  }
  0x4d   :  { %v1698_v2 = vsel %vm1696_vm1, %v1691_v1, 0  ;;  %v11365_v4 = vld [vmem:[#allocation2] sm:$0xff]   ;;  %10219 = vmatprep.subr.bf16.mxu1 %v11364_v3  ;;  %v11369_v9 = vld [vmem:[#allocation2 + $0x8] sm:$0xff]   ;;  %v11373_v13 = vld [vmem:[#allocation2 + $0x10] sm:$0xff]   ;;  %v12310_v24 = vmov 1966171168  }
  0x4e   :  { %11329 = vmatpush3.bf16.msra.mxu0 %v1698_v2  ;;  %v1690_v5 = vld [vmem:[%s12689_s1] sm:$0x1]  ;;  %10220 = vmatpush3.bf16.msra.mxu1 %v11365_v4  ;;  %v11370_v10 = vld [vmem:[#allocation2 + $0xc8] sm:$0xff]   ;;  %v11374_v14 = vld [vmem:[#allocation2 + $0xd0] sm:$0xff]   ;;  %v1755_v25 = vunpack.c.l.s4 %v12310_v24  ;;  %v1758_v32 = vshrl.u32 %v1757_v26, 7 }
  0x4f   :  { %v11366_v6 = vld [vmem:[#allocation2 + $0xc0] sm:$0xff]   ;;  %10221 = vmatprep.subr.bf16.mxu1 %v11368_v8  ;;  %v11371_v11 = vld [vmem:[#allocation2 + $0x88] sm:$0xff]   ;;  %v11375_v15 = vld [vmem:[#allocation2 + $0x90] sm:$0xff]  }
  0x50   :  { %v11367_v7 = vld [vmem:[#allocation2 + $0x80] sm:$0xff]   ;;  %10241 = vmatprep.subr.bf16.mxu0 %v11366_v6  ;;  %v11376_v16 = vld [vmem:[#allocation2 + $0x58] sm:$0xff]   ;;  %v11384_v27 = vld [vmem:[#allocation2 + $0x68] sm:$0xff]   ;;  %v1756_v31 = vunpack.c.0.s8 %v1755_v25 }
  0x51   :  { %11331 = vmatmul.mubr.msk.bf16.vlgmr.msra.gmra.mrb[0].mxu0 %vm1692_vm2, %v1690_v5  ;;  %v11377_v17 = vld [vmem:[#allocation2 + $0x18] sm:$0xff]   ;;  %v11380_v20 = vld [vmem:[#allocation2 + $0x60] sm:$0xff]   ;;  %v11385_v28 = vld [vmem:[#allocation2 + $0x28] sm:$0xff]  }
  0x52   :  { %10242 = vmatpush3.bf16.msra.mxu0 %v11367_v7  ;;  %10222 = vmatpush3.bf16.msra.mxu1 %v11369_v9  ;;  %v11378_v18 = vld [vmem:[#allocation2 + $0xd8] sm:$0xff]   ;;  %v11381_v21 = vld [vmem:[#allocation2 + $0x20] sm:$0xff]   ;;  %v11386_v29 = vld [vmem:[#allocation2 + $0xe8] sm:$0xff]   ;;  %v12413_v37 = vsub.s32 %v1756_v31, %v1758_v32 }
  0x53   :  { %10243 = vmatprep.subr.bf16.mxu0 %v11370_v10  ;;  %10223 = vmatprep.subr.bf16.mxu1 %v11372_v12  ;;  %v11379_v19 = vld [vmem:[#allocation2 + $0x98] sm:$0xff]   ;;  %v11382_v22 = vld [vmem:[#allocation2 + $0xe0] sm:$0xff]   ;;  %v11387_v30 = vld [vmem:[#allocation2 + $0xa8] sm:$0xff]  }
  0x54   :  { %v11383_v23 = vld [vmem:[#allocation2 + $0xa0] sm:$0xff]   ;;  %v11388_v33 = vld [vmem:[#allocation2 + $0x70] sm:$0xff]   ;;  %v11392_v38 = vld [vmem:[#allocation2 + $0x78] sm:$0xff]  }
  0x55   :  { %v11389_v34 = vld [vmem:[#allocation2 + $0x30] sm:$0xff]   ;;  %v11393_v39 = vld [vmem:[#allocation2 + $0x38] sm:$0xff]   ;;  %v77_v41 = vld [vmem:[%s12688_s0] sm:$0xff] }
  0x56   :  { %10244 = vmatpush3.bf16.msra.mxu0 %v11371_v11  ;;  %10224 = vmatpush3.bf16.msra.mxu1 %v11373_v13  ;;  %v11390_v35 = vld [vmem:[#allocation2 + $0xf0] sm:$0xff]   ;;  %v11394_v40 = vld [vmem:[#allocation2 + $0xf8] sm:$0xff]   ;;  %v1753_v42 = vcombine.high %v77_v41, %v77_v41  ;;  %v1760_v43 = vrot.slane %v77_v41, %v12413_v37  ;;  %v11397_v45 = vld [vmem:[#allocation2 + $0x140] sm:$0xff]  }
  0x57   :  { %10245 = vmatprep.subr.bf16.mxu0 %v11374_v14  ;;  %10225 = vmatprep.subr.bf16.mxu1 %v11376_v16  ;;  %v11391_v36 = vld [vmem:[#allocation2 + $0xb0] sm:$0xff]   ;;  %v11396_v44 = vld [vmem:[#allocation2 + $0xb8] sm:$0xff]   ;;  %v11398_v48 = vld [vmem:[#allocation2 + $0x100] sm:$0xff]  }
  0x58   :  { %v1768_v46 = vcombine.high %v1760_v43, %v1760_v43  ;;  %v1776_v47 = vrot.slane %v1760_v43, %v12413_v37  ;;  %v12421_v49 = vrot.slane %v1753_v42, %v12413_v37  ;;  %v11399_v50 = vld [vmem:[#allocation2 + $0x1c0] sm:$0xff]   ;;  %v11401_v55 = vld [vmem:[#allocation2 + $0x148] sm:$0xff]   ;;  %v11405_v62 = vld [vmem:[#allocation2 + $0x150] sm:$0xff]  }
  0x59   :  { %v11400_v52 = vld [vmem:[#allocation2 + $0x180] sm:$0xff]   ;;  %v11402_v57 = vld [vmem:[#allocation2 + $0x108] sm:$0xff]   ;;  %v11406_v63 = vld [vmem:[#allocation2 + $0x110] sm:$0xff]  }
  0x5a   :  { %10246 = vmatpush3.bf16.msra.mxu0 %v11375_v15  ;;  %10226 = vmatpush3.bf16.msra.mxu1 %v11377_v17  ;;  %v1790_v51 = vrot.slane %v1768_v46, %v12413_v37  ;;  %v1769_v53 = vcombine.high %v12421_v49, %v12421_v49  ;;  %v1798_v54 = vcombine.high %v1776_v47, %v1776_v47  ;;  %v11403_v59 = vld [vmem:[#allocation2 + $0x1c8] sm:$0xff]   ;;  %v11407_v1 = vld [vmem:[#allocation2 + $0x1d0] sm:$0xff]   ;;  %v11409_v3 = vld [vmem:[#allocation2 + $0x158] sm:$0xff]  }
  0x5b   :  { %10247 = vmatprep.subr.bf16.mxu0 %v11378_v18  ;;  %10227 = vmatprep.subr.bf16.mxu1 %v11380_v20  ;;  %v11404_v60 = vld [vmem:[#allocation2 + $0x188] sm:$0xff]   ;;  %v11408_v2 = vld [vmem:[#allocation2 + $0x190] sm:$0xff]   ;;  %v11410_v4 = vld [vmem:[#allocation2 + $0x118] sm:$0xff]  }
  0x5c   :  { %v1800_v56 = vcombine.high %v1790_v51, %v1790_v51  ;;  %7297 = vmatprep.mubr.bf16.mxu1 %v1790_v51  ;;  %v1797_v58 = vrot.slane %v1769_v53, %v12413_v37  ;;  %v11411_v5 = vld [vmem:[#allocation2 + $0x1d8] sm:$0xff]   ;;  %v11413_v7 = vld [vmem:[#allocation2 + $0x160] sm:$0xff]   ;;  %v11417_v11 = vld [vmem:[#allocation2 + $0x168] sm:$0xff]  }
  0x5d   :  { %v11412_v6 = vld [vmem:[#allocation2 + $0x198] sm:$0xff]   ;;  %v11414_v8 = vld [vmem:[#allocation2 + $0x120] sm:$0xff]   ;;  %v11418_v12 = vld [vmem:[#allocation2 + $0x128] sm:$0xff]  }
  0x5e   :  { %10248 = vmatpush3.bf16.msra.mxu0 %v11379_v19  ;;  %10228 = vmatpush3.bf16.msra.mxu1 %v11381_v21  ;;  %v1801_v61 = vcombine.high %v1797_v58, %v1797_v58  ;;  %v11415_v9 = vld [vmem:[#allocation2 + $0x1e0] sm:$0xff]   ;;  %v11419_v13 = vld [vmem:[#allocation2 + $0x1e8] sm:$0xff]   ;;  %v11421_v15 = vld [vmem:[#allocation2 + $0x170] sm:$0xff]  }
  0x5f   :  { %10249 = vmatprep.subr.bf16.mxu0 %v11382_v22  ;;  %10229 = vmatprep.subr.bf16.mxu1 %v11384_v27  ;;  %v11416_v10 = vld [vmem:[#allocation2 + $0x1a0] sm:$0xff]   ;;  %v11420_v14 = vld [vmem:[#allocation2 + $0x1a8] sm:$0xff]   ;;  %v11422_v16 = vld [vmem:[#allocation2 + $0x130] sm:$0xff]  }
  0x60   :  { %7337 = vmatprep.mubr.bf16.mxu0 %v1800_v56  ;;  %v11423_v17 = vld [vmem:[#allocation2 + $0x1f0] sm:$0xff]   ;;  %v11425_v19 = vld [vmem:[#allocation2 + $0x178] sm:$0xff]   ;;  %v11429_v24 = vld [vmem:[#allocation2 + $0x240] sm:$0xff]  }
  0x61   :  { %v11424_v18 = vld [vmem:[#allocation2 + $0x1b0] sm:$0xff]   ;;  %v11426_v20 = vld [vmem:[#allocation2 + $0x138] sm:$0xff]   ;;  %v11430_v25 = vld [vmem:[#allocation2 + $0x200] sm:$0xff]  }
  0x62   :  { %10250 = vmatpush3.bf16.msra.mxu0 %v11383_v23  ;;  %10230 = vmatpush3.bf16.msra.mxu1 %v11385_v28  ;;  %v11427_v21 = vld [vmem:[#allocation2 + $0x1f8] sm:$0xff]   ;;  %v1783_v23 = vrot.slane %v12421_v49, %v12413_v37  ;;  %v11431_v26 = vld [vmem:[#allocation2 + $0x2c0] sm:$0xff]   ;;  %v11435_v31 = vld [vmem:[#allocation2 + $0x2c8] sm:$0xff]  }
  0x63   :  { %10251 = vmatprep.subr.bf16.mxu0 %v11386_v29  ;;  %10231 = vmatprep.subr.bf16.mxu1 %v11388_v33  ;;  %v11428_v22 = vld [vmem:[#allocation2 + $0x1b8] sm:$0xff]   ;;  %v11432_v27 = vld [vmem:[#allocation2 + $0x280] sm:$0xff]   ;;  %v11433_v29 = vld [vmem:[#allocation2 + $0x248] sm:$0xff]  }
  0x64   :  { %v1799_v28 = vcombine.high %v1783_v23, %v1783_v23  ;;  %v11436_v32 = vld [vmem:[#allocation2 + $0x288] sm:$0xff]   ;;  %v11437_v33 = vld [vmem:[#allocation2 + $0x250] sm:$0xff]   ;;  %v11444_v41 = vld [vmem:[#allocation2 + $0x298] sm:$0xff]  }
  0x65   :  { %v11445_v42 = vld [vmem:[#allocation2 + $0x260] sm:$0xff]   ;;  %v11449_v46 = vld [vmem:[#allocation2 + $0x268] sm:$0xff]   ;;  %v11454_v51 = vld [vmem:[#allocation2 + $0x230] sm:$0xff]  }
  0x66   :  { %10252 = vmatpush3.bf16.msra.mxu0 %v11387_v30  ;;  %10232 = vmatpush3.bf16.msra.mxu1 %v11389_v34  ;;  %v11434_v30 = vld [vmem:[#allocation2 + $0x208] sm:$0xff]   ;;  %v11438_v34 = vld [vmem:[#allocation2 + $0x210] sm:$0xff]   ;;  %v11446_v43 = vld [vmem:[#allocation2 + $0x220] sm:$0xff]  }
  0x67   :  { %10253 = vmatprep.subr.bf16.mxu0 %v11390_v35  ;;  %10233 = vmatprep.subr.bf16.mxu1 %v11392_v38  ;;  %v11439_v35 = vld [vmem:[#allocation2 + $0x2d0] sm:$0xff]   ;;  %v11441_v38 = vld [vmem:[#allocation2 + $0x258] sm:$0xff]   ;;  %v11452_v49 = vld [vmem:[#allocation2 + $0x2a8] sm:$0xff]  }
  0x68   :  { %v11456_v53 = vld [vmem:[#allocation2 + $0x2b0] sm:$0xff]   ;;  %v11459_v56 = vld [vmem:[#allocation2 + $0x2f8] sm:$0xff]  }
  0x6a   :  { %10254 = vmatpush3.bf16.msra.mxu0 %v11391_v36  ;;  %10234 = vmatpush3.bf16.msra.mxu1 %v11393_v39  ;;  %v11440_v36 = vld [vmem:[#allocation2 + $0x290] sm:$0xff]   ;;  %v11442_v39 = vld [vmem:[#allocation2 + $0x218] sm:$0xff]  }
  0x6b   :  { %10255 = vmatprep.subr.bf16.mxu0 %v11394_v40  ;;  %10263 = vmatprep.subr.bf16.mxu1 %v11397_v45  ;;  %v11443_v40 = vld [vmem:[#allocation2 + $0x2d8] sm:$0xff]   ;;  %v11448_v45 = vld [vmem:[#allocation2 + $0x2a0] sm:$0xff]  }
  0x6d   :  { %7298 = vmatmul.mubr.bf16.vlgmr.msra.gmra.mrb[0].mxu1 %v1776_v47  ;;  %v11450_v47 = vld [vmem:[#allocation2 + $0x228] sm:$0xff]  }
  0x6e   :  { %10256 = vmatpush3.bf16.msra.mxu0 %v11396_v44  ;;  %10264 = vmatpush3.bf16.msra.mxu1 %v11398_v48  ;;  %v11447_v44 = vld [vmem:[#allocation2 + $0x2e0] sm:$0xff]   ;;  %v11451_v48 = vld [vmem:[#allocation2 + $0x2e8] sm:$0xff]  }
  0x6f   :  { %10285 = vmatprep.subr.bf16.mxu0 %v11399_v50  ;;  %10265 = vmatprep.subr.bf16.mxu1 %v11401_v55  ;;  %v11453_v50 = vld [vmem:[#allocation2 + $0x270] sm:$0xff]   ;;  %v11458_v55 = vld [vmem:[#allocation2 + $0x238] sm:$0xff]  }
  0x70   :  { %7377 = vmatprep.mubr.bf16.mxu1 %v1797_v58 }
  0x71   :  { %7338 = vmatmul.mubr.bf16.vlgmr.msra.gmra.mrb[4].mxu0 %v1798_v54  ;;  %v11457_v54 = vld [vmem:[#allocation2 + $0x278] sm:$0xff]  }
  0x72   :  { %10286 = vmatpush3.bf16.msra.mxu0 %v11400_v52  ;;  %7417 = vmatprep.mubr.bf16.mxu0 %v1801_v61  ;;  %v11455_v52 = vld [vmem:[#allocation2 + $0x2f0] sm:$0xff]   ;;  %v11461_v61 = vld [vmem:[#allocation2 + $0x340] sm:$0xff]  }
  0x73   :  { %10287 = vmatprep.subr.bf16.mxu0 %v11403_v59  ;;  %10266 = vmatpush3.bf16.msra.mxu1 %v11402_v57  ;;  %v78_v57 = vld [vmem:[%s12688_s0 + $0x8] sm:$0xff]  ;;  %v11460_v59 = vld [vmem:[#allocation2 + $0x2b8] sm:$0xff]  }
  0x74   :  { %10267 = vmatprep.subr.bf16.mxu1 %v11405_v62  ;;  %v1809_v58 = vrot.slane %v78_v57, %v12413_v37 }
  0x76   :  { %10288 = vmatpush3.bf16.msra.mxu0 %v11404_v60  ;;  %v1802_v60 = vcombine.high %v78_v57, %v78_v57  ;;  %v1817_v62 = vcombine.high %v1809_v58, %v1809_v58  ;;  %v11509_v57 = vld [vmem:[#allocation2 + $0x498] sm:$0xff]  }
  0x77   :  { %10289 = vmatprep.subr.bf16.mxu0 %v11407_v1  ;;  %10268 = vmatpush3.bf16.msra.mxu1 %v11406_v63  ;;  %v1825_v63 = vrot.slane %v1809_v58, %v12413_v37  ;;  %v11462_v1 = vld [vmem:[#allocation2 + $0x300] sm:$0xff]  }
  0x78   :  { %10269 = vmatprep.subr.bf16.mxu1 %v11409_v3  ;;  %v11463_v3 = vld [vmem:[#allocation2 + $0x3c0] sm:$0xff]  }
  0x79   :  { %v11510_v58 = vld [vmem:[#allocation2 + $0x460] sm:$0xff]  }
  0x7a   :  { %10290 = vmatpush3.bf16.msra.mxu0 %v11408_v2  ;;  %v12435_v2 = vrot.slane %v1802_v60, %v12413_v37  ;;  %v11512_v60 = vld [vmem:[#allocation2 + $0x4e0] sm:$0xff]  }
  0x7b   :  { %10291 = vmatprep.subr.bf16.mxu0 %v11411_v5  ;;  %10270 = vmatpush3.bf16.msra.mxu1 %v11410_v4  ;;  %v1839_v4 = vrot.slane %v1817_v62, %v12413_v37  ;;  %v11464_v5 = vld [vmem:[#allocation2 + $0x380] sm:$0xff]   ;;  %v11514_v62 = vld [vmem:[#allocation2 + $0x468] sm:$0xff]  }
  0x7c   :  { %10271 = vmatprep.subr.bf16.mxu1 %v11413_v7  ;;  %v1847_v7 = vcombine.high %v1825_v63, %v1825_v63 }
  0x7e   :  { %10292 = vmatpush3.bf16.msra.mxu0 %v11412_v6  ;;  %v1818_v6 = vcombine.high %v12435_v2, %v12435_v2 }
  0x7f   :  { %10293 = vmatprep.subr.bf16.mxu0 %v11415_v9  ;;  %10272 = vmatpush3.bf16.msra.mxu1 %v11414_v8  ;;  %v11465_v8 = vld [vmem:[#allocation2 + $0x348] sm:$0xff]   ;;  %v1849_v9 = vcombine.high %v1839_v4, %v1839_v4 }
  0x80   :  { %10273 = vmatprep.subr.bf16.mxu1 %v11417_v11  ;;  %v1846_v11 = vrot.slane %v1818_v6, %v12413_v37  ;;  %v11521_v6 = vld [vmem:[#allocation2 + $0x4b0] sm:$0xff]  }
  0x82   :  { %10294 = vmatpush3.bf16.msra.mxu0 %v11416_v10  ;;  %v11466_v10 = vld [vmem:[#allocation2 + $0x308] sm:$0xff]  }
  0x83   :  { %10295 = vmatprep.subr.bf16.mxu0 %v11419_v13  ;;  %10274 = vmatpush3.bf16.msra.mxu1 %v11418_v12  ;;  %v11467_v12 = vld [vmem:[#allocation2 + $0x3c8] sm:$0xff]  }
  0x84   :  { %10275 = vmatprep.subr.bf16.mxu1 %v11421_v15  ;;  %v11468_v13 = vld [vmem:[#allocation2 + $0x388] sm:$0xff]   ;;  %v11469_v15 = vld [vmem:[#allocation2 + $0x350] sm:$0xff]  }
  0x86   :  { %10296 = vmatpush3.bf16.msra.mxu0 %v11420_v14  ;;  %v1850_v14 = vcombine.high %v1846_v11, %v1846_v11 }
  0x87   :  { %10297 = vmatprep.subr.bf16.mxu0 %v11423_v17  ;;  %10276 = vmatpush3.bf16.msra.mxu1 %v11422_v16  ;;  %v11470_v16 = vld [vmem:[#allocation2 + $0x310] sm:$0xff]  }
  0x88   :  { %10277 = vmatprep.subr.bf16.mxu1 %v11425_v19  ;;  %v11471_v17 = vld [vmem:[#allocation2 + $0x3d0] sm:$0xff]   ;;  %v11473_v19 = vld [vmem:[#allocation2 + $0x358] sm:$0xff]  }
  0x8a   :  { %10298 = vmatpush3.bf16.msra.mxu0 %v11424_v18  ;;  %v11472_v18 = vld [vmem:[#allocation2 + $0x390] sm:$0xff]  }
  0x8b   :  { %10299 = vmatprep.subr.bf16.mxu0 %v11427_v21  ;;  %10278 = vmatpush3.bf16.msra.mxu1 %v11426_v20  ;;  %v11474_v20 = vld [vmem:[#allocation2 + $0x318] sm:$0xff]  }
  0x8c   :  { %10307 = vmatprep.subr.bf16.mxu1 %v11429_v24  ;;  %v11475_v21 = vld [vmem:[#allocation2 + $0x3d8] sm:$0xff]   ;;  %v11478_v24 = vld [vmem:[#allocation2 + $0x320] sm:$0xff]  }
  0x8e   :  { %10300 = vmatpush3.bf16.msra.mxu0 %v11428_v22  ;;  %7378 = vmatmul.mubr.bf16.vlgmr.msra.gmra.mrb[4].mxu1 %v1783_v23  ;;  %v11476_v22 = vld [vmem:[#allocation2 + $0x398] sm:$0xff]   ;;  %v11477_v23 = vld [vmem:[#allocation2 + $0x360] sm:$0xff]  }
  0x8f   :  { %10329 = vmatprep.subr.bf16.mxu0 %v11431_v26  ;;  %10308 = vmatpush3.bf16.msra.mxu1 %v11430_v25  ;;  %v11479_v25 = vld [vmem:[#allocation2 + $0x3e0] sm:$0xff]  }
  0x90   :  { %10309 = vmatprep.subr.bf16.mxu1 %v11433_v29  ;;  %7457 = vmatprep.mubr.bf16.mxu1 %v1839_v4  ;;  %v11480_v26 = vld [vmem:[#allocation2 + $0x3a0] sm:$0xff]   ;;  %v11483_v29 = vld [vmem:[#allocation2 + $0x3e8] sm:$0xff]   ;;  %v11519_v4 = vld [vmem:[#allocation2 + $0x430] sm:$0xff]  }
  0x91   :  { %7418 = vmatmul.mubr.bf16.vlgmr.msra.gmra.mrb[8].mxu0 %v1799_v28  ;;  %v11482_v28 = vld [vmem:[#allocation2 + $0x328] sm:$0xff]  }
  0x92   :  { %10330 = vmatpush3.bf16.msra.mxu0 %v11432_v27  ;;  %7497 = vmatprep.mubr.bf16.mxu0 %v1849_v9  ;;  %v11481_v27 = vld [vmem:[#allocation2 + $0x368] sm:$0xff]   ;;  %v11524_v9 = vld [vmem:[#allocation2 + $0x4f8] sm:$0xff]  }
  0x93   :  { %10331 = vmatprep.subr.bf16.mxu0 %v11435_v31  ;;  %10310 = vmatpush3.bf16.msra.mxu1 %v11434_v30  ;;  %v11484_v30 = vld [vmem:[#allocation2 + $0x3a8] sm:$0xff]   ;;  %v11485_v31 = vld [vmem:[#allocation2 + $0x370] sm:$0xff]  }
  0x94   :  { %10311 = vmatprep.subr.bf16.mxu1 %v11437_v33  ;;  %v11487_v33 = vld [vmem:[#allocation2 + $0x3f0] sm:$0xff]  }
  0x96   :  { %10332 = vmatpush3.bf16.msra.mxu0 %v11436_v32  ;;  %v11486_v32 = vld [vmem:[#allocation2 + $0x330] sm:$0xff]  }
  0x97   :  { %10333 = vmatprep.subr.bf16.mxu0 %v11439_v35  ;;  %10312 = vmatpush3.bf16.msra.mxu1 %v11438_v34  ;;  %v11488_v34 = vld [vmem:[#allocation2 + $0x3b0] sm:$0xff]   ;;  %v11489_v35 = vld [vmem:[#allocation2 + $0x378] sm:$0xff]  }
  0x98   :  { %10313 = vmatprep.subr.bf16.mxu1 %v11441_v38  ;;  %v11491_v38 = vld [vmem:[#allocation2 + $0x3f8] sm:$0xff]  }
  0x9a   :  { %10334 = vmatpush3.bf16.msra.mxu0 %v11440_v36  ;;  %v11490_v36 = vld [vmem:[#allocation2 + $0x338] sm:$0xff]  }
  0x9b   :  { %10335 = vmatprep.subr.bf16.mxu0 %v11443_v40  ;;  %10314 = vmatpush3.bf16.msra.mxu1 %v11442_v39  ;;  %v11493_v39 = vld [vmem:[#allocation2 + $0x3b8] sm:$0xff]   ;;  %v1832_v40 = vrot.slane %v12435_v2, %v12413_v37  ;;  %v11517_v2 = vld [vmem:[#allocation2 + $0x4a8] sm:$0xff]  }
  0x9c   :  { %10315 = vmatprep.subr.bf16.mxu1 %v11445_v42  ;;  %v11495_v42 = vld [vmem:[#allocation2 + $0x400] sm:$0xff]  }
  0x9e   :  { %10336 = vmatpush3.bf16.msra.mxu0 %v11444_v41  ;;  %v11494_v41 = vld [vmem:[#allocation2 + $0x440] sm:$0xff]  }
  0x9f   :  { %10337 = vmatprep.subr.bf16.mxu0 %v11447_v44  ;;  %10316 = vmatpush3.bf16.msra.mxu1 %v11446_v43  ;;  %v11496_v43 = vld [vmem:[#allocation2 + $0x4c0] sm:$0xff]  }
  0xa0   :  { %10317 = vmatprep.subr.bf16.mxu1 %v11449_v46  ;;  %v11497_v44 = vld [vmem:[#allocation2 + $0x480] sm:$0xff]   ;;  %v11498_v46 = vld [vmem:[#allocation2 + $0x448] sm:$0xff]  }
  0xa2   :  { %10338 = vmatpush3.bf16.msra.mxu0 %v11448_v45  ;;  %v1848_v45 = vcombine.high %v1832_v40, %v1832_v40 }
  0xa3   :  { %10339 = vmatprep.subr.bf16.mxu0 %v11451_v48  ;;  %10318 = vmatpush3.bf16.msra.mxu1 %v11450_v47  ;;  %v11499_v47 = vld [vmem:[#allocation2 + $0x408] sm:$0xff]  }
  0xa4   :  { %10319 = vmatprep.subr.bf16.mxu1 %v11453_v50  ;;  %v11500_v48 = vld [vmem:[#allocation2 + $0x4c8] sm:$0xff]   ;;  %v11502_v50 = vld [vmem:[#allocation2 + $0x450] sm:$0xff]  }
  0xa6   :  { %10340 = vmatpush3.bf16.msra.mxu0 %v11452_v49  ;;  %v11501_v49 = vld [vmem:[#allocation2 + $0x488] sm:$0xff]  }
  0xa7   :  { %10341 = vmatprep.subr.bf16.mxu0 %v11455_v52  ;;  %10320 = vmatpush3.bf16.msra.mxu1 %v11454_v51  ;;  %v11503_v51 = vld [vmem:[#allocation2 + $0x410] sm:$0xff]  }
  0xa8   :  { %10321 = vmatprep.subr.bf16.mxu1 %v11457_v54  ;;  %v11504_v52 = vld [vmem:[#allocation2 + $0x4d0] sm:$0xff]   ;;  %v11506_v54 = vld [vmem:[#allocation2 + $0x458] sm:$0xff]  }
  0xaa   :  { %10342 = vmatpush3.bf16.msra.mxu0 %v11456_v53  ;;  %v11505_v53 = vld [vmem:[#allocation2 + $0x490] sm:$0xff]  }
  0xab   :  { %10343 = vmatprep.subr.bf16.mxu0 %v11459_v56  ;;  %10322 = vmatpush3.bf16.msra.mxu1 %v11458_v55  ;;  %v11507_v55 = vld [vmem:[#allocation2 + $0x418] sm:$0xff]  }
  0xac   :  { %10351 = vmatprep.subr.bf16.mxu1 %v11461_v61  ;;  %v11508_v56 = vld [vmem:[#allocation2 + $0x4d8] sm:$0xff]   ;;  %v11513_v61 = vld [vmem:[#allocation2 + $0x4a0] sm:$0xff]  }
  0xae   :  { %10344 = vmatpush3.bf16.msra.mxu0 %v11460_v59  ;;  %7458 = vmatmul.mubr.bf16.vlgmr.msra.gmra.mrb[8].mxu1 %v1825_v63  ;;  %v11511_v59 = vld [vmem:[#allocation2 + $0x420] sm:$0xff]   ;;  %v11515_v63 = vld [vmem:[#allocation2 + $0x428] sm:$0xff]  }
  0xaf   :  { %10373 = vmatprep.subr.bf16.mxu0 %v11463_v3  ;;  %10352 = vmatpush3.bf16.msra.mxu1 %v11462_v1  ;;  %v11516_v1 = vld [vmem:[#allocation2 + $0x4e8] sm:$0xff]   ;;  %v11518_v3 = vld [vmem:[#allocation2 + $0x470] sm:$0xff]  }
  0xb0   :  { %10353 = vmatprep.subr.bf16.mxu1 %v11465_v8  ;;  %7537 = vmatprep.mubr.bf16.mxu1 %v1846_v11  ;;  %v11523_v8 = vld [vmem:[#allocation2 + $0x438] sm:$0xff]  }
  0xb1   :  { %7498 = vmatmul.mubr.bf16.vlgmr.msra.gmra.mrb[12].mxu0 %v1847_v7  ;;  %v11522_v7 = vld [vmem:[#allocation2 + $0x478] sm:$0xff]  }
  0xb2   :  { %10374 = vmatpush3.bf16.msra.mxu0 %v11464_v5  ;;  %7577 = vmatprep.mubr.bf16.mxu0 %v1850_v14  ;;  %v11520_v5 = vld [vmem:[#allocation2 + $0x4f0] sm:$0xff]   ;;  %v11526_v14 = vld [vmem:[#allocation2 + $0x540] sm:$0xff]  }
  0xb3   :  { %10375 = vmatprep.subr.bf16.mxu0 %v11467_v12  ;;  %10354 = vmatpush3.bf16.msra.mxu1 %v11466_v10  ;;  %v79_v10 = vld [vmem:[%s12688_s0 + $0x10] sm:$0xff]  ;;  %v11525_v12 = vld [vmem:[#allocation2 + $0x4b8] sm:$0xff]  }
  0xb4   :  { %10355 = vmatprep.subr.bf16.mxu1 %v11469_v15  ;;  %v1858_v11 = vrot.slane %v79_v10, %v12413_v37 }
  0xb6   :  { %10376 = vmatpush3.bf16.msra.mxu0 %v11468_v13  ;;  %v1851_v13 = vcombine.high %v79_v10, %v79_v10  ;;  %v1866_v15 = vcombine.high %v1858_v11, %v1858_v11  ;;  %v11574_v10 = vld [vmem:[#allocation2 + $0x698] sm:$0xff]  }
  0xb7   :  { %10377 = vmatprep.subr.bf16.mxu0 %v11471_v17  ;;  %10356 = vmatpush3.bf16.msra.mxu1 %v11470_v16  ;;  %v1874_v16 = vrot.slane %v1858_v11, %v12413_v37  ;;  %v11527_v17 = vld [vmem:[#allocation2 + $0x500] sm:$0xff]  }
  0xb8   :  { %10357 = vmatprep.subr.bf16.mxu1 %v11473_v19  ;;  %v11528_v19 = vld [vmem:[#allocation2 + $0x5c0] sm:$0xff]  }
  0xb9   :  { %v11575_v11 = vld [vmem:[#allocation2 + $0x660] sm:$0xff]  }
  0xba   :  { %10378 = vmatpush3.bf16.msra.mxu0 %v11472_v18  ;;  %v12449_v18 = vrot.slane %v1851_v13, %v12413_v37  ;;  %v11577_v13 = vld [vmem:[#allocation2 + $0x6e0] sm:$0xff]  }
  0xbb   :  { %10379 = vmatprep.subr.bf16.mxu0 %v11475_v21  ;;  %10358 = vmatpush3.bf16.msra.mxu1 %v11474_v20  ;;  %v1888_v20 = vrot.slane %v1866_v15, %v12413_v37  ;;  %v11529_v21 = vld [vmem:[#allocation2 + $0x580] sm:$0xff]   ;;  %v11579_v15 = vld [vmem:[#allocation2 + $0x668] sm:$0xff]  }
  0xbc   :  { %10359 = vmatprep.subr.bf16.mxu1 %v11477_v23  ;;  %v1896_v23 = vcombine.high %v1874_v16, %v1874_v16 }
  0xbe   :  { %10380 = vmatpush3.bf16.msra.mxu0 %v11476_v22  ;;  %v1867_v22 = vcombine.high %v12449_v18, %v12449_v18 }
  0xbf   :  { %10381 = vmatprep.subr.bf16.mxu0 %v11479_v25  ;;  %10360 = vmatpush3.bf16.msra.mxu1 %v11478_v24  ;;  %v11530_v24 = vld [vmem:[#allocation2 + $0x548] sm:$0xff]   ;;  %v1898_v25 = vcombine.high %v1888_v20, %v1888_v20 }
  0xc0   :  { %10361 = vmatprep.subr.bf16.mxu1 %v11481_v27  ;;  %v1895_v27 = vrot.slane %v1867_v22, %v12413_v37  ;;  %v11583_v22 = vld [vmem:[#allocation2 + $0x670] sm:$0xff]  }
  0xc2   :  { %10382 = vmatpush3.bf16.msra.mxu0 %v11480_v26  ;;  %v11531_v26 = vld [vmem:[#allocation2 + $0x508] sm:$0xff]  }
  0xc3   :  { %10383 = vmatprep.subr.bf16.mxu0 %v11483_v29  ;;  %10362 = vmatpush3.bf16.msra.mxu1 %v11482_v28  ;;  %v11532_v28 = vld [vmem:[#allocation2 + $0x5c8] sm:$0xff]  }
  0xc4   :  { %10363 = vmatprep.subr.bf16.mxu1 %v11485_v31  ;;  %v11533_v29 = vld [vmem:[#allocation2 + $0x588] sm:$0xff]   ;;  %v11534_v31 = vld [vmem:[#allocation2 + $0x550] sm:$0xff]  }
  0xc6   :  { %10384 = vmatpush3.bf16.msra.mxu0 %v11484_v30  ;;  %v1899_v30 = vcombine.high %v1895_v27, %v1895_v27 }
  0xc7   :  { %10385 = vmatprep.subr.bf16.mxu0 %v11487_v33  ;;  %10364 = vmatpush3.bf16.msra.mxu1 %v11486_v32  ;;  %v11535_v32 = vld [vmem:[#allocation2 + $0x510] sm:$0xff]  }
  0xc8   :  { %10365 = vmatprep.subr.bf16.mxu1 %v11489_v35  ;;  %v11536_v33 = vld [vmem:[#allocation2 + $0x5d0] sm:$0xff]   ;;  %v11538_v35 = vld [vmem:[#allocation2 + $0x558] sm:$0xff]  }
  0xca   :  { %10386 = vmatpush3.bf16.msra.mxu0 %v11488_v34  ;;  %v11537_v34 = vld [vmem:[#allocation2 + $0x590] sm:$0xff]  }
  0xcb   :  { %10387 = vmatprep.subr.bf16.mxu0 %v11491_v38  ;;  %10366 = vmatpush3.bf16.msra.mxu1 %v11490_v36  ;;  %v11539_v36 = vld [vmem:[#allocation2 + $0x518] sm:$0xff]  }
  0xcc   :  { %10395 = vmatprep.subr.bf16.mxu1 %v11494_v41  ;;  %v11540_v38 = vld [vmem:[#allocation2 + $0x5d8] sm:$0xff]   ;;  %v11543_v41 = vld [vmem:[#allocation2 + $0x520] sm:$0xff]  }
  0xce   :  { %10388 = vmatpush3.bf16.msra.mxu0 %v11493_v39  ;;  %7538 = vmatmul.mubr.bf16.vlgmr.msra.gmra.mrb[12].mxu1 %v1832_v40  ;;  %v11541_v39 = vld [vmem:[#allocation2 + $0x598] sm:$0xff]   ;;  %v11542_v40 = vld [vmem:[#allocation2 + $0x560] sm:$0xff]  }
  0xcf   :  { %10417 = vmatprep.subr.bf16.mxu0 %v11496_v43  ;;  %10396 = vmatpush3.bf16.msra.mxu1 %v11495_v42  ;;  %v11544_v42 = vld [vmem:[#allocation2 + $0x5e0] sm:$0xff]  }
  0xd0   :  { %10397 = vmatprep.subr.bf16.mxu1 %v11498_v46  ;;  %7617 = vmatprep.mubr.bf16.mxu1 %v1888_v20  ;;  %v11545_v43 = vld [vmem:[#allocation2 + $0x5a0] sm:$0xff]   ;;  %v11548_v46 = vld [vmem:[#allocation2 + $0x5e8] sm:$0xff]  }
  0xd1   :  { %7578 = vmatmul.mubr.bf16.vlgmr.msra.gmra.mrb[16].mxu0 %v1848_v45  ;;  %v11547_v45 = vld [vmem:[#allocation2 + $0x528] sm:$0xff]  }
  0xd2   :  { %10418 = vmatpush3.bf16.msra.mxu0 %v11497_v44  ;;  %7657 = vmatprep.mubr.bf16.mxu0 %v1898_v25  ;;  %v11546_v44 = vld [vmem:[#allocation2 + $0x568] sm:$0xff]   ;;  %v11585_v25 = vld [vmem:[#allocation2 + $0x6f0] sm:$0xff]  }
  0xd3   :  { %10419 = vmatprep.subr.bf16.mxu0 %v11500_v48  ;;  %10398 = vmatpush3.bf16.msra.mxu1 %v11499_v47  ;;  %v11549_v47 = vld [vmem:[#allocation2 + $0x5a8] sm:$0xff]   ;;  %v11550_v48 = vld [vmem:[#allocation2 + $0x570] sm:$0xff]  }
  0xd4   :  { %10399 = vmatprep.subr.bf16.mxu1 %v11502_v50  ;;  %v11552_v50 = vld [vmem:[#allocation2 + $0x5f0] sm:$0xff]   ;;  %v11582_v20 = vld [vmem:[#allocation2 + $0x6a8] sm:$0xff]  }
  0xd6   :  { %10420 = vmatpush3.bf16.msra.mxu0 %v11501_v49  ;;  %v11551_v49 = vld [vmem:[#allocation2 + $0x530] sm:$0xff]  }
  0xd7   :  { %10421 = vmatprep.subr.bf16.mxu0 %v11504_v52  ;;  %10400 = vmatpush3.bf16.msra.mxu1 %v11503_v51  ;;  %v11553_v51 = vld [vmem:[#allocation2 + $0x5b0] sm:$0xff]   ;;  %v11554_v52 = vld [vmem:[#allocation2 + $0x578] sm:$0xff]  }
  0xd8   :  { %10401 = vmatprep.subr.bf16.mxu1 %v11506_v54  ;;  %v11556_v54 = vld [vmem:[#allocation2 + $0x5f8] sm:$0xff]  }
  0xda   :  { %10422 = vmatpush3.bf16.msra.mxu0 %v11505_v53  ;;  %v11555_v53 = vld [vmem:[#allocation2 + $0x538] sm:$0xff]  }
  0xdb   :  { %10423 = vmatprep.subr.bf16.mxu0 %v11508_v56  ;;  %10402 = vmatpush3.bf16.msra.mxu1 %v11507_v55  ;;  %v11558_v55 = vld [vmem:[#allocation2 + $0x5b8] sm:$0xff]   ;;  %v1881_v56 = vrot.slane %v12449_v18, %v12413_v37  ;;  %v11581_v18 = vld [vmem:[#allocation2 + $0x6e8] sm:$0xff]  }
  0xdc   :  { %10403 = vmatprep.subr.bf16.mxu1 %v11510_v58  ;;  %v11560_v58 = vld [vmem:[#allocation2 + $0x600] sm:$0xff]  }
  0xde   :  { %10424 = vmatpush3.bf16.msra.mxu0 %v11509_v57  ;;  %v11559_v57 = vld [vmem:[#allocation2 + $0x640] sm:$0xff]  }
  0xdf   :  { %10425 = vmatprep.subr.bf16.mxu0 %v11512_v60  ;;  %10404 = vmatpush3.bf16.msra.mxu1 %v11511_v59  ;;  %v11561_v59 = vld [vmem:[#allocation2 + $0x6c0] sm:$0xff]  }
  0xe0   :  { %10405 = vmatprep.subr.bf16.mxu1 %v11514_v62  ;;  %v11562_v60 = vld [vmem:[#allocation2 + $0x680] sm:$0xff]   ;;  %v11563_v62 = vld [vmem:[#allocation2 + $0x648] sm:$0xff]  }
  0xe2   :  { %10426 = vmatpush3.bf16.msra.mxu0 %v11513_v61  ;;  %v1897_v61 = vcombine.high %v1881_v56, %v1881_v56 }
  0xe3   :  { %10427 = vmatprep.subr.bf16.mxu0 %v11516_v1  ;;  %10406 = vmatpush3.bf16.msra.mxu1 %v11515_v63  ;;  %v11564_v63 = vld [vmem:[#allocation2 + $0x608] sm:$0xff]  }
  0xe4   :  { %10407 = vmatprep.subr.bf16.mxu1 %v11518_v3  ;;  %v11565_v1 = vld [vmem:[#allocation2 + $0x6c8] sm:$0xff]   ;;  %v11567_v3 = vld [vmem:[#allocation2 + $0x650] sm:$0xff]  }
  0xe6   :  { %10428 = vmatpush3.bf16.msra.mxu0 %v11517_v2  ;;  %v11566_v2 = vld [vmem:[#allocation2 + $0x688] sm:$0xff]  }
  0xe7   :  { %10429 = vmatprep.subr.bf16.mxu0 %v11520_v5  ;;  %10408 = vmatpush3.bf16.msra.mxu1 %v11519_v4  ;;  %v11568_v4 = vld [vmem:[#allocation2 + $0x610] sm:$0xff]  }
  0xe8   :  { %10409 = vmatprep.subr.bf16.mxu1 %v11522_v7  ;;  %v11569_v5 = vld [vmem:[#allocation2 + $0x6d0] sm:$0xff]   ;;  %v11571_v7 = vld [vmem:[#allocation2 + $0x658] sm:$0xff]  }
  0xea   :  { %10430 = vmatpush3.bf16.msra.mxu0 %v11521_v6  ;;  %v11570_v6 = vld [vmem:[#allocation2 + $0x690] sm:$0xff]  }
  0xeb   :  { %10431 = vmatprep.subr.bf16.mxu0 %v11524_v9  ;;  %10410 = vmatpush3.bf16.msra.mxu1 %v11523_v8  ;;  %v11572_v8 = vld [vmem:[#allocation2 + $0x618] sm:$0xff]  }
  0xec   :  { %10439 = vmatprep.subr.bf16.mxu1 %v11526_v14  ;;  %v11573_v9 = vld [vmem:[#allocation2 + $0x6d8] sm:$0xff]   ;;  %v11578_v14 = vld [vmem:[#allocation2 + $0x6a0] sm:$0xff]  }
  0xee   :  { %10432 = vmatpush3.bf16.msra.mxu0 %v11525_v12  ;;  %7618 = vmatmul.mubr.bf16.vlgmr.msra.gmra.mrb[16].mxu1 %v1874_v16  ;;  %v11576_v12 = vld [vmem:[#allocation2 + $0x620] sm:$0xff]   ;;  %v11580_v16 = vld [vmem:[#allocation2 + $0x628] sm:$0xff]  }
  0xef   :  { %10461 = vmatprep.subr.bf16.mxu0 %v11528_v19  ;;  %10440 = vmatpush3.bf16.msra.mxu1 %v11527_v17 }
  0xf0   :  { %10441 = vmatprep.subr.bf16.mxu1 %v11530_v24  ;;  %7697 = vmatprep.mubr.bf16.mxu1 %v1895_v27  ;;  %v11584_v24 = vld [vmem:[#allocation2 + $0x630] sm:$0xff]   ;;  %v11587_v27 = vld [vmem:[#allocation2 + $0x678] sm:$0xff]  }
  0xf1   :  { %7658 = vmatmul.mubr.bf16.vlgmr.msra.gmra.mrb[20].mxu0 %v1896_v23 }
  0xf2   :  { %10462 = vmatpush3.bf16.msra.mxu0 %v11529_v21  ;;  %7737 = vmatprep.mubr.bf16.mxu0 %v1899_v30  ;;  %v80_v30 = vld [vmem:[%s12688_s0 + $0x18] sm:$0xff] }
  0xf3   :  { %10463 = vmatprep.subr.bf16.mxu0 %v11532_v28  ;;  %10442 = vmatpush3.bf16.msra.mxu1 %v11531_v26  ;;  %v11586_v26 = vld [vmem:[#allocation2 + $0x6b0] sm:$0xff]   ;;  %v11588_v28 = vld [vmem:[#allocation2 + $0x638] sm:$0xff]  }
  0xf4   :  { %10443 = vmatprep.subr.bf16.mxu1 %v11534_v31  ;;  %v1907_v31 = vrot.slane %v80_v30, %v12413_v37 }
  0xf6   :  { %10464 = vmatpush3.bf16.msra.mxu0 %v11533_v29  ;;  %v11589_v29 = vld [vmem:[#allocation2 + $0x6f8] sm:$0xff]  }
  0xf7   :  { %10465 = vmatprep.subr.bf16.mxu0 %v11536_v33  ;;  %10444 = vmatpush3.bf16.msra.mxu1 %v11535_v32  ;;  %v11590_v32 = vld [vmem:[#allocation2 + $0x6b8] sm:$0xff]   ;;  %v1900_v33 = vcombine.high %v80_v30, %v80_v30  ;;  %v11627_v30 = vld [vmem:[#allocation2 + $0x880] sm:$0xff]  }
  0xf8   :  { %10445 = vmatprep.subr.bf16.mxu1 %v11538_v35  ;;  %v1915_v35 = vcombine.high %v1907_v31, %v1907_v31 }
  0xfa   :  { %10466 = vmatpush3.bf16.msra.mxu0 %v11537_v34  ;;  %v11591_v34 = vld [vmem:[#allocation2 + $0x740] sm:$0xff]  }
  0xfb   :  { %10467 = vmatprep.subr.bf16.mxu0 %v11540_v38  ;;  %10446 = vmatpush3.bf16.msra.mxu1 %v11539_v36  ;;  %v1923_v36 = vrot.slane %v1907_v31, %v12413_v37  ;;  %v11592_v38 = vld [vmem:[#allocation2 + $0x700] sm:$0xff]   ;;  %v11628_v31 = vld [vmem:[#allocation2 + $0x848] sm:$0xff]  }
  0xfc   :  { %10447 = vmatprep.subr.bf16.mxu1 %v11542_v40  ;;  %v11593_v40 = vld [vmem:[#allocation2 + $0x7c0] sm:$0xff]  }
  0xfe   :  { %10468 = vmatpush3.bf16.msra.mxu0 %v11541_v39  ;;  %v12465_v39 = vrot.slane %v1900_v33, %v12413_v37  ;;  %v11630_v33 = vld [vmem:[#allocation2 + $0x8c8] sm:$0xff]  }
  0xff   :  { %10469 = vmatprep.subr.bf16.mxu0 %v11544_v42  ;;  %10448 = vmatpush3.bf16.msra.mxu1 %v11543_v41  ;;  %v1937_v41 = vrot.slane %v1915_v35, %v12413_v37  ;;  %v11594_v42 = vld [vmem:[#allocation2 + $0x780] sm:$0xff]   ;;  %v11632_v35 = vld [vmem:[#allocation2 + $0x850] sm:$0xff]  }
 0x100   :  { %10449 = vmatprep.subr.bf16.mxu1 %v11546_v44  ;;  %v1945_v44 = vcombine.high %v1923_v36, %v1923_v36 }
 0x102   :  { %10470 = vmatpush3.bf16.msra.mxu0 %v11545_v43  ;;  %v1916_v43 = vcombine.high %v12465_v39, %v12465_v39 }
 0x103   :  { %10471 = vmatprep.subr.bf16.mxu0 %v11548_v46  ;;  %10450 = vmatpush3.bf16.msra.mxu1 %v11547_v45  ;;  %v11595_v45 = vld [vmem:[#allocation2 + $0x748] sm:$0xff]   ;;  %v1947_v46 = vcombine.high %v1937_v41, %v1937_v41 }
 0x104   :  { %10451 = vmatprep.subr.bf16.mxu1 %v11550_v48  ;;  %v1944_v48 = vrot.slane %v1916_v43, %v12413_v37  ;;  %v11639_v43 = vld [vmem:[#allocation2 + $0x898] sm:$0xff]  }
 0x106   :  { %10472 = vmatpush3.bf16.msra.mxu0 %v11549_v47  ;;  %v11596_v47 = vld [vmem:[#allocation2 + $0x708] sm:$0xff]  }
 0x107   :  { %10473 = vmatprep.subr.bf16.mxu0 %v11552_v50  ;;  %10452 = vmatpush3.bf16.msra.mxu1 %v11551_v49  ;;  %v11597_v49 = vld [vmem:[#allocation2 + $0x7c8] sm:$0xff]  }
 0x108   :  { %10453 = vmatprep.subr.bf16.mxu1 %v11554_v52  ;;  %v11598_v50 = vld [vmem:[#allocation2 + $0x788] sm:$0xff]   ;;  %v11599_v52 = vld [vmem:[#allocation2 + $0x750] sm:$0xff]  }
 0x10a   :  { %10474 = vmatpush3.bf16.msra.mxu0 %v11553_v51  ;;  %v1948_v51 = vcombine.high %v1944_v48, %v1944_v48 }
 0x10b   :  { %10475 = vmatprep.subr.bf16.mxu0 %v11556_v54  ;;  %10454 = vmatpush3.bf16.msra.mxu1 %v11555_v53  ;;  %v11600_v53 = vld [vmem:[#allocation2 + $0x710] sm:$0xff]  }
 0x10c   :  { %10483 = vmatprep.subr.bf16.mxu1 %v11559_v57  ;;  %v11601_v54 = vld [vmem:[#allocation2 + $0x7d0] sm:$0xff]   ;;  %v11604_v57 = vld [vmem:[#allocation2 + $0x718] sm:$0xff]  }
 0x10e   :  { %10476 = vmatpush3.bf16.msra.mxu0 %v11558_v55  ;;  %7698 = vmatmul.mubr.bf16.vlgmr.msra.gmra.mrb[20].mxu1 %v1881_v56  ;;  %v11602_v55 = vld [vmem:[#allocation2 + $0x790] sm:$0xff]   ;;  %v11603_v56 = vld [vmem:[#allocation2 + $0x758] sm:$0xff]  }
 0x10f   :  { %10505 = vmatprep.subr.bf16.mxu0 %v11561_v59  ;;  %10484 = vmatpush3.bf16.msra.mxu1 %v11560_v58  ;;  %v11605_v58 = vld [vmem:[#allocation2 + $0x7d8] sm:$0xff]  }
 0x110   :  { %10485 = vmatprep.subr.bf16.mxu1 %v11563_v62  ;;  %7777 = vmatprep.mubr.bf16.mxu1 %v1937_v41  ;;  %v11606_v59 = vld [vmem:[#allocation2 + $0x798] sm:$0xff]   ;;  %v11609_v62 = vld [vmem:[#allocation2 + $0x7e0] sm:$0xff]  }
 0x111   :  { %7738 = vmatmul.mubr.bf16.vlgmr.msra.gmra.mrb[24].mxu0 %v1897_v61  ;;  %v11608_v61 = vld [vmem:[#allocation2 + $0x720] sm:$0xff]   ;;  %v11637_v41 = vld [vmem:[#allocation2 + $0x818] sm:$0xff]  }
 0x112   :  { %10506 = vmatpush3.bf16.msra.mxu0 %v11562_v60  ;;  %7817 = vmatprep.mubr.bf16.mxu0 %v1947_v46  ;;  %v11607_v60 = vld [vmem:[#allocation2 + $0x760] sm:$0xff]  }
 0x113   :  { %10507 = vmatprep.subr.bf16.mxu0 %v11565_v1  ;;  %10486 = vmatpush3.bf16.msra.mxu1 %v11564_v63  ;;  %v11610_v63 = vld [vmem:[#allocation2 + $0x7a0] sm:$0xff]   ;;  %v11611_v1 = vld [vmem:[#allocation2 + $0x768] sm:$0xff]  }
 0x114   :  { %10487 = vmatprep.subr.bf16.mxu1 %v11567_v3  ;;  %v11613_v3 = vld [vmem:[#allocation2 + $0x7e8] sm:$0xff]   ;;  %v11642_v46 = vld [vmem:[#allocation2 + $0x8e0] sm:$0xff]  }
 0x116   :  { %10508 = vmatpush3.bf16.msra.mxu0 %v11566_v2  ;;  %v11612_v2 = vld [vmem:[#allocation2 + $0x728] sm:$0xff]  }
 0x117   :  { %10509 = vmatprep.subr.bf16.mxu0 %v11569_v5  ;;  %10488 = vmatpush3.bf16.msra.mxu1 %v11568_v4  ;;  %v11614_v4 = vld [vmem:[#allocation2 + $0x7a8] sm:$0xff]  }
 0x118   :  { %10489 = vmatprep.subr.bf16.mxu1 %v11571_v7 }
 0x11a   :  { %10510 = vmatpush3.bf16.msra.mxu0 %v11570_v6  ;;  %v11615_v6 = vld [vmem:[#allocation2 + $0x770] sm:$0xff]  }
 0x11b   :  { %10511 = vmatprep.subr.bf16.mxu0 %v11573_v9  ;;  %10490 = vmatpush3.bf16.msra.mxu1 %v11572_v8  ;;  %v11616_v8 = vld [vmem:[#allocation2 + $0x730] sm:$0xff]  }
 0x11c   :  { %10491 = vmatprep.subr.bf16.mxu1 %v11575_v11 }
 0x11e   :  { %10512 = vmatpush3.bf16.msra.mxu0 %v11574_v10 }
 0x11f   :  { %10513 = vmatprep.subr.bf16.mxu0 %v11577_v13  ;;  %10492 = vmatpush3.bf16.msra.mxu1 %v11576_v12 }
 0x120   :  { %10493 = vmatprep.subr.bf16.mxu1 %v11579_v15  ;;  %v11618_v15 = vld [vmem:[#allocation2 + $0x7b0] sm:$0xff]  }
 0x122   :  { %10514 = vmatpush3.bf16.msra.mxu0 %v11578_v14  ;;  %v11617_v14 = vld [vmem:[#allocation2 + $0x7f0] sm:$0xff]  }
 0x123   :  { %10515 = vmatprep.subr.bf16.mxu0 %v11581_v18  ;;  %10494 = vmatpush3.bf16.msra.mxu1 %v11580_v16 }
 0x124   :  { %v12457_v17 = vpop.f32.mrb[0].mxu0  ;;  %10495 = vmatprep.subr.bf16.mxu1 %v11583_v22  ;;  %v11620_v22 = vld [vmem:[#allocation2 + $0x738] sm:$0xff]  }
 0x125   :  { %v11332_v19 = vpop.f32.mrb[1].mxu0 }
 0x126   :  { %v1737_v21 = vpop.f32.mrb[2].mxu0  ;;  %10516 = vmatpush3.bf16.msra.mxu0 %v11582_v20  ;;  %v11619_v20 = vld [vmem:[#allocation2 + $0x778] sm:$0xff]  }
 0x127   :  { %v11333_v23 = vpop.f32.mrb[3].mxu0  ;;  %10517 = vmatprep.subr.bf16.mxu0 %v11585_v25  ;;  %10496 = vmatpush3.bf16.msra.mxu1 %v11584_v24  ;;  %v11621_v24 = vld [vmem:[#allocation2 + $0x7f8] sm:$0xff]  }
 0x128   :  { %10497 = vmatprep.subr.bf16.mxu1 %v11587_v27  ;;  %v11623_v25 = vld [vmem:[#allocation2 + $0x7b8] sm:$0xff]   ;;  %v11624_v27 = vld [vmem:[#allocation2 + $0x840] sm:$0xff]  }
 0x12a   :  { %10518 = vmatpush3.bf16.msra.mxu0 %v11586_v26  ;;  %v1930_v26 = vrot.slane %v12465_v39, %v12413_v37  ;;  %v11635_v39 = vld [vmem:[#allocation2 + $0x890] sm:$0xff]  }
 0x12b   :  { %10519 = vmatprep.subr.bf16.mxu0 %v11589_v29  ;;  %10498 = vmatpush3.bf16.msra.mxu1 %v11588_v28  ;;  %v11626_v28 = vld [vmem:[#allocation2 + $0x8c0] sm:$0xff]  }
 0x12c   :  { %10527 = vmatprep.subr.bf16.mxu1 %v11591_v34  ;;  %v1946_v29 = vcombine.high %v1930_v26, %v1930_v26  ;;  %v11631_v34 = vld [vmem:[#allocation2 + $0x888] sm:$0xff]  }
 0x12e   :  { %10520 = vmatpush3.bf16.msra.mxu0 %v11590_v32  ;;  %7778 = vmatmul.mubr.bf16.vlgmr.msra.gmra.mrb[24].mxu1 %v1923_v36  ;;  %v11629_v32 = vld [vmem:[#allocation2 + $0x808] sm:$0xff]   ;;  %v11633_v36 = vld [vmem:[#allocation2 + $0x810] sm:$0xff]  }
 0x12f   :  { %10549 = vmatprep.subr.bf16.mxu0 %v11593_v40  ;;  %10528 = vmatpush3.bf16.msra.mxu1 %v11592_v38  ;;  %v11634_v38 = vld [vmem:[#allocation2 + $0x8d0] sm:$0xff]   ;;  %v11636_v40 = vld [vmem:[#allocation2 + $0x858] sm:$0xff]  }
 0x130   :  { %10529 = vmatprep.subr.bf16.mxu1 %v11595_v45  ;;  %7857 = vmatprep.mubr.bf16.mxu1 %v1944_v48  ;;  %v11641_v45 = vld [vmem:[#allocation2 + $0x820] sm:$0xff]   ;;  %v11644_v48 = vld [vmem:[#allocation2 + $0x868] sm:$0xff]  }
 0x131   :  { %7818 = vmatmul.mubr.bf16.vlgmr.msra.gmra.mrb[28].mxu0 %v1945_v44  ;;  %v11640_v44 = vld [vmem:[#allocation2 + $0x860] sm:$0xff]  }
 0x132   :  { %10550 = vmatpush3.bf16.msra.mxu0 %v11594_v42  ;;  %7897 = vmatprep.mubr.bf16.mxu0 %v1948_v51  ;;  %v11638_v42 = vld [vmem:[#allocation2 + $0x8d8] sm:$0xff]  }
 0x133   :  { %10551 = vmatprep.subr.bf16.mxu0 %v11597_v49  ;;  %10530 = vmatpush3.bf16.msra.mxu1 %v11596_v47  ;;  %v11643_v47 = vld [vmem:[#allocation2 + $0x8a0] sm:$0xff]   ;;  %v11645_v49 = vld [vmem:[#allocation2 + $0x828] sm:$0xff]  }
 0x134   :  { %10531 = vmatprep.subr.bf16.mxu1 %v11599_v52  ;;  %v11647_v52 = vld [vmem:[#allocation2 + $0x8a8] sm:$0xff]  }
 0x136   :  { %10552 = vmatpush3.bf16.msra.mxu0 %v11598_v50  ;;  %v11646_v50 = vld [vmem:[#allocation2 + $0x8e8] sm:$0xff]  }
 0x137   :  { %10553 = vmatprep.subr.bf16.mxu0 %v11601_v54  ;;  %10532 = vmatpush3.bf16.msra.mxu1 %v11600_v53  ;;  %v11648_v54 = vld [vmem:[#allocation2 + $0x870] sm:$0xff]  }
 0x138   :  { %10533 = vmatprep.subr.bf16.mxu1 %v11603_v56 }
 0x13a   :  { %10554 = vmatpush3.bf16.msra.mxu0 %v11602_v55 }
 0x13b   :  { %10555 = vmatprep.subr.bf16.mxu0 %v11605_v58  ;;  %10534 = vmatpush3.bf16.msra.mxu1 %v11604_v57  ;;  %v11649_v58 = vld [vmem:[#allocation2 + $0x830] sm:$0xff]  }
 0x13c   :  { %10535 = vmatprep.subr.bf16.mxu1 %v11607_v60 }
 0x13e   :  { %10556 = vmatpush3.bf16.msra.mxu0 %v11606_v59  ;;  %v11650_v59 = vld [vmem:[#allocation2 + $0x8f0] sm:$0xff]  }
 0x13f   :  { %10557 = vmatprep.subr.bf16.mxu0 %v11609_v62  ;;  %10536 = vmatpush3.bf16.msra.mxu1 %v11608_v61 }
 0x140   :  { %v10235_v5 = vpop.f32.mrb[0].mxu1  ;;  %10537 = vmatprep.subr.bf16.mxu1 %v11611_v1 }
 0x141   :  { %v10236_v7 = vpop.f32.mrb[1].mxu1 }
 0x142   :  { %10558 = vmatpush3.bf16.msra.mxu0 %v11610_v63  ;;  %v10237_v9 = vadd.f32 %v10236_v7, %v10235_v5  ;;  %v10238_v10 = vpop.f32.mrb[2].mxu1  ;;  %v11654_v7 = vld [vmem:[#allocation2 + $0x8f8] sm:$0xff]  }
 0x143   :  { %10559 = vmatprep.subr.bf16.mxu0 %v11613_v3  ;;  %10538 = vmatpush3.bf16.msra.mxu1 %v11612_v2  ;;  %v10239_v12 = vpop.f32.mrb[3].mxu1  ;;  %v11651_v2 = vld [vmem:[#allocation2 + $0x8b0] sm:$0xff]   ;;  %v11655_v10 = vld [vmem:[#allocation2 + $0x8b8] sm:$0xff]  }
 0x144   :  { %v10257_v11 = vpop.f32.mrb[4].mxu0  ;;  %v7300_v16 = vadd.f32 %v10237_v9, %v12457_v17  ;;  %10539 = vmatprep.subr.bf16.mxu1 %v11615_v6  ;;  %v11625_v17 = vld [vmem:[#allocation2 + $0x800] sm:$0xff]   ;;  %v11653_v6 = vld [vmem:[#allocation2 + $0x838] sm:$0xff]  }
 0x145   :  { %v10258_v13 = vpop.f32.mrb[5].mxu0  ;;  %v11656_v12 = vld [vmem:[#allocation2 + $0x940] sm:$0xff]  }
 0x146   :  { %v10259_v18 = vadd.f32 %v10258_v13, %v10257_v11  ;;  %v10260_v19 = vpop.f32.mrb[6].mxu0  ;;  %10560 = vmatpush3.bf16.msra.mxu0 %v11614_v4  ;;  %v11652_v4 = vld [vmem:[#allocation2 + $0x878] sm:$0xff]  }
 0x147   :  { %v10261_v21 = vpop.f32.mrb[7].mxu0  ;;  %10561 = vmatprep.subr.bf16.mxu0 %v11617_v14  ;;  %10540 = vmatpush3.bf16.msra.mxu1 %v11616_v8  ;;  %v81_v8 = vld [vmem:[%s12688_s0 + $0x20] sm:$0xff] }
 0x148   :  { %v12472_v23 = vadd.f32 %v10259_v18, %v7300_v16  ;;  %10541 = vmatprep.subr.bf16.mxu1 %v11619_v20  ;;  %v1956_v9 = vrot.slane %v81_v8, %v12413_v37  ;;  %v1949_v11 = vcombine.high %v81_v8, %v81_v8  ;;  %v11658_v18 = vld [vmem:[#allocation2 + $0x9c0] sm:$0xff]  }
 0x149   :  { %v11659_v20 = vld [vmem:[#allocation2 + $0x980] sm:$0xff]  }
 0x14a   :  { %10562 = vmatpush3.bf16.msra.mxu0 %v11618_v15  ;;  %v1964_v13 = vcombine.high %v1956_v9, %v1956_v9  ;;  %v1972_v14 = vrot.slane %v1956_v9, %v12413_v37  ;;  %v11657_v15 = vld [vmem:[#allocation2 + $0x900] sm:$0xff]   ;;  %v12485_v16 = vrot.slane %v1949_v11, %v12413_v37  ;;  %v11693_v9 = vld [vmem:[#allocation2 + $0xa48] sm:$0xff]  }
 0x14b   :  { %10563 = vmatprep.subr.bf16.mxu0 %v11621_v24  ;;  %10542 = vmatpush3.bf16.msra.mxu1 %v11620_v22  ;;  %v11692_v8 = vld [vmem:[#allocation2 + $0xa80] sm:$0xff]   ;;  %v11695_v11 = vld [vmem:[#allocation2 + $0xac8] sm:$0xff]  }
 0x14c   :  { %10571 = vmatprep.subr.bf16.mxu1 %v11624_v27  ;;  %v1986_v19 = vrot.slane %v1964_v13, %v12413_v37  ;;  %v1965_v21 = vcombine.high %v12485_v16, %v12485_v16  ;;  %v1994_v22 = vcombine.high %v1972_v14, %v1972_v14  ;;  %v11662_v27 = vld [vmem:[#allocation2 + $0x9c8] sm:$0xff]   ;;  %v11697_v13 = vld [vmem:[#allocation2 + $0xa50] sm:$0xff]  }
 0x14e   :  { %10564 = vmatpush3.bf16.msra.mxu0 %v11623_v25  ;;  %7858 = vmatmul.mubr.bf16.vlgmr.msra.gmra.mrb[28].mxu1 %v1930_v26  ;;  %v1996_v24 = vcombine.high %v1986_v19, %v1986_v19  ;;  %v11661_v25 = vld [vmem:[#allocation2 + $0x908] sm:$0xff]   ;;  %v1993_v26 = vrot.slane %v1965_v21, %v12413_v37  ;;  %v11704_v21 = vld [vmem:[#allocation2 + $0xa98] sm:$0xff]  }
 0x14f   :  { %10593 = vmatprep.subr.bf16.mxu0 %v11626_v28  ;;  %10572 = vmatpush3.bf16.msra.mxu1 %v11625_v17  ;;  %v11663_v17 = vld [vmem:[#allocation2 + $0x988] sm:$0xff]  }
 0x150   :  { %10573 = vmatprep.subr.bf16.mxu1 %v11628_v31  ;;  %7937 = vmatprep.mubr.bf16.mxu1 %v1986_v19  ;;  %v1997_v28 = vcombine.high %v1993_v26, %v1993_v26  ;;  %v11666_v31 = vld [vmem:[#allocation2 + $0x9d0] sm:$0xff]   ;;  %v11702_v19 = vld [vmem:[#allocation2 + $0xa18] sm:$0xff]  }
 0x151   :  { %7898 = vmatmul.mubr.bf16.vlgmr.msra.gmra.mrb[32].mxu0 %v1946_v29  ;;  %v11664_v29 = vld [vmem:[#allocation2 + $0x950] sm:$0xff]  }
 0x152   :  { %10594 = vmatpush3.bf16.msra.mxu0 %v11627_v30  ;;  %7977 = vmatprep.mubr.bf16.mxu0 %v1996_v24  ;;  %v11665_v30 = vld [vmem:[#allocation2 + $0x910] sm:$0xff]   ;;  %v11707_v24 = vld [vmem:[#allocation2 + $0xae0] sm:$0xff]  }
 0x153   :  { %10595 = vmatprep.subr.bf16.mxu0 %v11630_v33  ;;  %10574 = vmatpush3.bf16.msra.mxu1 %v11629_v32  ;;  %v11667_v32 = vld [vmem:[#allocation2 + $0x990] sm:$0xff]   ;;  %v11668_v33 = vld [vmem:[#allocation2 + $0x958] sm:$0xff]  }
 0x154   :  { %10575 = vmatprep.subr.bf16.mxu1 %v11632_v35  ;;  %v11670_v35 = vld [vmem:[#allocation2 + $0x9d8] sm:$0xff]  }
 0x156   :  { %10596 = vmatpush3.bf16.msra.mxu0 %v11631_v34  ;;  %v11669_v34 = vld [vmem:[#allocation2 + $0x918] sm:$0xff]  }
 0x157   :  { %10597 = vmatprep.subr.bf16.mxu0 %v11634_v38  ;;  %10576 = vmatpush3.bf16.msra.mxu1 %v11633_v36  ;;  %v11671_v36 = vld [vmem:[#allocation2 + $0x998] sm:$0xff]   ;;  %v11672_v38 = vld [vmem:[#allocation2 + $0x960] sm:$0xff]  }
 0x158   :  { %10577 = vmatprep.subr.bf16.mxu1 %v11636_v40  ;;  %v11674_v40 = vld [vmem:[#allocation2 + $0x9e0] sm:$0xff]  }
 0x15a   :  { %10598 = vmatpush3.bf16.msra.mxu0 %v11635_v39  ;;  %v11673_v39 = vld [vmem:[#allocation2 + $0x920] sm:$0xff]  }
 0x15b   :  { %10599 = vmatprep.subr.bf16.mxu0 %v11638_v42  ;;  %10578 = vmatpush3.bf16.msra.mxu1 %v11637_v41  ;;  %v11675_v41 = vld [vmem:[#allocation2 + $0x9a0] sm:$0xff]   ;;  %v11676_v42 = vld [vmem:[#allocation2 + $0x968] sm:$0xff]  }
 0x15c   :  { %10579 = vmatprep.subr.bf16.mxu1 %v11640_v44  ;;  %v11678_v44 = vld [vmem:[#allocation2 + $0x9e8] sm:$0xff]  }
 0x15e   :  { %10600 = vmatpush3.bf16.msra.mxu0 %v11639_v43  ;;  %v11677_v43 = vld [vmem:[#allocation2 + $0x928] sm:$0xff]  }
 0x15f   :  { %10601 = vmatprep.subr.bf16.mxu0 %v11642_v46  ;;  %10580 = vmatpush3.bf16.msra.mxu1 %v11641_v45  ;;  %v11679_v45 = vld [vmem:[#allocation2 + $0x9a8] sm:$0xff]  }
 0x160   :  { %10581 = vmatprep.subr.bf16.mxu1 %v11644_v48 }
 0x161   :  { %v10279_v51 = vpop.f32.mrb[4].mxu1 }
 0x162   :  { %10602 = vmatpush3.bf16.msra.mxu0 %v11643_v47  ;;  %v10280_v53 = vpop.f32.mrb[5].mxu1  ;;  %v11680_v47 = vld [vmem:[#allocation2 + $0x970] sm:$0xff]  }
 0x163   :  { %v10281_v55 = vadd.f32 %v10280_v53, %v10279_v51  ;;  %v10282_v56 = vpop.f32.mrb[6].mxu1  ;;  %10603 = vmatprep.subr.bf16.mxu0 %v11646_v50  ;;  %10582 = vmatpush3.bf16.msra.mxu1 %v11645_v49  ;;  %v11681_v49 = vld [vmem:[#allocation2 + $0x930] sm:$0xff]  }
 0x164   :  { %v10301_v57 = vpop.f32.mrb[8].mxu0  ;;  %v10283_v60 = vpop.f32.mrb[7].mxu1  ;;  %10583 = vmatprep.subr.bf16.mxu1 %v11648_v54  ;;  %v11683_v56 = vld [vmem:[#allocation2 + $0x9b0] sm:$0xff]  }
 0x165   :  { %v10302_v61 = vpop.f32.mrb[9].mxu0  ;;  %v7380_v62 = vadd.f32 %v10281_v55, %v12472_v23  ;;  %v11660_v23 = vld [vmem:[#allocation2 + $0x948] sm:$0xff]   ;;  %v11682_v55 = vld [vmem:[#allocation2 + $0x9f0] sm:$0xff]   ;;  %v11684_v60 = vld [vmem:[#allocation2 + $0x978] sm:$0xff]  }
 0x166   :  { %v10303_v63 = vadd.f32 %v10302_v61, %v10301_v57  ;;  %v10304_v1 = vpop.f32.mrb[10].mxu0  ;;  %10604 = vmatpush3.bf16.msra.mxu0 %v11647_v52 }
 0x167   :  { %v10305_v3 = vpop.f32.mrb[11].mxu0  ;;  %10605 = vmatprep.subr.bf16.mxu0 %v11650_v59  ;;  %10584 = vmatpush3.bf16.msra.mxu1 %v11649_v58  ;;  %v11686_v1 = vld [vmem:[#allocation2 + $0x9f8] sm:$0xff]  }
 0x168   :  { %v12477_v5 = vadd.f32 %v10303_v63, %v7380_v62  ;;  %10585 = vmatprep.subr.bf16.mxu1 %v11652_v4  ;;  %v11685_v62 = vld [vmem:[#allocation2 + $0x938] sm:$0xff]   ;;  %v1979_v3 = vrot.slane %v12485_v16, %v12413_v37  ;;  %v11689_v4 = vld [vmem:[#allocation2 + $0xa40] sm:$0xff]   ;;  %v11700_v16 = vld [vmem:[#allocation2 + $0xa90] sm:$0xff]  }
 0x16a   :  { %10606 = vmatpush3.bf16.msra.mxu0 %v11651_v2  ;;  %v11688_v2 = vld [vmem:[#allocation2 + $0x9b8] sm:$0xff]  }
 0x16b   :  { %10607 = vmatprep.subr.bf16.mxu0 %v11654_v7  ;;  %10586 = vmatpush3.bf16.msra.mxu1 %v11653_v6  ;;  %v11691_v6 = vld [vmem:[#allocation2 + $0xac0] sm:$0xff]   ;;  %v1995_v7 = vcombine.high %v1979_v3, %v1979_v3 }
 0x16c   :  { %10615 = vmatprep.subr.bf16.mxu1 %v11656_v12  ;;  %v11696_v12 = vld [vmem:[#allocation2 + $0xa88] sm:$0xff]  }
 0x16e   :  { %10608 = vmatpush3.bf16.msra.mxu0 %v11655_v10  ;;  %7938 = vmatmul.mubr.bf16.vlgmr.msra.gmra.mrb[32].mxu1 %v1972_v14  ;;  %v11694_v10 = vld [vmem:[#allocation2 + $0xa08] sm:$0xff]   ;;  %v11698_v14 = vld [vmem:[#allocation2 + $0xa10] sm:$0xff]  }
 0x16f   :  { %10637 = vmatprep.subr.bf16.mxu0 %v11658_v18  ;;  %10616 = vmatpush3.bf16.msra.mxu1 %v11657_v15  ;;  %v11699_v15 = vld [vmem:[#allocation2 + $0xad0] sm:$0xff]   ;;  %v11701_v18 = vld [vmem:[#allocation2 + $0xa58] sm:$0xff]  }
 0x170   :  { %10617 = vmatprep.subr.bf16.mxu1 %v11660_v23  ;;  %8017 = vmatprep.mubr.bf16.mxu1 %v1993_v26  ;;  %v11706_v23 = vld [vmem:[#allocation2 + $0xa20] sm:$0xff]   ;;  %v11709_v26 = vld [vmem:[#allocation2 + $0xa68] sm:$0xff]  }
 0x171   :  { %7978 = vmatmul.mubr.bf16.vlgmr.msra.gmra.mrb[36].mxu0 %v1994_v22  ;;  %v11705_v22 = vld [vmem:[#allocation2 + $0xa60] sm:$0xff]  }
 0x172   :  { %10638 = vmatpush3.bf16.msra.mxu0 %v11659_v20  ;;  %8057 = vmatprep.mubr.bf16.mxu0 %v1997_v28  ;;  %v11703_v20 = vld [vmem:[#allocation2 + $0xad8] sm:$0xff]  }
 0x173   :  { %10639 = vmatprep.subr.bf16.mxu0 %v11662_v27  ;;  %10618 = vmatpush3.bf16.msra.mxu1 %v11661_v25  ;;  %v11708_v25 = vld [vmem:[#allocation2 + $0xaa0] sm:$0xff]   ;;  %v11710_v27 = vld [vmem:[#allocation2 + $0xa28] sm:$0xff]  }
 0x174   :  { %10619 = vmatprep.subr.bf16.mxu1 %v11664_v29  ;;  %v11712_v29 = vld [vmem:[#allocation2 + $0xaa8] sm:$0xff]  }
 0x176   :  { %10640 = vmatpush3.bf16.msra.mxu0 %v11663_v17  ;;  %v11711_v17 = vld [vmem:[#allocation2 + $0xae8] sm:$0xff]  }
 0x177   :  { %10641 = vmatprep.subr.bf16.mxu0 %v11666_v31  ;;  %10620 = vmatpush3.bf16.msra.mxu1 %v11665_v30  ;;  %v11713_v31 = vld [vmem:[#allocation2 + $0xa70] sm:$0xff]  }
 0x178   :  { %10621 = vmatprep.subr.bf16.mxu1 %v11668_v33 }
 0x17a   :  { %10642 = vmatpush3.bf16.msra.mxu0 %v11667_v32 }
 0x17b   :  { %10643 = vmatprep.subr.bf16.mxu0 %v11670_v35  ;;  %10622 = vmatpush3.bf16.msra.mxu1 %v11669_v34  ;;  %v11714_v35 = vld [vmem:[#allocation2 + $0xa30] sm:$0xff]  }
 0x17c   :  { %10623 = vmatprep.subr.bf16.mxu1 %v11672_v38 }
 0x17e   :  { %10644 = vmatpush3.bf16.msra.mxu0 %v11671_v36  ;;  %v11715_v36 = vld [vmem:[#allocation2 + $0xaf0] sm:$0xff]  }
 0x17f   :  { %10645 = vmatprep.subr.bf16.mxu0 %v11674_v40  ;;  %10624 = vmatpush3.bf16.msra.mxu1 %v11673_v39 }
 0x180   :  { %10625 = vmatprep.subr.bf16.mxu1 %v11676_v42 }
 0x181   :  { %v10323_v46 = vpop.f32.mrb[8].mxu1 }
 0x182   :  { %10646 = vmatpush3.bf16.msra.mxu0 %v11675_v41  ;;  %v10324_v48 = vpop.f32.mrb[9].mxu1 }
 0x183   :  { %v10325_v50 = vadd.f32 %v10324_v48, %v10323_v46  ;;  %v10326_v51 = vpop.f32.mrb[10].mxu1  ;;  %10647 = vmatprep.subr.bf16.mxu0 %v11678_v44  ;;  %10626 = vmatpush3.bf16.msra.mxu1 %v11677_v43  ;;  %v11716_v43 = vld [vmem:[#allocation2 + $0xab0] sm:$0xff]   ;;  %v11719_v48 = vld [vmem:[#allocation2 + $0xaf8] sm:$0xff]  }
 0x184   :  { %v10345_v52 = vpop.f32.mrb[12].mxu0  ;;  %v10327_v53 = vpop.f32.mrb[11].mxu1  ;;  %10627 = vmatprep.subr.bf16.mxu1 %v11680_v47  ;;  %v11718_v47 = vld [vmem:[#allocation2 + $0xa38] sm:$0xff]  }
 0x185   :  { %v10346_v54 = vpop.f32.mrb[13].mxu0  ;;  %v7460_v57 = vadd.f32 %v10325_v50, %v12477_v5  ;;  %v11690_v5 = vld [vmem:[#allocation2 + $0xa00] sm:$0xff]   ;;  %v11720_v51 = vld [vmem:[#allocation2 + $0xab8] sm:$0xff]  }
 0x186   :  { %v10347_v58 = vadd.f32 %v10346_v54, %v10345_v52  ;;  %v10348_v59 = vpop.f32.mrb[14].mxu0  ;;  %10648 = vmatpush3.bf16.msra.mxu0 %v11679_v45  ;;  %v11717_v45 = vld [vmem:[#allocation2 + $0xa78] sm:$0xff]   ;;  %v11721_v53 = vld [vmem:[#allocation2 + $0xb40] sm:$0xff]  }
 0x187   :  { %v10349_v61 = vpop.f32.mrb[15].mxu0  ;;  %10649 = vmatprep.subr.bf16.mxu0 %v11682_v55  ;;  %10628 = vmatpush3.bf16.msra.mxu1 %v11681_v49  ;;  %v82_v49 = vld [vmem:[%s12688_s0 + $0x28] sm:$0xff] }
 0x188   :  { %v12492_v63 = vadd.f32 %v10347_v58, %v7460_v57  ;;  %10629 = vmatprep.subr.bf16.mxu1 %v11684_v60  ;;  %v2005_v50 = vrot.slane %v82_v49, %v12413_v37  ;;  %v1998_v52 = vcombine.high %v82_v49, %v82_v49  ;;  %v11723_v58 = vld [vmem:[#allocation2 + $0xbc0] sm:$0xff]  }
 0x189   :  { %v11724_v60 = vld [vmem:[#allocation2 + $0xb80] sm:$0xff]  }
 0x18a   :  { %10650 = vmatpush3.bf16.msra.mxu0 %v11683_v56  ;;  %v2013_v54 = vcombine.high %v2005_v50, %v2005_v50  ;;  %v2021_v55 = vrot.slane %v2005_v50, %v12413_v37  ;;  %v11722_v56 = vld [vmem:[#allocation2 + $0xb00] sm:$0xff]   ;;  %v12505_v57 = vrot.slane %v1998_v52, %v12413_v37  ;;  %v11758_v50 = vld [vmem:[#allocation2 + $0xc48] sm:$0xff]  }
 0x18b   :  { %10651 = vmatprep.subr.bf16.mxu0 %v11686_v1  ;;  %10630 = vmatpush3.bf16.msra.mxu1 %v11685_v62  ;;  %v11757_v49 = vld [vmem:[#allocation2 + $0xc80] sm:$0xff]   ;;  %v11760_v52 = vld [vmem:[#allocation2 + $0xcc8] sm:$0xff]  }
 0x18c   :  { %10659 = vmatprep.subr.bf16.mxu1 %v11689_v4  ;;  %v2035_v59 = vrot.slane %v2013_v54, %v12413_v37  ;;  %v2014_v61 = vcombine.high %v12505_v57, %v12505_v57  ;;  %v2043_v62 = vcombine.high %v2021_v55, %v2021_v55  ;;  %v11727_v4 = vld [vmem:[#allocation2 + $0xbc8] sm:$0xff]   ;;  %v11762_v54 = vld [vmem:[#allocation2 + $0xc50] sm:$0xff]  }
 0x18e   :  { %10652 = vmatpush3.bf16.msra.mxu0 %v11688_v2  ;;  %8018 = vmatmul.mubr.bf16.vlgmr.msra.gmra.mrb[36].mxu1 %v1979_v3  ;;  %v2045_v1 = vcombine.high %v2035_v59, %v2035_v59  ;;  %v11726_v2 = vld [vmem:[#allocation2 + $0xb08] sm:$0xff]   ;;  %v2042_v3 = vrot.slane %v2014_v61, %v12413_v37  ;;  %v11769_v61 = vld [vmem:[#allocation2 + $0xc98] sm:$0xff]  }
 0x18f   :  { %10681 = vmatprep.subr.bf16.mxu0 %v11691_v6  ;;  %10660 = vmatpush3.bf16.msra.mxu1 %v11690_v5  ;;  %v11728_v5 = vld [vmem:[#allocation2 + $0xb88] sm:$0xff]  }
 0x190   :  { %10661 = vmatprep.subr.bf16.mxu1 %v11693_v9  ;;  %8097 = vmatprep.mubr.bf16.mxu1 %v2035_v59  ;;  %v2046_v6 = vcombine.high %v2042_v3, %v2042_v3  ;;  %v11731_v9 = vld [vmem:[#allocation2 + $0xbd0] sm:$0xff]   ;;  %v11767_v59 = vld [vmem:[#allocation2 + $0xc18] sm:$0xff]  }
 0x191   :  { %8058 = vmatmul.mubr.bf16.vlgmr.msra.gmra.mrb[40].mxu0 %v1995_v7  ;;  %v11729_v7 = vld [vmem:[#allocation2 + $0xb50] sm:$0xff]  }
 0x192   :  { %10682 = vmatpush3.bf16.msra.mxu0 %v11692_v8  ;;  %8137 = vmatprep.mubr.bf16.mxu0 %v2045_v1  ;;  %v11730_v8 = vld [vmem:[#allocation2 + $0xb10] sm:$0xff]   ;;  %v11772_v1 = vld [vmem:[#allocation2 + $0xce0] sm:$0xff]  }
 0x193   :  { %10683 = vmatprep.subr.bf16.mxu0 %v11695_v11  ;;  %10662 = vmatpush3.bf16.msra.mxu1 %v11694_v10  ;;  %v11732_v10 = vld [vmem:[#allocation2 + $0xb90] sm:$0xff]   ;;  %v11733_v11 = vld [vmem:[#allocation2 + $0xb58] sm:$0xff]  }
 0x194   :  { %10663 = vmatprep.subr.bf16.mxu1 %v11697_v13  ;;  %v11735_v13 = vld [vmem:[#allocation2 + $0xbd8] sm:$0xff]  }
 0x196   :  { %10684 = vmatpush3.bf16.msra.mxu0 %v11696_v12  ;;  %v11734_v12 = vld [vmem:[#allocation2 + $0xb18] sm:$0xff]  }
 0x197   :  { %10685 = vmatprep.subr.bf16.mxu0 %v11699_v15  ;;  %10664 = vmatpush3.bf16.msra.mxu1 %v11698_v14  ;;  %v11736_v14 = vld [vmem:[#allocation2 + $0xb98] sm:$0xff]   ;;  %v11737_v15 = vld [vmem:[#allocation2 + $0xb60] sm:$0xff]  }
 0x198   :  { %10665 = vmatprep.subr.bf16.mxu1 %v11701_v18  ;;  %v11739_v18 = vld [vmem:[#allocation2 + $0xbe0] sm:$0xff]  }
 0x19a   :  { %10686 = vmatpush3.bf16.msra.mxu0 %v11700_v16  ;;  %v11738_v16 = vld [vmem:[#allocation2 + $0xb20] sm:$0xff]  }
 0x19b   :  { %10687 = vmatprep.subr.bf16.mxu0 %v11703_v20  ;;  %10666 = vmatpush3.bf16.msra.mxu1 %v11702_v19  ;;  %v11740_v19 = vld [vmem:[#allocation2 + $0xba0] sm:$0xff]   ;;  %v11741_v20 = vld [vmem:[#allocation2 + $0xb68] sm:$0xff]  }
 0x19c   :  { %10667 = vmatprep.subr.bf16.mxu1 %v11705_v22  ;;  %v11743_v22 = vld [vmem:[#allocation2 + $0xbe8] sm:$0xff]  }
 0x19e   :  { %10688 = vmatpush3.bf16.msra.mxu0 %v11704_v21  ;;  %v11742_v21 = vld [vmem:[#allocation2 + $0xb28] sm:$0xff]  }
 0x19f   :  { %10689 = vmatprep.subr.bf16.mxu0 %v11707_v24  ;;  %10668 = vmatpush3.bf16.msra.mxu1 %v11706_v23  ;;  %v11744_v24 = vld [vmem:[#allocation2 + $0xba8] sm:$0xff]  }
 0x1a0   :  { %10669 = vmatprep.subr.bf16.mxu1 %v11709_v26  ;;  %v11745_v26 = vld [vmem:[#allocation2 + $0xb70] sm:$0xff]  }
 0x1a1   :  { %v10367_v28 = vpop.f32.mrb[12].mxu1 }
 0x1a2   :  { %10690 = vmatpush3.bf16.msra.mxu0 %v11708_v25  ;;  %v10368_v30 = vpop.f32.mrb[13].mxu1 }
 0x1a3   :  { %v10369_v32 = vadd.f32 %v10368_v30, %v10367_v28  ;;  %v10370_v33 = vpop.f32.mrb[14].mxu1  ;;  %10691 = vmatprep.subr.bf16.mxu0 %v11711_v17  ;;  %10670 = vmatpush3.bf16.msra.mxu1 %v11710_v27 }
 0x1a4   :  { %v10389_v34 = vpop.f32.mrb[16].mxu0  ;;  %v10371_v38 = vpop.f32.mrb[15].mxu1  ;;  %10671 = vmatprep.subr.bf16.mxu1 %v11713_v31  ;;  %v11746_v31 = vld [vmem:[#allocation2 + $0xb30] sm:$0xff]  }
 0x1a5   :  { %v10390_v39 = vpop.f32.mrb[17].mxu0  ;;  %v7540_v40 = vadd.f32 %v10369_v32, %v12492_v63  ;;  %v11725_v63 = vld [vmem:[#allocation2 + $0xb48] sm:$0xff]   ;;  %v11747_v32 = vld [vmem:[#allocation2 + $0xbf0] sm:$0xff]  }
 0x1a6   :  { %v10391_v41 = vadd.f32 %v10390_v39, %v10389_v34  ;;  %v10392_v42 = vpop.f32.mrb[18].mxu0  ;;  %10692 = vmatpush3.bf16.msra.mxu0 %v11712_v29  ;;  %v11749_v39 = vld [vmem:[#allocation2 + $0xb78] sm:$0xff]  }
 0x1a7   :  { %v10393_v44 = vpop.f32.mrb[19].mxu0  ;;  %10693 = vmatprep.subr.bf16.mxu0 %v11715_v36  ;;  %10672 = vmatpush3.bf16.msra.mxu1 %v11714_v35  ;;  %v11748_v36 = vld [vmem:[#allocation2 + $0xbb0] sm:$0xff]   ;;  %v11751_v42 = vld [vmem:[#allocation2 + $0xbf8] sm:$0xff]  }
 0x1a8   :  { %v12497_v46 = vadd.f32 %v10391_v41, %v7540_v40  ;;  %10673 = vmatprep.subr.bf16.mxu1 %v11717_v45  ;;  %v11750_v41 = vld [vmem:[#allocation2 + $0xb38] sm:$0xff]   ;;  %v2028_v44 = vrot.slane %v12505_v57, %v12413_v37  ;;  %v11754_v45 = vld [vmem:[#allocation2 + $0xc40] sm:$0xff]   ;;  %v11765_v57 = vld [vmem:[#allocation2 + $0xc90] sm:$0xff]  }
 0x1aa   :  { %10694 = vmatpush3.bf16.msra.mxu0 %v11716_v43  ;;  %v11753_v43 = vld [vmem:[#allocation2 + $0xbb8] sm:$0xff]  }
 0x1ab   :  { %10695 = vmatprep.subr.bf16.mxu0 %v11719_v48  ;;  %10674 = vmatpush3.bf16.msra.mxu1 %v11718_v47  ;;  %v11756_v47 = vld [vmem:[#allocation2 + $0xcc0] sm:$0xff]   ;;  %v2044_v48 = vcombine.high %v2028_v44, %v2028_v44 }
 0x1ac   :  { %10703 = vmatprep.subr.bf16.mxu1 %v11721_v53  ;;  %v11761_v53 = vld [vmem:[#allocation2 + $0xc88] sm:$0xff]  }
 0x1ae   :  { %10696 = vmatpush3.bf16.msra.mxu0 %v11720_v51  ;;  %8098 = vmatmul.mubr.bf16.vlgmr.msra.gmra.mrb[40].mxu1 %v2021_v55  ;;  %v11759_v51 = vld [vmem:[#allocation2 + $0xc08] sm:$0xff]   ;;  %v11763_v55 = vld [vmem:[#allocation2 + $0xc10] sm:$0xff]  }
 0x1af   :  { %10725 = vmatprep.subr.bf16.mxu0 %v11723_v58  ;;  %10704 = vmatpush3.bf16.msra.mxu1 %v11722_v56  ;;  %v11764_v56 = vld [vmem:[#allocation2 + $0xcd0] sm:$0xff]   ;;  %v11766_v58 = vld [vmem:[#allocation2 + $0xc58] sm:$0xff]  }
 0x1b0   :  { %10705 = vmatprep.subr.bf16.mxu1 %v11725_v63  ;;  %8177 = vmatprep.mubr.bf16.mxu1 %v2042_v3  ;;  %v11771_v63 = vld [vmem:[#allocation2 + $0xc20] sm:$0xff]   ;;  %v11774_v3 = vld [vmem:[#allocation2 + $0xc68] sm:$0xff]  }
 0x1b1   :  { %8138 = vmatmul.mubr.bf16.vlgmr.msra.gmra.mrb[44].mxu0 %v2043_v62  ;;  %v11770_v62 = vld [vmem:[#allocation2 + $0xc60] sm:$0xff]  }
 0x1b2   :  { %10726 = vmatpush3.bf16.msra.mxu0 %v11724_v60  ;;  %8217 = vmatprep.mubr.bf16.mxu0 %v2046_v6  ;;  %v11768_v60 = vld [vmem:[#allocation2 + $0xcd8] sm:$0xff]   ;;  %v11776_v6 = vld [vmem:[#allocation2 + $0xce8] sm:$0xff]  }
 0x1b3   :  { %10727 = vmatprep.subr.bf16.mxu0 %v11727_v4  ;;  %10706 = vmatpush3.bf16.msra.mxu1 %v11726_v2  ;;  %v11773_v2 = vld [vmem:[#allocation2 + $0xca0] sm:$0xff]   ;;  %v11775_v4 = vld [vmem:[#allocation2 + $0xc28] sm:$0xff]  }
 0x1b4   :  { %10707 = vmatprep.subr.bf16.mxu1 %v11729_v7 }
 0x1b6   :  { %10728 = vmatpush3.bf16.msra.mxu0 %v11728_v5 }
 0x1b7   :  { %10729 = vmatprep.subr.bf16.mxu0 %v11731_v9  ;;  %10708 = vmatpush3.bf16.msra.mxu1 %v11730_v8  ;;  %v11777_v8 = vld [vmem:[#allocation2 + $0xca8] sm:$0xff]  }
 0x1b8   :  { %10709 = vmatprep.subr.bf16.mxu1 %v11733_v11 }
 0x1ba   :  { %10730 = vmatpush3.bf16.msra.mxu0 %v11732_v10 }
 0x1bb   :  { %10731 = vmatprep.subr.bf16.mxu0 %v11735_v13  ;;  %10710 = vmatpush3.bf16.msra.mxu1 %v11734_v12  ;;  %v11778_v12 = vld [vmem:[#allocation2 + $0xc70] sm:$0xff]  }
 0x1bc   :  { %10711 = vmatprep.subr.bf16.mxu1 %v11737_v15  ;;  %v11779_v13 = vld [vmem:[#allocation2 + $0xc30] sm:$0xff]  }
 0x1be   :  { %10732 = vmatpush3.bf16.msra.mxu0 %v11736_v14 }
 0x1bf   :  { %10733 = vmatprep.subr.bf16.mxu0 %v11739_v18  ;;  %10712 = vmatpush3.bf16.msra.mxu1 %v11738_v16 }
 0x1c0   :  { %10713 = vmatprep.subr.bf16.mxu1 %v11741_v20  ;;  %v11780_v20 = vld [vmem:[#allocation2 + $0xcf0] sm:$0xff]  }
 0x1c1   :  { %v10411_v23 = vpop.f32.mrb[16].mxu1 }
 0x1c2   :  { %v10412_v25 = vpop.f32.mrb[17].mxu1  ;;  %10734 = vmatpush3.bf16.msra.mxu0 %v11740_v19 }
 0x1c3   :  { %v10413_v27 = vadd.f32 %v10412_v25, %v10411_v23  ;;  %v10414_v17 = vpop.f32.mrb[18].mxu1  ;;  %10735 = vmatprep.subr.bf16.mxu0 %v11743_v22  ;;  %10714 = vmatpush3.bf16.msra.mxu1 %v11742_v21  ;;  %v11781_v22 = vld [vmem:[#allocation2 + $0xcb0] sm:$0xff]   ;;  %v11783_v25 = vld [vmem:[#allocation2 + $0xc38] sm:$0xff]  }
 0x1c4   :  { %v10433_v28 = vpop.f32.mrb[20].mxu0  ;;  %v10415_v29 = vpop.f32.mrb[19].mxu1  ;;  %10715 = vmatprep.subr.bf16.mxu1 %v11745_v26  ;;  %v11784_v26 = vld [vmem:[#allocation2 + $0xcf8] sm:$0xff]  }
 0x1c5   :  { %v10434_v30 = vpop.f32.mrb[21].mxu0  ;;  %v7620_v33 = vadd.f32 %v10413_v27, %v12497_v46  ;;  %v11755_v46 = vld [vmem:[#allocation2 + $0xc00] sm:$0xff]   ;;  %v83_v27 = vld [vmem:[%s12688_s0 + $0x30] sm:$0xff] }
 0x1c6   :  { %v10435_v34 = vadd.f32 %v10434_v30, %v10433_v28  ;;  %v10436_v35 = vpop.f32.mrb[22].mxu0  ;;  %10736 = vmatpush3.bf16.msra.mxu0 %v11744_v24  ;;  %v11782_v24 = vld [vmem:[#allocation2 + $0xc78] sm:$0xff]   ;;  %v2054_v17 = vrot.slane %v83_v27, %v12413_v37  ;;  %v2047_v29 = vcombine.high %v83_v27, %v83_v27  ;;  %v11786_v30 = vld [vmem:[#allocation2 + $0xd40] sm:$0xff]  }
 0x1c7   :  { %v10437_v38 = vpop.f32.mrb[23].mxu0  ;;  %10737 = vmatprep.subr.bf16.mxu0 %v11747_v32  ;;  %10716 = vmatpush3.bf16.msra.mxu1 %v11746_v31  ;;  %v11785_v28 = vld [vmem:[#allocation2 + $0xcb8] sm:$0xff]   ;;  %v11788_v35 = vld [vmem:[#allocation2 + $0xdc0] sm:$0xff]  }
 0x1c8   :  { %v12512_v40 = vadd.f32 %v10435_v34, %v7620_v33  ;;  %10717 = vmatprep.subr.bf16.mxu1 %v11749_v39  ;;  %v2062_v31 = vcombine.high %v2054_v17, %v2054_v17  ;;  %v2070_v32 = vrot.slane %v2054_v17, %v12413_v37  ;;  %v11787_v33 = vld [vmem:[#allocation2 + $0xd00] sm:$0xff]   ;;  %v12525_v34 = vrot.slane %v2047_v29, %v12413_v37  ;;  %v11823_v17 = vld [vmem:[#allocation2 + $0xe48] sm:$0xff]  }
 0x1c9   :  { %v11789_v38 = vld [vmem:[#allocation2 + $0xd80] sm:$0xff]   ;;  %v11825_v29 = vld [vmem:[#allocation2 + $0xec8] sm:$0xff]  }
 0x1ca   :  { %10738 = vmatpush3.bf16.msra.mxu0 %v11748_v36  ;;  %v2084_v36 = vrot.slane %v2062_v31, %v12413_v37  ;;  %v2063_v39 = vcombine.high %v12525_v34, %v12525_v34  ;;  %v11822_v27 = vld [vmem:[#allocation2 + $0xe80] sm:$0xff]   ;;  %v11827_v31 = vld [vmem:[#allocation2 + $0xe50] sm:$0xff]  }
 0x1cb   :  { %10739 = vmatprep.subr.bf16.mxu0 %v11751_v42  ;;  %10718 = vmatpush3.bf16.msra.mxu1 %v11750_v41  ;;  %v11790_v41 = vld [vmem:[#allocation2 + $0xd48] sm:$0xff]  }
 0x1cc   :  { %10747 = vmatprep.subr.bf16.mxu1 %v11754_v45  ;;  %v2094_v42 = vcombine.high %v2084_v36, %v2084_v36  ;;  %v11792_v45 = vld [vmem:[#allocation2 + $0xdc8] sm:$0xff]  }
 0x1ce   :  { %10740 = vmatpush3.bf16.msra.mxu0 %v11753_v43  ;;  %8178 = vmatmul.mubr.bf16.vlgmr.msra.gmra.mrb[44].mxu1 %v2028_v44  ;;  %v11791_v43 = vld [vmem:[#allocation2 + $0xd08] sm:$0xff]   ;;  %v2091_v44 = vrot.slane %v2063_v39, %v12413_v37  ;;  %v11834_v39 = vld [vmem:[#allocation2 + $0xe98] sm:$0xff]  }
 0x1cf   :  { %10769 = vmatprep.subr.bf16.mxu0 %v11756_v47  ;;  %10748 = vmatpush3.bf16.msra.mxu1 %v11755_v46  ;;  %v11793_v46 = vld [vmem:[#allocation2 + $0xd88] sm:$0xff]  }
 0x1d0   :  { %10749 = vmatprep.subr.bf16.mxu1 %v11758_v50  ;;  %8257 = vmatprep.mubr.bf16.mxu1 %v2084_v36  ;;  %v2095_v47 = vcombine.high %v2091_v44, %v2091_v44  ;;  %v11796_v50 = vld [vmem:[#allocation2 + $0xdd0] sm:$0xff]   ;;  %v11832_v36 = vld [vmem:[#allocation2 + $0xe18] sm:$0xff]  }
 0x1d1   :  { %8218 = vmatmul.mubr.bf16.vlgmr.msra.gmra.mrb[48].mxu0 %v2044_v48  ;;  %v11794_v48 = vld [vmem:[#allocation2 + $0xd50] sm:$0xff]  }
 0x1d2   :  { %10770 = vmatpush3.bf16.msra.mxu0 %v11757_v49  ;;  %8297 = vmatprep.mubr.bf16.mxu0 %v2094_v42  ;;  %v11795_v49 = vld [vmem:[#allocation2 + $0xd10] sm:$0xff]   ;;  %v11837_v42 = vld [vmem:[#allocation2 + $0xee0] sm:$0xff]  }
 0x1d3   :  { %10771 = vmatprep.subr.bf16.mxu0 %v11760_v52  ;;  %10750 = vmatpush3.bf16.msra.mxu1 %v11759_v51  ;;  %v11797_v51 = vld [vmem:[#allocation2 + $0xd90] sm:$0xff]   ;;  %v11798_v52 = vld [vmem:[#allocation2 + $0xd58] sm:$0xff]  }
 0x1d4   :  { %10751 = vmatprep.subr.bf16.mxu1 %v11762_v54  ;;  %v11800_v54 = vld [vmem:[#allocation2 + $0xdd8] sm:$0xff]  }
 0x1d6   :  { %10772 = vmatpush3.bf16.msra.mxu0 %v11761_v53  ;;  %v11799_v53 = vld [vmem:[#allocation2 + $0xd18] sm:$0xff]  }
 0x1d7   :  { %10773 = vmatprep.subr.bf16.mxu0 %v11764_v56  ;;  %10752 = vmatpush3.bf16.msra.mxu1 %v11763_v55  ;;  %v11801_v55 = vld [vmem:[#allocation2 + $0xd98] sm:$0xff]   ;;  %v11802_v56 = vld [vmem:[#allocation2 + $0xd60] sm:$0xff]  }
 0x1d8   :  { %10753 = vmatprep.subr.bf16.mxu1 %v11766_v58  ;;  %v11804_v58 = vld [vmem:[#allocation2 + $0xde0] sm:$0xff]  }
 0x1da   :  { %10774 = vmatpush3.bf16.msra.mxu0 %v11765_v57  ;;  %v11803_v57 = vld [vmem:[#allocation2 + $0xd20] sm:$0xff]  }
 0x1db   :  { %10775 = vmatprep.subr.bf16.mxu0 %v11768_v60  ;;  %10754 = vmatpush3.bf16.msra.mxu1 %v11767_v59  ;;  %v11805_v59 = vld [vmem:[#allocation2 + $0xda0] sm:$0xff]   ;;  %v11806_v60 = vld [vmem:[#allocation2 + $0xd68] sm:$0xff]  }
 0x1dc   :  { %10755 = vmatprep.subr.bf16.mxu1 %v11770_v62 }
 0x1de   :  { %10776 = vmatpush3.bf16.msra.mxu0 %v11769_v61  ;;  %v11807_v61 = vld [vmem:[#allocation2 + $0xd28] sm:$0xff]  }
 0x1df   :  { %10777 = vmatprep.subr.bf16.mxu0 %v11772_v1  ;;  %10756 = vmatpush3.bf16.msra.mxu1 %v11771_v63  ;;  %v11808_v63 = vld [vmem:[#allocation2 + $0xde8] sm:$0xff]  }
 0x1e0   :  { %10757 = vmatprep.subr.bf16.mxu1 %v11774_v3 }
 0x1e1   :  { %v10455_v5 = vpop.f32.mrb[20].mxu1 }
 0x1e2   :  { %v10456_v7 = vpop.f32.mrb[21].mxu1  ;;  %10778 = vmatpush3.bf16.msra.mxu0 %v11773_v2  ;;  %v11809_v2 = vld [vmem:[#allocation2 + $0xda8] sm:$0xff]  }
 0x1e3   :  { %v10457_v9 = vadd.f32 %v10456_v7, %v10455_v5  ;;  %v10458_v10 = vpop.f32.mrb[22].mxu1  ;;  %10779 = vmatprep.subr.bf16.mxu0 %v11776_v6  ;;  %10758 = vmatpush3.bf16.msra.mxu1 %v11775_v4 }
 0x1e4   :  { %v10477_v11 = vpop.f32.mrb[24].mxu0  ;;  %v10459_v14 = vpop.f32.mrb[23].mxu1  ;;  %10759 = vmatprep.subr.bf16.mxu1 %v11778_v12 }
 0x1e5   :  { %v10478_v15 = vpop.f32.mrb[25].mxu0  ;;  %v7700_v16 = vadd.f32 %v10457_v9, %v12512_v40  ;;  %v2092_v40 = vcombine.high %v2070_v32, %v2070_v32  ;;  %v11811_v9 = vld [vmem:[#allocation2 + $0xd30] sm:$0xff]  }
 0x1e6   :  { %v10479_v18 = vadd.f32 %v10478_v15, %v10477_v11  ;;  %v10480_v19 = vpop.f32.mrb[26].mxu0  ;;  %10780 = vmatpush3.bf16.msra.mxu0 %v11777_v8  ;;  %v11810_v8 = vld [vmem:[#allocation2 + $0xd70] sm:$0xff]  }
 0x1e7   :  { %v10481_v21 = vpop.f32.mrb[27].mxu0  ;;  %10781 = vmatprep.subr.bf16.mxu0 %v11780_v20  ;;  %10760 = vmatpush3.bf16.msra.mxu1 %v11779_v13  ;;  %v11812_v13 = vld [vmem:[#allocation2 + $0xdf0] sm:$0xff]   ;;  %v11815_v19 = vld [vmem:[#allocation2 + $0xd38] sm:$0xff]  }
 0x1e8   :  { %v12517_v23 = vadd.f32 %v10479_v18, %v7700_v16  ;;  %10761 = vmatprep.subr.bf16.mxu1 %v11782_v24  ;;  %v11813_v15 = vld [vmem:[#allocation2 + $0xdb0] sm:$0xff]   ;;  %v11814_v18 = vld [vmem:[#allocation2 + $0xd78] sm:$0xff]   ;;  %v11820_v24 = vld [vmem:[#allocation2 + $0xe00] sm:$0xff]  }
 0x1e9   :  { %v11816_v20 = vld [vmem:[#allocation2 + $0xdf8] sm:$0xff]  }
 0x1ea   :  { %10782 = vmatpush3.bf16.msra.mxu0 %v11781_v22  ;;  %v11818_v21 = vld [vmem:[#allocation2 + $0xdb8] sm:$0xff]   ;;  %v2077_v22 = vrot.slane %v12525_v34, %v12413_v37  ;;  %v11830_v34 = vld [vmem:[#allocation2 + $0xe90] sm:$0xff]  }
 0x1eb   :  { %10783 = vmatprep.subr.bf16.mxu0 %v11784_v26  ;;  %10762 = vmatpush3.bf16.msra.mxu1 %v11783_v25  ;;  %v11821_v25 = vld [vmem:[#allocation2 + $0xec0] sm:$0xff]  }
 0x1ec   :  { %10791 = vmatprep.subr.bf16.mxu1 %v11786_v30  ;;  %v2093_v26 = vcombine.high %v2077_v22, %v2077_v22  ;;  %v11826_v30 = vld [vmem:[#allocation2 + $0xe88] sm:$0xff]  }
 0x1ee   :  { %10784 = vmatpush3.bf16.msra.mxu0 %v11785_v28  ;;  %8258 = vmatmul.mubr.bf16.vlgmr.msra.gmra.mrb[48].mxu1 %v2070_v32  ;;  %v11824_v28 = vld [vmem:[#allocation2 + $0xe08] sm:$0xff]   ;;  %v11828_v32 = vld [vmem:[#allocation2 + $0xe10] sm:$0xff]  }
 0x1ef   :  { %10813 = vmatprep.subr.bf16.mxu0 %v11788_v35  ;;  %10792 = vmatpush3.bf16.msra.mxu1 %v11787_v33  ;;  %v11829_v33 = vld [vmem:[#allocation2 + $0xed0] sm:$0xff]   ;;  %v11831_v35 = vld [vmem:[#allocation2 + $0xe58] sm:$0xff]  }
 0x1f0   :  { %10793 = vmatprep.subr.bf16.mxu1 %v11790_v41  ;;  %8337 = vmatprep.mubr.bf16.mxu1 %v2091_v44  ;;  %v11836_v41 = vld [vmem:[#allocation2 + $0xe20] sm:$0xff]   ;;  %v11839_v44 = vld [vmem:[#allocation2 + $0xe68] sm:$0xff]  }
 0x1f1   :  { %8298 = vmatmul.mubr.bf16.vlgmr.msra.gmra.mrb[52].mxu0 %v2092_v40  ;;  %v11835_v40 = vld [vmem:[#allocation2 + $0xe60] sm:$0xff]  }
 0x1f2   :  { %10814 = vmatpush3.bf16.msra.mxu0 %v11789_v38  ;;  %8377 = vmatprep.mubr.bf16.mxu0 %v2095_v47  ;;  %v11833_v38 = vld [vmem:[#allocation2 + $0xed8] sm:$0xff]  }
 0x1f3   :  { %10815 = vmatprep.subr.bf16.mxu0 %v11792_v45  ;;  %10794 = vmatpush3.bf16.msra.mxu1 %v11791_v43  ;;  %v11838_v43 = vld [vmem:[#allocation2 + $0xea0] sm:$0xff]  }
 0x1f4   :  { %10795 = vmatprep.subr.bf16.mxu1 %v11794_v48  ;;  %v11841_v48 = vld [vmem:[#allocation2 + $0xee8] sm:$0xff]  }
 0x1f6   :  { %10816 = vmatpush3.bf16.msra.mxu0 %v11793_v46  ;;  %v11840_v46 = vld [vmem:[#allocation2 + $0xe28] sm:$0xff]  }
 0x1f7   :  { %10817 = vmatprep.subr.bf16.mxu0 %v11796_v50  ;;  %10796 = vmatpush3.bf16.msra.mxu1 %v11795_v49 }
 0x1f8   :  { %10797 = vmatprep.subr.bf16.mxu1 %v11798_v52  ;;  %v11842_v52 = vld [vmem:[#allocation2 + $0xea8] sm:$0xff]  }
 0x1fa   :  { %10818 = vmatpush3.bf16.msra.mxu0 %v11797_v51 }
 0x1fb   :  { %10819 = vmatprep.subr.bf16.mxu0 %v11800_v54  ;;  %10798 = vmatpush3.bf16.msra.mxu1 %v11799_v53  ;;  %v11843_v53 = vld [vmem:[#allocation2 + $0xe70] sm:$0xff]  }
 0x1fc   :  { %10799 = vmatprep.subr.bf16.mxu1 %v11802_v56 }
 0x1fe   :  { %10820 = vmatpush3.bf16.msra.mxu0 %v11801_v55 }
 0x1ff   :  { %10821 = vmatprep.subr.bf16.mxu0 %v11804_v58  ;;  %10800 = vmatpush3.bf16.msra.mxu1 %v11803_v57 }
 0x200   :  { %10801 = vmatprep.subr.bf16.mxu1 %v11806_v60 }
 0x201   :  { %v10499_v62 = vpop.f32.mrb[24].mxu1 }
 0x202   :  { %v10500_v1 = vpop.f32.mrb[25].mxu1  ;;  %10822 = vmatpush3.bf16.msra.mxu0 %v11805_v59  ;;  %v11844_v59 = vld [vmem:[#allocation2 + $0xe30] sm:$0xff]  }
 0x203   :  { %v10501_v3 = vadd.f32 %v10500_v1, %v10499_v62  ;;  %v10502_v4 = vpop.f32.mrb[26].mxu1  ;;  %10823 = vmatprep.subr.bf16.mxu0 %v11808_v63  ;;  %10802 = vmatpush3.bf16.msra.mxu1 %v11807_v61  ;;  %v11845_v61 = vld [vmem:[#allocation2 + $0xef0] sm:$0xff]   ;;  %v11847_v1 = vld [vmem:[#allocation2 + $0xe78] sm:$0xff]  }
 0x204   :  { %v10521_v5 = vpop.f32.mrb[28].mxu0  ;;  %v10503_v6 = vpop.f32.mrb[27].mxu1  ;;  %10803 = vmatprep.subr.bf16.mxu1 %v11810_v8  ;;  %v11846_v63 = vld [vmem:[#allocation2 + $0xeb0] sm:$0xff]   ;;  %v84_v4 = vld [vmem:[%s12688_s0 + $0x38] sm:$0xff]  ;;  %v11851_v8 = vld [vmem:[#allocation2 + $0xf40] sm:$0xff]  }
 0x205   :  { %v10522_v7 = vpop.f32.mrb[29].mxu0  ;;  %v7780_v10 = vadd.f32 %v10501_v3, %v12517_v23  ;;  %v11819_v23 = vld [vmem:[#allocation2 + $0xe40] sm:$0xff]   ;;  %v11849_v3 = vld [vmem:[#allocation2 + $0xef8] sm:$0xff]  }
 0x206   :  { %v10523_v11 = vadd.f32 %v10522_v7, %v10521_v5  ;;  %v10524_v12 = vpop.f32.mrb[30].mxu0  ;;  %10824 = vmatpush3.bf16.msra.mxu0 %v11809_v2  ;;  %v11848_v2 = vld [vmem:[#allocation2 + $0xe38] sm:$0xff]   ;;  %v2103_v5 = vrot.slane %v84_v4, %v12413_v37  ;;  %v2096_v7 = vcombine.high %v84_v4, %v84_v4  ;;  %v11887_v4 = vld [vmem:[#allocation2 + $0x1080] sm:$0xff]  }
 0x207   :  { %v10525_v14 = vpop.f32.mrb[31].mxu0  ;;  %10825 = vmatprep.subr.bf16.mxu0 %v11812_v13  ;;  %10804 = vmatpush3.bf16.msra.mxu1 %v11811_v9  ;;  %v11850_v6 = vld [vmem:[#allocation2 + $0xeb8] sm:$0xff]   ;;  %v11853_v13 = vld [vmem:[#allocation2 + $0xfc0] sm:$0xff]  }
 0x208   :  { %v12532_v16 = vadd.f32 %v10523_v11, %v7780_v10  ;;  %10805 = vmatprep.subr.bf16.mxu1 %v11814_v18  ;;  %v2111_v9 = vcombine.high %v2103_v5, %v2103_v5  ;;  %v2119_v10 = vrot.slane %v2103_v5, %v12413_v37  ;;  %v11852_v11 = vld [vmem:[#allocation2 + $0xf00] sm:$0xff]   ;;  %v12545_v12 = vrot.slane %v2096_v7, %v12413_v37  ;;  %v11888_v5 = vld [vmem:[#allocation2 + $0x1048] sm:$0xff]  }
 0x209   :  { %v11890_v7 = vld [vmem:[#allocation2 + $0x10c8] sm:$0xff]  }
 0x20a   :  { %10826 = vmatpush3.bf16.msra.mxu0 %v11813_v15  ;;  %v2133_v14 = vrot.slane %v2111_v9, %v12413_v37  ;;  %v11854_v15 = vld [vmem:[#allocation2 + $0xf80] sm:$0xff]   ;;  %v2141_v18 = vcombine.high %v2119_v10, %v2119_v10  ;;  %v11892_v9 = vld [vmem:[#allocation2 + $0x1050] sm:$0xff]  }
 0x20b   :  { %10827 = vmatprep.subr.bf16.mxu0 %v11816_v20  ;;  %10806 = vmatpush3.bf16.msra.mxu1 %v11815_v19  ;;  %v11855_v19 = vld [vmem:[#allocation2 + $0xf48] sm:$0xff]  }
 0x20c   :  { %10835 = vmatprep.subr.bf16.mxu1 %v11819_v23  ;;  %v2143_v20 = vcombine.high %v2133_v14, %v2133_v14  ;;  %v11857_v23 = vld [vmem:[#allocation2 + $0xfc8] sm:$0xff]  }
 0x20e   :  { %10828 = vmatpush3.bf16.msra.mxu0 %v11818_v21  ;;  %8338 = vmatmul.mubr.bf16.vlgmr.msra.gmra.mrb[52].mxu1 %v2077_v22  ;;  %v11856_v21 = vld [vmem:[#allocation2 + $0xf08] sm:$0xff]  }
 0x20f   :  { %10857 = vmatprep.subr.bf16.mxu0 %v11821_v25  ;;  %10836 = vmatpush3.bf16.msra.mxu1 %v11820_v24  ;;  %v11858_v24 = vld [vmem:[#allocation2 + $0xf88] sm:$0xff]  }
 0x210   :  { %10837 = vmatprep.subr.bf16.mxu1 %v11823_v17  ;;  %8417 = vmatprep.mubr.bf16.mxu1 %v2133_v14  ;;  %v11861_v17 = vld [vmem:[#allocation2 + $0xfd0] sm:$0xff]   ;;  %v11897_v14 = vld [vmem:[#allocation2 + $0x1018] sm:$0xff]  }
 0x211   :  { %8378 = vmatmul.mubr.bf16.vlgmr.msra.gmra.mrb[56].mxu0 %v2093_v26  ;;  %v11859_v26 = vld [vmem:[#allocation2 + $0xf50] sm:$0xff]  }
 0x212   :  { %10858 = vmatpush3.bf16.msra.mxu0 %v11822_v27  ;;  %8457 = vmatprep.mubr.bf16.mxu0 %v2143_v20  ;;  %v11860_v27 = vld [vmem:[#allocation2 + $0xf10] sm:$0xff]   ;;  %v11902_v20 = vld [vmem:[#allocation2 + $0x10e0] sm:$0xff]  }
 0x213   :  { %10859 = vmatprep.subr.bf16.mxu0 %v11825_v29  ;;  %10838 = vmatpush3.bf16.msra.mxu1 %v11824_v28  ;;  %v11862_v28 = vld [vmem:[#allocation2 + $0xf90] sm:$0xff]   ;;  %v11863_v29 = vld [vmem:[#allocation2 + $0xf58] sm:$0xff]  }
 0x214   :  { %10839 = vmatprep.subr.bf16.mxu1 %v11827_v31  ;;  %v11865_v31 = vld [vmem:[#allocation2 + $0xfd8] sm:$0xff]  }
 0x216   :  { %10860 = vmatpush3.bf16.msra.mxu0 %v11826_v30  ;;  %v11864_v30 = vld [vmem:[#allocation2 + $0xf18] sm:$0xff]  }
 0x217   :  { %10861 = vmatprep.subr.bf16.mxu0 %v11829_v33  ;;  %10840 = vmatpush3.bf16.msra.mxu1 %v11828_v32  ;;  %v11866_v32 = vld [vmem:[#allocation2 + $0xf98] sm:$0xff]   ;;  %v11867_v33 = vld [vmem:[#allocation2 + $0xf60] sm:$0xff]  }
 0x218   :  { %10841 = vmatprep.subr.bf16.mxu1 %v11831_v35  ;;  %v11869_v35 = vld [vmem:[#allocation2 + $0xfe0] sm:$0xff]  }
 0x21a   :  { %10862 = vmatpush3.bf16.msra.mxu0 %v11830_v34  ;;  %v11868_v34 = vld [vmem:[#allocation2 + $0xf20] sm:$0xff]  }
 0x21b   :  { %10863 = vmatprep.subr.bf16.mxu0 %v11833_v38  ;;  %10842 = vmatpush3.bf16.msra.mxu1 %v11832_v36  ;;  %v11870_v36 = vld [vmem:[#allocation2 + $0xfa0] sm:$0xff]   ;;  %v11871_v38 = vld [vmem:[#allocation2 + $0xf68] sm:$0xff]  }
 0x21c   :  { %10843 = vmatprep.subr.bf16.mxu1 %v11835_v40 }
 0x21e   :  { %10864 = vmatpush3.bf16.msra.mxu0 %v11834_v39  ;;  %v11872_v39 = vld [vmem:[#allocation2 + $0xf28] sm:$0xff]  }
 0x21f   :  { %10865 = vmatprep.subr.bf16.mxu0 %v11837_v42  ;;  %10844 = vmatpush3.bf16.msra.mxu1 %v11836_v41  ;;  %v11873_v41 = vld [vmem:[#allocation2 + $0xfe8] sm:$0xff]  }
 0x220   :  { %10845 = vmatprep.subr.bf16.mxu1 %v11839_v44 }
 0x221   :  { %v10543_v45 = vpop.f32.mrb[28].mxu1 }
 0x222   :  { %v10544_v47 = vpop.f32.mrb[29].mxu1  ;;  %10866 = vmatpush3.bf16.msra.mxu0 %v11838_v43  ;;  %v11874_v43 = vld [vmem:[#allocation2 + $0xfa8] sm:$0xff]  }
 0x223   :  { %v10545_v49 = vadd.f32 %v10544_v47, %v10543_v45  ;;  %v10546_v50 = vpop.f32.mrb[30].mxu1  ;;  %10867 = vmatprep.subr.bf16.mxu0 %v11841_v48  ;;  %10846 = vmatpush3.bf16.msra.mxu1 %v11840_v46 }
 0x224   :  { %v10565_v51 = vpop.f32.mrb[32].mxu0  ;;  %v10547_v54 = vpop.f32.mrb[31].mxu1  ;;  %10847 = vmatprep.subr.bf16.mxu1 %v11843_v53  ;;  %v11876_v50 = vld [vmem:[#allocation2 + $0xf30] sm:$0xff]  }
 0x225   :  { %v10566_v55 = vpop.f32.mrb[33].mxu0  ;;  %v7860_v56 = vadd.f32 %v10545_v49, %v12532_v16  ;;  %v2112_v16 = vcombine.high %v12545_v12, %v12545_v12  ;;  %v11875_v49 = vld [vmem:[#allocation2 + $0xf70] sm:$0xff]  }
 0x226   :  { %v10567_v57 = vadd.f32 %v10566_v55, %v10565_v51  ;;  %v10568_v58 = vpop.f32.mrb[34].mxu0  ;;  %10868 = vmatpush3.bf16.msra.mxu0 %v11842_v52  ;;  %v11877_v54 = vld [vmem:[#allocation2 + $0xff0] sm:$0xff]  }
 0x227   :  { %v10569_v60 = vpop.f32.mrb[35].mxu0  ;;  %10869 = vmatprep.subr.bf16.mxu0 %v11845_v61  ;;  %10848 = vmatpush3.bf16.msra.mxu1 %v11844_v59  ;;  %v2140_v22 = vrot.slane %v2112_v16, %v12413_v37  ;;  %v11879_v58 = vld [vmem:[#allocation2 + $0xf78] sm:$0xff]  }
 0x228   :  { %v12537_v62 = vadd.f32 %v10567_v57, %v7860_v56  ;;  %10849 = vmatprep.subr.bf16.mxu1 %v11847_v1  ;;  %v11878_v56 = vld [vmem:[#allocation2 + $0xfb0] sm:$0xff]   ;;  %v11880_v59 = vld [vmem:[#allocation2 + $0xf38] sm:$0xff]   ;;  %v11885_v1 = vld [vmem:[#allocation2 + $0x1000] sm:$0xff]  }
 0x229   :  { %v2144_v25 = vcombine.high %v2140_v22, %v2140_v22  ;;  %v11881_v60 = vld [vmem:[#allocation2 + $0xff8] sm:$0xff]  }
 0x22a   :  { %10870 = vmatpush3.bf16.msra.mxu0 %v11846_v63  ;;  %v11883_v61 = vld [vmem:[#allocation2 + $0xfb8] sm:$0xff]   ;;  %v11884_v63 = vld [vmem:[#allocation2 + $0x1040] sm:$0xff]  }
 0x22b   :  { %10871 = vmatprep.subr.bf16.mxu0 %v11849_v3  ;;  %10850 = vmatpush3.bf16.msra.mxu1 %v11848_v2  ;;  %v11886_v2 = vld [vmem:[#allocation2 + $0x10c0] sm:$0xff]   ;;  %v11899_v16 = vld [vmem:[#allocation2 + $0x1098] sm:$0xff]  }
 0x22c   :  { %10879 = vmatprep.subr.bf16.mxu1 %v11851_v8  ;;  %v11891_v8 = vld [vmem:[#allocation2 + $0x1088] sm:$0xff]  }
 0x22e   :  { %10872 = vmatpush3.bf16.msra.mxu0 %v11850_v6  ;;  %8418 = vmatmul.mubr.bf16.vlgmr.msra.gmra.mrb[56].mxu1 %v2119_v10  ;;  %v11889_v6 = vld [vmem:[#allocation2 + $0x1008] sm:$0xff]   ;;  %v11893_v10 = vld [vmem:[#allocation2 + $0x1010] sm:$0xff]  }
 0x22f   :  { %10901 = vmatprep.subr.bf16.mxu0 %v11853_v13  ;;  %10880 = vmatpush3.bf16.msra.mxu1 %v11852_v11  ;;  %v11894_v11 = vld [vmem:[#allocation2 + $0x10d0] sm:$0xff]   ;;  %v11896_v13 = vld [vmem:[#allocation2 + $0x1058] sm:$0xff]  }
 0x230   :  { %10881 = vmatprep.subr.bf16.mxu1 %v11855_v19  ;;  %8497 = vmatprep.mubr.bf16.mxu1 %v2140_v22  ;;  %v11901_v19 = vld [vmem:[#allocation2 + $0x1020] sm:$0xff]   ;;  %v11904_v22 = vld [vmem:[#allocation2 + $0x1068] sm:$0xff]  }
 0x231   :  { %8458 = vmatmul.mubr.bf16.vlgmr.msra.gmra.mrb[60].mxu0 %v2141_v18  ;;  %v11900_v18 = vld [vmem:[#allocation2 + $0x1060] sm:$0xff]  }
 0x232   :  { %10902 = vmatpush3.bf16.msra.mxu0 %v11854_v15  ;;  %8537 = vmatprep.mubr.bf16.mxu0 %v2144_v25  ;;  %v11898_v15 = vld [vmem:[#allocation2 + $0x10d8] sm:$0xff]  }
 0x233   :  { %10903 = vmatprep.subr.bf16.mxu0 %v11857_v23  ;;  %10882 = vmatpush3.bf16.msra.mxu1 %v11856_v21  ;;  %v11903_v21 = vld [vmem:[#allocation2 + $0x10a0] sm:$0xff]  }
 0x234   :  { %10883 = vmatprep.subr.bf16.mxu1 %v11859_v26  ;;  %v11906_v26 = vld [vmem:[#allocation2 + $0x10e8] sm:$0xff]  }
 0x236   :  { %10904 = vmatpush3.bf16.msra.mxu0 %v11858_v24  ;;  %v11905_v24 = vld [vmem:[#allocation2 + $0x1028] sm:$0xff]  }
 0x237   :  { %10905 = vmatprep.subr.bf16.mxu0 %v11861_v17  ;;  %10884 = vmatpush3.bf16.msra.mxu1 %v11860_v27 }
 0x238   :  { %10885 = vmatprep.subr.bf16.mxu1 %v11863_v29  ;;  %v11907_v29 = vld [vmem:[#allocation2 + $0x10a8] sm:$0xff]  }
 0x23a   :  { %10906 = vmatpush3.bf16.msra.mxu0 %v11862_v28 }
 0x23b   :  { %10907 = vmatprep.subr.bf16.mxu0 %v11865_v31  ;;  %10886 = vmatpush3.bf16.msra.mxu1 %v11864_v30  ;;  %v11908_v30 = vld [vmem:[#allocation2 + $0x1070] sm:$0xff]  }
 0x23c   :  { %10887 = vmatprep.subr.bf16.mxu1 %v11867_v33 }
 0x23e   :  { %10908 = vmatpush3.bf16.msra.mxu0 %v11866_v32 }
 0x23f   :  { %10909 = vmatprep.subr.bf16.mxu0 %v11869_v35  ;;  %10888 = vmatpush3.bf16.msra.mxu1 %v11868_v34 }
 0x240   :  { %10889 = vmatprep.subr.bf16.mxu1 %v11871_v38 }
 0x241   :  { %v10587_v40 = vpop.f32.mrb[32].mxu1 }
 0x242   :  { %v10588_v42 = vpop.f32.mrb[33].mxu1  ;;  %10910 = vmatpush3.bf16.msra.mxu0 %v11870_v36  ;;  %v11909_v36 = vld [vmem:[#allocation2 + $0x1030] sm:$0xff]  }
 0x243   :  { %v10589_v44 = vadd.f32 %v10588_v42, %v10587_v40  ;;  %v10590_v45 = vpop.f32.mrb[34].mxu1  ;;  %10911 = vmatprep.subr.bf16.mxu0 %v11873_v41  ;;  %10890 = vmatpush3.bf16.msra.mxu1 %v11872_v39  ;;  %v11910_v39 = vld [vmem:[#allocation2 + $0x10f0] sm:$0xff]   ;;  %v11912_v42 = vld [vmem:[#allocation2 + $0x1078] sm:$0xff]  }
 0x244   :  { %v10609_v46 = vpop.f32.mrb[36].mxu0  ;;  %v10591_v47 = vpop.f32.mrb[35].mxu1  ;;  %10891 = vmatprep.subr.bf16.mxu1 %v11875_v49  ;;  %v11911_v41 = vld [vmem:[#allocation2 + $0x10b0] sm:$0xff]   ;;  %v85_v45 = vld [vmem:[%s12688_s0 + $0x40] sm:$0xff] }
 0x245   :  { %v10610_v48 = vpop.f32.mrb[37].mxu0  ;;  %v7940_v51 = vadd.f32 %v10589_v44, %v12537_v62  ;;  %v2126_v62 = vrot.slane %v12545_v12, %v12413_v37  ;;  %v11895_v12 = vld [vmem:[#allocation2 + $0x1090] sm:$0xff]   ;;  %v11914_v44 = vld [vmem:[#allocation2 + $0x10f8] sm:$0xff]   ;;  %v11916_v49 = vld [vmem:[#allocation2 + $0x1140] sm:$0xff]  }
 0x246   :  { %v10611_v52 = vadd.f32 %v10610_v48, %v10609_v46  ;;  %v10612_v53 = vpop.f32.mrb[38].mxu0  ;;  %10912 = vmatpush3.bf16.msra.mxu0 %v11874_v43  ;;  %v11913_v43 = vld [vmem:[#allocation2 + $0x1038] sm:$0xff]   ;;  %v2152_v46 = vrot.slane %v85_v45, %v12413_v37  ;;  %v2145_v48 = vcombine.high %v85_v45, %v85_v45  ;;  %v11952_v45 = vld [vmem:[#allocation2 + $0x1280] sm:$0xff]  }
 0x247   :  { %v10613_v55 = vpop.f32.mrb[39].mxu0  ;;  %10913 = vmatprep.subr.bf16.mxu0 %v11877_v54  ;;  %10892 = vmatpush3.bf16.msra.mxu1 %v11876_v50  ;;  %v2142_v3 = vcombine.high %v2126_v62, %v2126_v62  ;;  %v11915_v47 = vld [vmem:[#allocation2 + $0x10b8] sm:$0xff]   ;;  %v11918_v54 = vld [vmem:[#allocation2 + $0x11c0] sm:$0xff]  }
 0x248   :  { %v12552_v57 = vadd.f32 %v10611_v52, %v7940_v51  ;;  %10893 = vmatprep.subr.bf16.mxu1 %v11879_v58  ;;  %v2160_v50 = vcombine.high %v2152_v46, %v2152_v46  ;;  %v2168_v51 = vrot.slane %v2152_v46, %v12413_v37  ;;  %v11917_v52 = vld [vmem:[#allocation2 + $0x1100] sm:$0xff]   ;;  %v12565_v53 = vrot.slane %v2145_v48, %v12413_v37  ;;  %v11953_v46 = vld [vmem:[#allocation2 + $0x1248] sm:$0xff]  }
 0x249   :  { %v11955_v48 = vld [vmem:[#allocation2 + $0x12c8] sm:$0xff]  }
 0x24a   :  { %10914 = vmatpush3.bf16.msra.mxu0 %v11878_v56  ;;  %v2182_v55 = vrot.slane %v2160_v50, %v12413_v37  ;;  %v11919_v56 = vld [vmem:[#allocation2 + $0x1180] sm:$0xff]   ;;  %v2190_v58 = vcombine.high %v2168_v51, %v2168_v51  ;;  %v11957_v50 = vld [vmem:[#allocation2 + $0x1250] sm:$0xff]  }
 0x24b   :  { %10915 = vmatprep.subr.bf16.mxu0 %v11881_v60  ;;  %10894 = vmatpush3.bf16.msra.mxu1 %v11880_v59  ;;  %v11920_v59 = vld [vmem:[#allocation2 + $0x1148] sm:$0xff]  }
 0x24c   :  { %10923 = vmatprep.subr.bf16.mxu1 %v11884_v63  ;;  %v2192_v60 = vcombine.high %v2182_v55, %v2182_v55  ;;  %v11922_v63 = vld [vmem:[#allocation2 + $0x11c8] sm:$0xff]  }
 0x24e   :  { %10916 = vmatpush3.bf16.msra.mxu0 %v11883_v61  ;;  %8498 = vmatmul.mubr.bf16.vlgmr.msra.gmra.mrb[60].mxu1 %v2126_v62  ;;  %v11921_v61 = vld [vmem:[#allocation2 + $0x1108] sm:$0xff]  }
 0x24f   :  { %10945 = vmatprep.subr.bf16.mxu0 %v11886_v2  ;;  %10924 = vmatpush3.bf16.msra.mxu1 %v11885_v1  ;;  %v11923_v1 = vld [vmem:[#allocation2 + $0x1188] sm:$0xff]  }
 0x250   :  { %10925 = vmatprep.subr.bf16.mxu1 %v11888_v5  ;;  %8577 = vmatprep.mubr.bf16.mxu1 %v2182_v55  ;;  %v11926_v5 = vld [vmem:[#allocation2 + $0x11d0] sm:$0xff]   ;;  %v11962_v55 = vld [vmem:[#allocation2 + $0x1218] sm:$0xff]  }
 0x251   :  { %8538 = vmatmul.mubr.bf16.vlgmr.msra.gmra.mrb[64].mxu0 %v2142_v3  ;;  %v11924_v3 = vld [vmem:[#allocation2 + $0x1150] sm:$0xff]  }
 0x252   :  { %10946 = vmatpush3.bf16.msra.mxu0 %v11887_v4  ;;  %8617 = vmatprep.mubr.bf16.mxu0 %v2192_v60  ;;  %v11925_v4 = vld [vmem:[#allocation2 + $0x1110] sm:$0xff]   ;;  %v11967_v60 = vld [vmem:[#allocation2 + $0x12e0] sm:$0xff]  }
 0x253   :  { %10947 = vmatprep.subr.bf16.mxu0 %v11890_v7  ;;  %10926 = vmatpush3.bf16.msra.mxu1 %v11889_v6  ;;  %v11927_v6 = vld [vmem:[#allocation2 + $0x1190] sm:$0xff]   ;;  %v11928_v7 = vld [vmem:[#allocation2 + $0x1158] sm:$0xff]  }
 0x254   :  { %10927 = vmatprep.subr.bf16.mxu1 %v11892_v9  ;;  %v11930_v9 = vld [vmem:[#allocation2 + $0x11d8] sm:$0xff]  }
 0x256   :  { %10948 = vmatpush3.bf16.msra.mxu0 %v11891_v8  ;;  %v11929_v8 = vld [vmem:[#allocation2 + $0x1118] sm:$0xff]  }
 0x257   :  { %10949 = vmatprep.subr.bf16.mxu0 %v11894_v11  ;;  %10928 = vmatpush3.bf16.msra.mxu1 %v11893_v10  ;;  %v11931_v10 = vld [vmem:[#allocation2 + $0x1198] sm:$0xff]   ;;  %v11932_v11 = vld [vmem:[#allocation2 + $0x1160] sm:$0xff]  }
 0x258   :  { %10929 = vmatprep.subr.bf16.mxu1 %v11896_v13  ;;  %v11934_v13 = vld [vmem:[#allocation2 + $0x11e0] sm:$0xff]  }
 0x25a   :  { %10950 = vmatpush3.bf16.msra.mxu0 %v11895_v12  ;;  %v11933_v12 = vld [vmem:[#allocation2 + $0x1120] sm:$0xff]  }
 0x25b   :  { %10951 = vmatprep.subr.bf16.mxu0 %v11898_v15  ;;  %10930 = vmatpush3.bf16.msra.mxu1 %v11897_v14  ;;  %v11935_v14 = vld [vmem:[#allocation2 + $0x11a0] sm:$0xff]   ;;  %v11936_v15 = vld [vmem:[#allocation2 + $0x1168] sm:$0xff]  }
 0x25c   :  { %10931 = vmatprep.subr.bf16.mxu1 %v11900_v18 }
 0x25e   :  { %10952 = vmatpush3.bf16.msra.mxu0 %v11899_v16  ;;  %v11937_v16 = vld [vmem:[#allocation2 + $0x1128] sm:$0xff]  }
 0x25f   :  { %10953 = vmatprep.subr.bf16.mxu0 %v11902_v20  ;;  %10932 = vmatpush3.bf16.msra.mxu1 %v11901_v19  ;;  %v11938_v19 = vld [vmem:[#allocation2 + $0x11e8] sm:$0xff]  }
 0x260   :  { %10933 = vmatprep.subr.bf16.mxu1 %v11904_v22 }
 0x261   :  { %v10631_v23 = vpop.f32.mrb[36].mxu1 }
 0x262   :  { %v10632_v25 = vpop.f32.mrb[37].mxu1  ;;  %10954 = vmatpush3.bf16.msra.mxu0 %v11903_v21  ;;  %v11939_v21 = vld [vmem:[#allocation2 + $0x11a8] sm:$0xff]  }
 0x263   :  { %v10633_v27 = vadd.f32 %v10632_v25, %v10631_v23  ;;  %v10634_v17 = vpop.f32.mrb[38].mxu1  ;;  %10955 = vmatprep.subr.bf16.mxu0 %v11906_v26  ;;  %10934 = vmatpush3.bf16.msra.mxu1 %v11905_v24 }
 0x264   :  { %v10653_v28 = vpop.f32.mrb[40].mxu0  ;;  %v10635_v31 = vpop.f32.mrb[39].mxu1  ;;  %10935 = vmatprep.subr.bf16.mxu1 %v11908_v30  ;;  %v11941_v17 = vld [vmem:[#allocation2 + $0x1130] sm:$0xff]  }
 0x265   :  { %v10654_v32 = vpop.f32.mrb[41].mxu0  ;;  %v8020_v33 = vadd.f32 %v10633_v27, %v12552_v57  ;;  %v2161_v57 = vcombine.high %v12565_v53, %v12565_v53  ;;  %v11940_v27 = vld [vmem:[#allocation2 + $0x1170] sm:$0xff]  }
 0x266   :  { %v10655_v34 = vadd.f32 %v10654_v32, %v10653_v28  ;;  %v10656_v35 = vpop.f32.mrb[42].mxu0  ;;  %10956 = vmatpush3.bf16.msra.mxu0 %v11907_v29  ;;  %v11942_v31 = vld [vmem:[#allocation2 + $0x11f0] sm:$0xff]  }
 0x267   :  { %v10657_v38 = vpop.f32.mrb[43].mxu0  ;;  %10957 = vmatprep.subr.bf16.mxu0 %v11910_v39  ;;  %10936 = vmatpush3.bf16.msra.mxu1 %v11909_v36  ;;  %v2189_v62 = vrot.slane %v2161_v57, %v12413_v37  ;;  %v11944_v35 = vld [vmem:[#allocation2 + $0x1178] sm:$0xff]  }
 0x268   :  { %v12557_v40 = vadd.f32 %v10655_v34, %v8020_v33  ;;  %10937 = vmatprep.subr.bf16.mxu1 %v11912_v42  ;;  %v11943_v33 = vld [vmem:[#allocation2 + $0x11b0] sm:$0xff]   ;;  %v11945_v36 = vld [vmem:[#allocation2 + $0x1138] sm:$0xff]   ;;  %v11950_v42 = vld [vmem:[#allocation2 + $0x1200] sm:$0xff]  }
 0x269   :  { %v2193_v2 = vcombine.high %v2189_v62, %v2189_v62  ;;  %v11946_v38 = vld [vmem:[#allocation2 + $0x11f8] sm:$0xff]  }
 0x26a   :  { %10958 = vmatpush3.bf16.msra.mxu0 %v11911_v41  ;;  %v11948_v39 = vld [vmem:[#allocation2 + $0x11b8] sm:$0xff]   ;;  %v11949_v41 = vld [vmem:[#allocation2 + $0x1240] sm:$0xff]  }
 0x26b   :  { %10959 = vmatprep.subr.bf16.mxu0 %v11914_v44  ;;  %10938 = vmatpush3.bf16.msra.mxu1 %v11913_v43  ;;  %v11951_v43 = vld [vmem:[#allocation2 + $0x12c0] sm:$0xff]   ;;  %v11964_v57 = vld [vmem:[#allocation2 + $0x1298] sm:$0xff]  }
 0x26c   :  { %10967 = vmatprep.subr.bf16.mxu1 %v11916_v49  ;;  %v11956_v49 = vld [vmem:[#allocation2 + $0x1288] sm:$0xff]  }
 0x26e   :  { %10960 = vmatpush3.bf16.msra.mxu0 %v11915_v47  ;;  %8578 = vmatmul.mubr.bf16.vlgmr.msra.gmra.mrb[64].mxu1 %v2168_v51  ;;  %v11954_v47 = vld [vmem:[#allocation2 + $0x1208] sm:$0xff]   ;;  %v11958_v51 = vld [vmem:[#allocation2 + $0x1210] sm:$0xff]  }
 0x26f   :  { %10989 = vmatprep.subr.bf16.mxu0 %v11918_v54  ;;  %10968 = vmatpush3.bf16.msra.mxu1 %v11917_v52  ;;  %v11959_v52 = vld [vmem:[#allocation2 + $0x12d0] sm:$0xff]   ;;  %v11961_v54 = vld [vmem:[#allocation2 + $0x1258] sm:$0xff]  }
 0x270   :  { %10969 = vmatprep.subr.bf16.mxu1 %v11920_v59  ;;  %8657 = vmatprep.mubr.bf16.mxu1 %v2189_v62  ;;  %v11966_v59 = vld [vmem:[#allocation2 + $0x1220] sm:$0xff]   ;;  %v11969_v62 = vld [vmem:[#allocation2 + $0x1268] sm:$0xff]  }
 0x271   :  { %8618 = vmatmul.mubr.bf16.vlgmr.msra.gmra.mrb[68].mxu0 %v2190_v58  ;;  %v11965_v58 = vld [vmem:[#allocation2 + $0x1260] sm:$0xff]  }
 0x272   :  { %10990 = vmatpush3.bf16.msra.mxu0 %v11919_v56  ;;  %8697 = vmatprep.mubr.bf16.mxu0 %v2193_v2  ;;  %v11963_v56 = vld [vmem:[#allocation2 + $0x12d8] sm:$0xff]  }
 0x273   :  { %10991 = vmatprep.subr.bf16.mxu0 %v11922_v63  ;;  %10970 = vmatpush3.bf16.msra.mxu1 %v11921_v61  ;;  %v11968_v61 = vld [vmem:[#allocation2 + $0x12a0] sm:$0xff]  }
 0x274   :  { %10971 = vmatprep.subr.bf16.mxu1 %v11924_v3  ;;  %v11971_v3 = vld [vmem:[#allocation2 + $0x12e8] sm:$0xff]  }
 0x276   :  { %10992 = vmatpush3.bf16.msra.mxu0 %v11923_v1  ;;  %v11970_v1 = vld [vmem:[#allocation2 + $0x1228] sm:$0xff]  }
 0x277   :  { %10993 = vmatprep.subr.bf16.mxu0 %v11926_v5  ;;  %10972 = vmatpush3.bf16.msra.mxu1 %v11925_v4 }
 0x278   :  { %10973 = vmatprep.subr.bf16.mxu1 %v11928_v7  ;;  %v11972_v7 = vld [vmem:[#allocation2 + $0x12a8] sm:$0xff]  }
 0x27a   :  { %10994 = vmatpush3.bf16.msra.mxu0 %v11927_v6 }
 0x27b   :  { %10995 = vmatprep.subr.bf16.mxu0 %v11930_v9  ;;  %10974 = vmatpush3.bf16.msra.mxu1 %v11929_v8  ;;  %v11973_v8 = vld [vmem:[#allocation2 + $0x1270] sm:$0xff]  }
 0x27c   :  { %10975 = vmatprep.subr.bf16.mxu1 %v11932_v11 }
 0x27e   :  { %10996 = vmatpush3.bf16.msra.mxu0 %v11931_v10 }
 0x27f   :  { %10997 = vmatprep.subr.bf16.mxu0 %v11934_v13  ;;  %10976 = vmatpush3.bf16.msra.mxu1 %v11933_v12 }
 0x280   :  { %10977 = vmatprep.subr.bf16.mxu1 %v11936_v15 }
 0x281   :  { %v10675_v18 = vpop.f32.mrb[40].mxu1 }
 0x282   :  { %v10676_v20 = vpop.f32.mrb[41].mxu1  ;;  %10998 = vmatpush3.bf16.msra.mxu0 %v11935_v14  ;;  %v11974_v14 = vld [vmem:[#allocation2 + $0x1230] sm:$0xff]  }
 0x283   :  { %v10677_v22 = vadd.f32 %v10676_v20, %v10675_v18  ;;  %v10678_v23 = vpop.f32.mrb[42].mxu1  ;;  %10999 = vmatprep.subr.bf16.mxu0 %v11938_v19  ;;  %10978 = vmatpush3.bf16.msra.mxu1 %v11937_v16  ;;  %v11975_v16 = vld [vmem:[#allocation2 + $0x12f0] sm:$0xff]   ;;  %v11977_v20 = vld [vmem:[#allocation2 + $0x1278] sm:$0xff]  }
 0x284   :  { %v10697_v24 = vpop.f32.mrb[44].mxu0  ;;  %v10679_v25 = vpop.f32.mrb[43].mxu1  ;;  %10979 = vmatprep.subr.bf16.mxu1 %v11940_v27  ;;  %v11976_v19 = vld [vmem:[#allocation2 + $0x12b0] sm:$0xff]   ;;  %v86_v23 = vld [vmem:[%s12688_s0 + $0x48] sm:$0xff]  ;;  %v11981_v27 = vld [vmem:[#allocation2 + $0x1340] sm:$0xff]  }
 0x285   :  { %v10698_v26 = vpop.f32.mrb[45].mxu0  ;;  %v8100_v28 = vadd.f32 %v10677_v22, %v12557_v40  ;;  %v2175_v40 = vrot.slane %v12565_v53, %v12413_v37  ;;  %v11960_v53 = vld [vmem:[#allocation2 + $0x1290] sm:$0xff]   ;;  %v11979_v22 = vld [vmem:[#allocation2 + $0x12f8] sm:$0xff]  }
 0x286   :  { %v10699_v29 = vadd.f32 %v10698_v26, %v10697_v24  ;;  %v10700_v30 = vpop.f32.mrb[46].mxu0  ;;  %11000 = vmatpush3.bf16.msra.mxu0 %v11939_v21  ;;  %v11978_v21 = vld [vmem:[#allocation2 + $0x1238] sm:$0xff]   ;;  %v2201_v24 = vrot.slane %v86_v23, %v12413_v37  ;;  %v2194_v26 = vcombine.high %v86_v23, %v86_v23  ;;  %v12017_v23 = vld [vmem:[#allocation2 + $0x1480] sm:$0xff]  }
 0x287   :  { %v10701_v32 = vpop.f32.mrb[47].mxu0  ;;  %11001 = vmatprep.subr.bf16.mxu0 %v11942_v31  ;;  %10980 = vmatpush3.bf16.msra.mxu1 %v11941_v17  ;;  %v2191_v44 = vcombine.high %v2175_v40, %v2175_v40  ;;  %v11980_v25 = vld [vmem:[#allocation2 + $0x12b8] sm:$0xff]   ;;  %v11983_v31 = vld [vmem:[#allocation2 + $0x13c0] sm:$0xff]  }
 0x288   :  { %v12572_v34 = vadd.f32 %v10699_v29, %v8100_v28  ;;  %10981 = vmatprep.subr.bf16.mxu1 %v11944_v35  ;;  %v2209_v17 = vcombine.high %v2201_v24, %v2201_v24  ;;  %v2217_v28 = vrot.slane %v2201_v24, %v12413_v37  ;;  %v11982_v29 = vld [vmem:[#allocation2 + $0x1300] sm:$0xff]   ;;  %v12585_v30 = vrot.slane %v2194_v26, %v12413_v37  ;;  %v12018_v24 = vld [vmem:[#allocation2 + $0x1448] sm:$0xff]  }
 0x289   :  { %v12020_v26 = vld [vmem:[#allocation2 + $0x14c8] sm:$0xff]  }
 0x28a   :  { %11002 = vmatpush3.bf16.msra.mxu0 %v11943_v33  ;;  %v2231_v32 = vrot.slane %v2209_v17, %v12413_v37  ;;  %v11984_v33 = vld [vmem:[#allocation2 + $0x1380] sm:$0xff]   ;;  %v2239_v35 = vcombine.high %v2217_v28, %v2217_v28  ;;  %v12022_v17 = vld [vmem:[#allocation2 + $0x1450] sm:$0xff]  }
 0x28b   :  { %11003 = vmatprep.subr.bf16.mxu0 %v11946_v38  ;;  %10982 = vmatpush3.bf16.msra.mxu1 %v11945_v36  ;;  %v11985_v36 = vld [vmem:[#allocation2 + $0x1348] sm:$0xff]  }
 0x28c   :  { %11011 = vmatprep.subr.bf16.mxu1 %v11949_v41  ;;  %v2241_v38 = vcombine.high %v2231_v32, %v2231_v32  ;;  %v11987_v41 = vld [vmem:[#allocation2 + $0x13c8] sm:$0xff]  }
 0x28e   :  { %11004 = vmatpush3.bf16.msra.mxu0 %v11948_v39  ;;  %8658 = vmatmul.mubr.bf16.vlgmr.msra.gmra.mrb[68].mxu1 %v2175_v40  ;;  %v11986_v39 = vld [vmem:[#allocation2 + $0x1308] sm:$0xff]  }
 0x28f   :  { %11033 = vmatprep.subr.bf16.mxu0 %v11951_v43  ;;  %11012 = vmatpush3.bf16.msra.mxu1 %v11950_v42  ;;  %v11988_v42 = vld [vmem:[#allocation2 + $0x1388] sm:$0xff]  }
 0x290   :  { %11013 = vmatprep.subr.bf16.mxu1 %v11953_v46  ;;  %8737 = vmatprep.mubr.bf16.mxu1 %v2231_v32  ;;  %v11991_v46 = vld [vmem:[#allocation2 + $0x13d0] sm:$0xff]   ;;  %v12027_v32 = vld [vmem:[#allocation2 + $0x1418] sm:$0xff]  }
 0x291   :  { %8698 = vmatmul.mubr.bf16.vlgmr.msra.gmra.mrb[72].mxu0 %v2191_v44  ;;  %v11989_v44 = vld [vmem:[#allocation2 + $0x1350] sm:$0xff]  }
 0x292   :  { %11034 = vmatpush3.bf16.msra.mxu0 %v11952_v45  ;;  %8777 = vmatprep.mubr.bf16.mxu0 %v2241_v38  ;;  %v11990_v45 = vld [vmem:[#allocation2 + $0x1310] sm:$0xff]   ;;  %v12032_v38 = vld [vmem:[#allocation2 + $0x14e0] sm:$0xff]  }
 0x293   :  { %11035 = vmatprep.subr.bf16.mxu0 %v11955_v48  ;;  %11014 = vmatpush3.bf16.msra.mxu1 %v11954_v47  ;;  %v11992_v47 = vld [vmem:[#allocation2 + $0x1390] sm:$0xff]   ;;  %v11993_v48 = vld [vmem:[#allocation2 + $0x1358] sm:$0xff]  }
 0x294   :  { %11015 = vmatprep.subr.bf16.mxu1 %v11957_v50  ;;  %v11995_v50 = vld [vmem:[#allocation2 + $0x13d8] sm:$0xff]  }
 0x296   :  { %11036 = vmatpush3.bf16.msra.mxu0 %v11956_v49  ;;  %v11994_v49 = vld [vmem:[#allocation2 + $0x1318] sm:$0xff]  }
 0x297   :  { %11037 = vmatprep.subr.bf16.mxu0 %v11959_v52  ;;  %11016 = vmatpush3.bf16.msra.mxu1 %v11958_v51  ;;  %v11996_v51 = vld [vmem:[#allocation2 + $0x1398] sm:$0xff]   ;;  %v11997_v52 = vld [vmem:[#allocation2 + $0x1360] sm:$0xff]  }
 0x298   :  { %11017 = vmatprep.subr.bf16.mxu1 %v11961_v54  ;;  %v11999_v54 = vld [vmem:[#allocation2 + $0x13e0] sm:$0xff]  }
 0x29a   :  { %11038 = vmatpush3.bf16.msra.mxu0 %v11960_v53  ;;  %v11998_v53 = vld [vmem:[#allocation2 + $0x1320] sm:$0xff]  }
 0x29b   :  { %11039 = vmatprep.subr.bf16.mxu0 %v11963_v56  ;;  %11018 = vmatpush3.bf16.msra.mxu1 %v11962_v55  ;;  %v12000_v55 = vld [vmem:[#allocation2 + $0x13a0] sm:$0xff]   ;;  %v12001_v56 = vld [vmem:[#allocation2 + $0x1368] sm:$0xff]  }
 0x29c   :  { %11019 = vmatprep.subr.bf16.mxu1 %v11965_v58 }
 0x29e   :  { %11040 = vmatpush3.bf16.msra.mxu0 %v11964_v57  ;;  %v12002_v57 = vld [vmem:[#allocation2 + $0x1328] sm:$0xff]  }
 0x29f   :  { %11041 = vmatprep.subr.bf16.mxu0 %v11967_v60  ;;  %11020 = vmatpush3.bf16.msra.mxu1 %v11966_v59  ;;  %v12003_v59 = vld [vmem:[#allocation2 + $0x13e8] sm:$0xff]  }
 0x2a0   :  { %11021 = vmatprep.subr.bf16.mxu1 %v11969_v62 }
 0x2a1   :  { %v10719_v63 = vpop.f32.mrb[44].mxu1 }
 0x2a2   :  { %v10720_v2 = vpop.f32.mrb[45].mxu1  ;;  %11042 = vmatpush3.bf16.msra.mxu0 %v11968_v61  ;;  %v12004_v61 = vld [vmem:[#allocation2 + $0x13a8] sm:$0xff]  }
 0x2a3   :  { %v10721_v4 = vadd.f32 %v10720_v2, %v10719_v63  ;;  %v10722_v5 = vpop.f32.mrb[46].mxu1  ;;  %11043 = vmatprep.subr.bf16.mxu0 %v11971_v3  ;;  %11022 = vmatpush3.bf16.msra.mxu1 %v11970_v1 }
 0x2a4   :  { %v10741_v6 = vpop.f32.mrb[48].mxu0  ;;  %v10723_v9 = vpop.f32.mrb[47].mxu1  ;;  %11023 = vmatprep.subr.bf16.mxu1 %v11973_v8  ;;  %v12006_v5 = vld [vmem:[#allocation2 + $0x1330] sm:$0xff]  }
 0x2a5   :  { %v10742_v10 = vpop.f32.mrb[49].mxu0  ;;  %v8180_v11 = vadd.f32 %v10721_v4, %v12572_v34  ;;  %v2210_v34 = vcombine.high %v12585_v30, %v12585_v30  ;;  %v12005_v4 = vld [vmem:[#allocation2 + $0x1370] sm:$0xff]  }
 0x2a6   :  { %v10743_v12 = vadd.f32 %v10742_v10, %v10741_v6  ;;  %v10744_v13 = vpop.f32.mrb[50].mxu0  ;;  %11044 = vmatpush3.bf16.msra.mxu0 %v11972_v7  ;;  %v12007_v9 = vld [vmem:[#allocation2 + $0x13f0] sm:$0xff]  }
 0x2a7   :  { %v10745_v15 = vpop.f32.mrb[51].mxu0  ;;  %11045 = vmatprep.subr.bf16.mxu0 %v11975_v16  ;;  %11024 = vmatpush3.bf16.msra.mxu1 %v11974_v14  ;;  %v2238_v40 = vrot.slane %v2210_v34, %v12413_v37  ;;  %v12009_v13 = vld [vmem:[#allocation2 + $0x1378] sm:$0xff]  }
 0x2a8   :  { %v12577_v18 = vadd.f32 %v10743_v12, %v8180_v11  ;;  %11025 = vmatprep.subr.bf16.mxu1 %v11977_v20  ;;  %v12008_v11 = vld [vmem:[#allocation2 + $0x13b0] sm:$0xff]   ;;  %v12010_v14 = vld [vmem:[#allocation2 + $0x1338] sm:$0xff]   ;;  %v12015_v20 = vld [vmem:[#allocation2 + $0x1400] sm:$0xff]  }
 0x2a9   :  { %v2242_v43 = vcombine.high %v2238_v40, %v2238_v40  ;;  %v12011_v15 = vld [vmem:[#allocation2 + $0x13f8] sm:$0xff]  }
 0x2aa   :  { %11046 = vmatpush3.bf16.msra.mxu0 %v11976_v19  ;;  %v12013_v16 = vld [vmem:[#allocation2 + $0x13b8] sm:$0xff]   ;;  %v12014_v19 = vld [vmem:[#allocation2 + $0x1440] sm:$0xff]  }
 0x2ab   :  { %11047 = vmatprep.subr.bf16.mxu0 %v11979_v22  ;;  %11026 = vmatpush3.bf16.msra.mxu1 %v11978_v21  ;;  %v12016_v21 = vld [vmem:[#allocation2 + $0x14c0] sm:$0xff]   ;;  %v12029_v34 = vld [vmem:[#allocation2 + $0x1498] sm:$0xff]  }
 0x2ac   :  { %11055 = vmatprep.subr.bf16.mxu1 %v11981_v27  ;;  %v12021_v27 = vld [vmem:[#allocation2 + $0x1488] sm:$0xff]  }
 0x2ae   :  { %11048 = vmatpush3.bf16.msra.mxu0 %v11980_v25  ;;  %8738 = vmatmul.mubr.bf16.vlgmr.msra.gmra.mrb[72].mxu1 %v2217_v28  ;;  %v12019_v25 = vld [vmem:[#allocation2 + $0x1408] sm:$0xff]   ;;  %v12023_v28 = vld [vmem:[#allocation2 + $0x1410] sm:$0xff]  }
 0x2af   :  { %11077 = vmatprep.subr.bf16.mxu0 %v11983_v31  ;;  %11056 = vmatpush3.bf16.msra.mxu1 %v11982_v29  ;;  %v12024_v29 = vld [vmem:[#allocation2 + $0x14d0] sm:$0xff]   ;;  %v12026_v31 = vld [vmem:[#allocation2 + $0x1458] sm:$0xff]  }
 0x2b0   :  { %11057 = vmatprep.subr.bf16.mxu1 %v11985_v36  ;;  %8817 = vmatprep.mubr.bf16.mxu1 %v2238_v40  ;;  %v12031_v36 = vld [vmem:[#allocation2 + $0x1420] sm:$0xff]   ;;  %v12034_v40 = vld [vmem:[#allocation2 + $0x1468] sm:$0xff]  }
 0x2b1   :  { %8778 = vmatmul.mubr.bf16.vlgmr.msra.gmra.mrb[76].mxu0 %v2239_v35  ;;  %v12030_v35 = vld [vmem:[#allocation2 + $0x1460] sm:$0xff]  }
 0x2b2   :  { %11078 = vmatpush3.bf16.msra.mxu0 %v11984_v33  ;;  %8857 = vmatprep.mubr.bf16.mxu0 %v2242_v43  ;;  %v12028_v33 = vld [vmem:[#allocation2 + $0x14d8] sm:$0xff]  }
 0x2b3   :  { %11079 = vmatprep.subr.bf16.mxu0 %v11987_v41  ;;  %11058 = vmatpush3.bf16.msra.mxu1 %v11986_v39  ;;  %v12033_v39 = vld [vmem:[#allocation2 + $0x14a0] sm:$0xff]  }
 0x2b4   :  { %11059 = vmatprep.subr.bf16.mxu1 %v11989_v44  ;;  %v12036_v44 = vld [vmem:[#allocation2 + $0x14e8] sm:$0xff]  }
 0x2b6   :  { %11080 = vmatpush3.bf16.msra.mxu0 %v11988_v42  ;;  %v12035_v42 = vld [vmem:[#allocation2 + $0x1428] sm:$0xff]  }
 0x2b7   :  { %11081 = vmatprep.subr.bf16.mxu0 %v11991_v46  ;;  %11060 = vmatpush3.bf16.msra.mxu1 %v11990_v45 }
 0x2b8   :  { %11061 = vmatprep.subr.bf16.mxu1 %v11993_v48  ;;  %v12037_v48 = vld [vmem:[#allocation2 + $0x14a8] sm:$0xff]  }
 0x2ba   :  { %11082 = vmatpush3.bf16.msra.mxu0 %v11992_v47 }
 0x2bb   :  { %11083 = vmatprep.subr.bf16.mxu0 %v11995_v50  ;;  %11062 = vmatpush3.bf16.msra.mxu1 %v11994_v49  ;;  %v12038_v49 = vld [vmem:[#allocation2 + $0x1470] sm:$0xff]  }
 0x2bc   :  { %11063 = vmatprep.subr.bf16.mxu1 %v11997_v52 }
 0x2be   :  { %11084 = vmatpush3.bf16.msra.mxu0 %v11996_v51 }
 0x2bf   :  { %11085 = vmatprep.subr.bf16.mxu0 %v11999_v54  ;;  %11064 = vmatpush3.bf16.msra.mxu1 %v11998_v53 }
 0x2c0   :  { %11065 = vmatprep.subr.bf16.mxu1 %v12001_v56 }
 0x2c1   :  { %v10763_v58 = vpop.f32.mrb[48].mxu1 }
 0x2c2   :  { %v10764_v60 = vpop.f32.mrb[49].mxu1  ;;  %11086 = vmatpush3.bf16.msra.mxu0 %v12000_v55  ;;  %v12039_v55 = vld [vmem:[#allocation2 + $0x1430] sm:$0xff]  }
 0x2c3   :  { %v10765_v62 = vadd.f32 %v10764_v60, %v10763_v58  ;;  %v10766_v63 = vpop.f32.mrb[50].mxu1  ;;  %11087 = vmatprep.subr.bf16.mxu0 %v12003_v59  ;;  %11066 = vmatpush3.bf16.msra.mxu1 %v12002_v57  ;;  %v12040_v57 = vld [vmem:[#allocation2 + $0x14f0] sm:$0xff]   ;;  %v12042_v60 = vld [vmem:[#allocation2 + $0x1478] sm:$0xff]  }
 0x2c4   :  { %v10785_v1 = vpop.f32.mrb[52].mxu0  ;;  %v10767_v2 = vpop.f32.mrb[51].mxu1  ;;  %11067 = vmatprep.subr.bf16.mxu1 %v12005_v4  ;;  %v12041_v59 = vld [vmem:[#allocation2 + $0x14b0] sm:$0xff]   ;;  %v12046_v4 = vld [vmem:[#allocation2 + $0x1540] sm:$0xff]  }
 0x2c5   :  { %v10786_v3 = vpop.f32.mrb[53].mxu0  ;;  %v8260_v6 = vadd.f32 %v10765_v62, %v12577_v18  ;;  %v2224_v18 = vrot.slane %v12585_v30, %v12413_v37  ;;  %v12025_v30 = vld [vmem:[#allocation2 + $0x1490] sm:$0xff]   ;;  %v12044_v62 = vld [vmem:[#allocation2 + $0x14f8] sm:$0xff]  }
 0x2c6   :  { %v10787_v7 = vadd.f32 %v10786_v3, %v10785_v1  ;;  %v10788_v8 = vpop.f32.mrb[54].mxu0  ;;  %11088 = vmatpush3.bf16.msra.mxu0 %v12004_v61  ;;  %v12043_v61 = vld [vmem:[#allocation2 + $0x1438] sm:$0xff]   ;;  %v87_v63 = vld [vmem:[%s12688_s0 + $0x50] sm:$0xff] }
 0x2c7   :  { %v10789_v10 = vpop.f32.mrb[55].mxu0  ;;  %11089 = vmatprep.subr.bf16.mxu0 %v12007_v9  ;;  %11068 = vmatpush3.bf16.msra.mxu1 %v12006_v5  ;;  %v2240_v22 = vcombine.high %v2224_v18, %v2224_v18  ;;  %v2250_v1 = vrot.slane %v87_v63, %v12413_v37  ;;  %v12045_v2 = vld [vmem:[#allocation2 + $0x14b8] sm:$0xff]   ;;  %v2243_v3 = vcombine.high %v87_v63, %v87_v63  ;;  %v12048_v9 = vld [vmem:[#allocation2 + $0x15c0] sm:$0xff]  }
 0x2c8   :  { %v12592_v12 = vadd.f32 %v10787_v7, %v8260_v6  ;;  %11069 = vmatprep.subr.bf16.mxu1 %v12009_v13  ;;  %v12047_v7 = vld [vmem:[#allocation2 + $0x1500] sm:$0xff]  }
 0x2c9   :  { %v2258_v5 = vcombine.high %v2250_v1, %v2250_v1  ;;  %v2266_v6 = vrot.slane %v2250_v1, %v12413_v37  ;;  %v12605_v8 = vrot.slane %v2243_v3, %v12413_v37  ;;  %v12082_v63 = vld [vmem:[#allocation2 + $0x1680] sm:$0xff]   ;;  %v12083_v1 = vld [vmem:[#allocation2 + $0x1648] sm:$0xff]  }
 0x2ca   :  { %11090 = vmatpush3.bf16.msra.mxu0 %v12008_v11  ;;  %v12049_v11 = vld [vmem:[#allocation2 + $0x1580] sm:$0xff]   ;;  %v12085_v3 = vld [vmem:[#allocation2 + $0x16c8] sm:$0xff]  }
 0x2cb   :  { %11091 = vmatprep.subr.bf16.mxu0 %v12011_v15  ;;  %11070 = vmatpush3.bf16.msra.mxu1 %v12010_v14  ;;  %v2280_v10 = vrot.slane %v2258_v5, %v12413_v37  ;;  %v2288_v13 = vcombine.high %v2266_v6, %v2266_v6  ;;  %v12050_v14 = vld [vmem:[#allocation2 + $0x1548] sm:$0xff]   ;;  %v12087_v5 = vld [vmem:[#allocation2 + $0x1650] sm:$0xff]  }
 0x2cc   :  { %11099 = vmatprep.subr.bf16.mxu1 %v12014_v19  ;;  %v12052_v19 = vld [vmem:[#allocation2 + $0x15c8] sm:$0xff]  }
 0x2cd   :  { %v2290_v15 = vcombine.high %v2280_v10, %v2280_v10 }
 0x2ce   :  { %11092 = vmatpush3.bf16.msra.mxu0 %v12013_v16  ;;  %8818 = vmatmul.mubr.bf16.vlgmr.msra.gmra.mrb[76].mxu1 %v2224_v18  ;;  %v12051_v16 = vld [vmem:[#allocation2 + $0x1508] sm:$0xff]  }
 0x2cf   :  { %11121 = vmatprep.subr.bf16.mxu0 %v12016_v21  ;;  %11100 = vmatpush3.bf16.msra.mxu1 %v12015_v20  ;;  %v12053_v20 = vld [vmem:[#allocation2 + $0x1588] sm:$0xff]  }
 0x2d0   :  { %11101 = vmatprep.subr.bf16.mxu1 %v12018_v24  ;;  %8897 = vmatprep.mubr.bf16.mxu1 %v2280_v10  ;;  %v12056_v24 = vld [vmem:[#allocation2 + $0x15d0] sm:$0xff]   ;;  %v12092_v10 = vld [vmem:[#allocation2 + $0x1618] sm:$0xff]  }
 0x2d1   :  { %8858 = vmatmul.mubr.bf16.vlgmr.msra.gmra.mrb[80].mxu0 %v2240_v22  ;;  %v12054_v22 = vld [vmem:[#allocation2 + $0x1550] sm:$0xff]  }
 0x2d2   :  { %11122 = vmatpush3.bf16.msra.mxu0 %v12017_v23  ;;  %8937 = vmatprep.mubr.bf16.mxu0 %v2290_v15  ;;  %v12055_v23 = vld [vmem:[#allocation2 + $0x1510] sm:$0xff]   ;;  %v12097_v15 = vld [vmem:[#allocation2 + $0x16e0] sm:$0xff]  }
 0x2d3   :  { %11123 = vmatprep.subr.bf16.mxu0 %v12020_v26  ;;  %11102 = vmatpush3.bf16.msra.mxu1 %v12019_v25  ;;  %v12057_v25 = vld [vmem:[#allocation2 + $0x1590] sm:$0xff]   ;;  %v12058_v26 = vld [vmem:[#allocation2 + $0x1558] sm:$0xff]  }
 0x2d4   :  { %11103 = vmatprep.subr.bf16.mxu1 %v12022_v17  ;;  %v12060_v17 = vld [vmem:[#allocation2 + $0x15d8] sm:$0xff]  }
 0x2d6   :  { %11124 = vmatpush3.bf16.msra.mxu0 %v12021_v27  ;;  %v12059_v27 = vld [vmem:[#allocation2 + $0x1518] sm:$0xff]  }
 0x2d7   :  { %11125 = vmatprep.subr.bf16.mxu0 %v12024_v29  ;;  %11104 = vmatpush3.bf16.msra.mxu1 %v12023_v28  ;;  %v12061_v28 = vld [vmem:[#allocation2 + $0x1598] sm:$0xff]   ;;  %v12062_v29 = vld [vmem:[#allocation2 + $0x1560] sm:$0xff]  }
 0x2d8   :  { %11105 = vmatprep.subr.bf16.mxu1 %v12026_v31  ;;  %v12064_v31 = vld [vmem:[#allocation2 + $0x15e0] sm:$0xff]  }
 0x2da   :  { %11126 = vmatpush3.bf16.msra.mxu0 %v12025_v30  ;;  %v12063_v30 = vld [vmem:[#allocation2 + $0x1520] sm:$0xff]  }
 0x2db   :  { %11127 = vmatprep.subr.bf16.mxu0 %v12028_v33  ;;  %11106 = vmatpush3.bf16.msra.mxu1 %v12027_v32  ;;  %v12065_v32 = vld [vmem:[#allocation2 + $0x15a0] sm:$0xff]   ;;  %v12066_v33 = vld [vmem:[#allocation2 + $0x1568] sm:$0xff]  }
 0x2dc   :  { %11107 = vmatprep.subr.bf16.mxu1 %v12030_v35 }
 0x2de   :  { %11128 = vmatpush3.bf16.msra.mxu0 %v12029_v34  ;;  %v12067_v34 = vld [vmem:[#allocation2 + $0x1528] sm:$0xff]  }
 0x2df   :  { %11129 = vmatprep.subr.bf16.mxu0 %v12032_v38  ;;  %11108 = vmatpush3.bf16.msra.mxu1 %v12031_v36  ;;  %v12068_v36 = vld [vmem:[#allocation2 + $0x15e8] sm:$0xff]  }
 0x2e0   :  { %11109 = vmatprep.subr.bf16.mxu1 %v12034_v40 }
 0x2e1   :  { %v10807_v41 = vpop.f32.mrb[52].mxu1 }
 0x2e2   :  { %v10808_v43 = vpop.f32.mrb[53].mxu1  ;;  %11130 = vmatpush3.bf16.msra.mxu0 %v12033_v39  ;;  %v12069_v39 = vld [vmem:[#allocation2 + $0x15a8] sm:$0xff]  }
 0x2e3   :  { %v10809_v45 = vadd.f32 %v10808_v43, %v10807_v41  ;;  %v10810_v46 = vpop.f32.mrb[54].mxu1  ;;  %11131 = vmatprep.subr.bf16.mxu0 %v12036_v44  ;;  %11110 = vmatpush3.bf16.msra.mxu1 %v12035_v42 }
 0x2e4   :  { %v10829_v47 = vpop.f32.mrb[56].mxu0  ;;  %v10811_v50 = vpop.f32.mrb[55].mxu1  ;;  %11111 = vmatprep.subr.bf16.mxu1 %v12038_v49  ;;  %v12071_v46 = vld [vmem:[#allocation2 + $0x1530] sm:$0xff]  }
 0x2e5   :  { %v10830_v51 = vpop.f32.mrb[57].mxu0  ;;  %v8340_v52 = vadd.f32 %v10809_v45, %v12592_v12  ;;  %v2259_v12 = vcombine.high %v12605_v8, %v12605_v8  ;;  %v12070_v45 = vld [vmem:[#allocation2 + $0x1570] sm:$0xff]  }
 0x2e6   :  { %v10831_v53 = vadd.f32 %v10830_v51, %v10829_v47  ;;  %v10832_v54 = vpop.f32.mrb[58].mxu0  ;;  %11132 = vmatpush3.bf16.msra.mxu0 %v12037_v48  ;;  %v12072_v50 = vld [vmem:[#allocation2 + $0x15f0] sm:$0xff]  }
 0x2e7   :  { %v10833_v56 = vpop.f32.mrb[59].mxu0  ;;  %11133 = vmatprep.subr.bf16.mxu0 %v12040_v57  ;;  %11112 = vmatpush3.bf16.msra.mxu1 %v12039_v55  ;;  %v2287_v18 = vrot.slane %v2259_v12, %v12413_v37  ;;  %v12074_v54 = vld [vmem:[#allocation2 + $0x1578] sm:$0xff]  }
 0x2e8   :  { %v12597_v58 = vadd.f32 %v10831_v53, %v8340_v52  ;;  %11113 = vmatprep.subr.bf16.mxu1 %v12042_v60  ;;  %v12073_v52 = vld [vmem:[#allocation2 + $0x15b0] sm:$0xff]   ;;  %v12075_v55 = vld [vmem:[#allocation2 + $0x1538] sm:$0xff]   ;;  %v12080_v60 = vld [vmem:[#allocation2 + $0x1600] sm:$0xff]  }
 0x2e9   :  { %v2291_v21 = vcombine.high %v2287_v18, %v2287_v18  ;;  %v12076_v56 = vld [vmem:[#allocation2 + $0x15f8] sm:$0xff]  }
 0x2ea   :  { %11134 = vmatpush3.bf16.msra.mxu0 %v12041_v59  ;;  %v12078_v57 = vld [vmem:[#allocation2 + $0x15b8] sm:$0xff]   ;;  %v12079_v59 = vld [vmem:[#allocation2 + $0x1640] sm:$0xff]  }
 0x2eb   :  { %11135 = vmatprep.subr.bf16.mxu0 %v12044_v62  ;;  %11114 = vmatpush3.bf16.msra.mxu1 %v12043_v61  ;;  %v12081_v61 = vld [vmem:[#allocation2 + $0x16c0] sm:$0xff]   ;;  %v12094_v12 = vld [vmem:[#allocation2 + $0x1698] sm:$0xff]  }
 0x2ec   :  { %11143 = vmatprep.subr.bf16.mxu1 %v12046_v4  ;;  %v12086_v4 = vld [vmem:[#allocation2 + $0x1688] sm:$0xff]  }
 0x2ee   :  { %11136 = vmatpush3.bf16.msra.mxu0 %v12045_v2  ;;  %8898 = vmatmul.mubr.bf16.vlgmr.msra.gmra.mrb[80].mxu1 %v2266_v6  ;;  %v12084_v2 = vld [vmem:[#allocation2 + $0x1608] sm:$0xff]   ;;  %v12088_v6 = vld [vmem:[#allocation2 + $0x1610] sm:$0xff]  }
 0x2ef   :  { %11165 = vmatprep.subr.bf16.mxu0 %v12048_v9  ;;  %11144 = vmatpush3.bf16.msra.mxu1 %v12047_v7  ;;  %v12089_v7 = vld [vmem:[#allocation2 + $0x16d0] sm:$0xff]   ;;  %v12091_v9 = vld [vmem:[#allocation2 + $0x1658] sm:$0xff]  }
 0x2f0   :  { %11145 = vmatprep.subr.bf16.mxu1 %v12050_v14  ;;  %8977 = vmatprep.mubr.bf16.mxu1 %v2287_v18  ;;  %v12096_v14 = vld [vmem:[#allocation2 + $0x1620] sm:$0xff]   ;;  %v12099_v18 = vld [vmem:[#allocation2 + $0x1668] sm:$0xff]  }
 0x2f1   :  { %8938 = vmatmul.mubr.bf16.vlgmr.msra.gmra.mrb[84].mxu0 %v2288_v13  ;;  %v12095_v13 = vld [vmem:[#allocation2 + $0x1660] sm:$0xff]  }
 0x2f2   :  { %11166 = vmatpush3.bf16.msra.mxu0 %v12049_v11  ;;  %9017 = vmatprep.mubr.bf16.mxu0 %v2291_v21  ;;  %v12093_v11 = vld [vmem:[#allocation2 + $0x16d8] sm:$0xff]  }
 0x2f3   :  { %11167 = vmatprep.subr.bf16.mxu0 %v12052_v19  ;;  %11146 = vmatpush3.bf16.msra.mxu1 %v12051_v16  ;;  %v12098_v16 = vld [vmem:[#allocation2 + $0x16a0] sm:$0xff]  }
 0x2f4   :  { %11147 = vmatprep.subr.bf16.mxu1 %v12054_v22  ;;  %v12101_v22 = vld [vmem:[#allocation2 + $0x16e8] sm:$0xff]  }
 0x2f6   :  { %11168 = vmatpush3.bf16.msra.mxu0 %v12053_v20  ;;  %v12100_v20 = vld [vmem:[#allocation2 + $0x1628] sm:$0xff]  }
 0x2f7   :  { %11169 = vmatprep.subr.bf16.mxu0 %v12056_v24  ;;  %11148 = vmatpush3.bf16.msra.mxu1 %v12055_v23 }
 0x2f8   :  { %11149 = vmatprep.subr.bf16.mxu1 %v12058_v26  ;;  %v12102_v26 = vld [vmem:[#allocation2 + $0x16a8] sm:$0xff]  }
 0x2fa   :  { %11170 = vmatpush3.bf16.msra.mxu0 %v12057_v25 }
 0x2fb   :  { %11171 = vmatprep.subr.bf16.mxu0 %v12060_v17  ;;  %11150 = vmatpush3.bf16.msra.mxu1 %v12059_v27  ;;  %v12103_v27 = vld [vmem:[#allocation2 + $0x1670] sm:$0xff]  }
 0x2fc   :  { %11151 = vmatprep.subr.bf16.mxu1 %v12062_v29 }
 0x2fe   :  { %11172 = vmatpush3.bf16.msra.mxu0 %v12061_v28 }
 0x2ff   :  { %11173 = vmatprep.subr.bf16.mxu0 %v12064_v31  ;;  %11152 = vmatpush3.bf16.msra.mxu1 %v12063_v30 }
 0x300   :  { %11153 = vmatprep.subr.bf16.mxu1 %v12066_v33 }
 0x301   :  { %v10851_v35 = vpop.f32.mrb[56].mxu1 }
 0x302   :  { %v10852_v38 = vpop.f32.mrb[57].mxu1  ;;  %11174 = vmatpush3.bf16.msra.mxu0 %v12065_v32  ;;  %v12104_v32 = vld [vmem:[#allocation2 + $0x1630] sm:$0xff]  }
 0x303   :  { %v10853_v40 = vadd.f32 %v10852_v38, %v10851_v35  ;;  %v10854_v41 = vpop.f32.mrb[58].mxu1  ;;  %11175 = vmatprep.subr.bf16.mxu0 %v12068_v36  ;;  %11154 = vmatpush3.bf16.msra.mxu1 %v12067_v34  ;;  %v12105_v34 = vld [vmem:[#allocation2 + $0x16f0] sm:$0xff]   ;;  %v12107_v38 = vld [vmem:[#allocation2 + $0x1678] sm:$0xff]  }
 0x304   :  { %v10873_v42 = vpop.f32.mrb[60].mxu0  ;;  %v10855_v43 = vpop.f32.mrb[59].mxu1  ;;  %11155 = vmatprep.subr.bf16.mxu1 %v12070_v45  ;;  %v12106_v36 = vld [vmem:[#allocation2 + $0x16b0] sm:$0xff]   ;;  %v88_v41 = vld [vmem:[%s12688_s0 + $0x58] sm:$0xff]  ;;  %v12111_v45 = vld [vmem:[#allocation2 + $0x1740] sm:$0xff]  }
 0x305   :  { %v10874_v44 = vpop.f32.mrb[61].mxu0  ;;  %v8420_v47 = vadd.f32 %v10853_v40, %v12597_v58  ;;  %v2273_v58 = vrot.slane %v12605_v8, %v12413_v37  ;;  %v12090_v8 = vld [vmem:[#allocation2 + $0x1690] sm:$0xff]   ;;  %v12109_v40 = vld [vmem:[#allocation2 + $0x16f8] sm:$0xff]  }
 0x306   :  { %v10875_v48 = vadd.f32 %v10874_v44, %v10873_v42  ;;  %v10876_v49 = vpop.f32.mrb[62].mxu0  ;;  %11176 = vmatpush3.bf16.msra.mxu0 %v12069_v39  ;;  %v12108_v39 = vld [vmem:[#allocation2 + $0x1638] sm:$0xff]   ;;  %v2299_v42 = vrot.slane %v88_v41, %v12413_v37  ;;  %v2292_v44 = vcombine.high %v88_v41, %v88_v41  ;;  %v12147_v41 = vld [vmem:[#allocation2 + $0x1880] sm:$0xff]  }
 0x307   :  { %v10877_v51 = vpop.f32.mrb[63].mxu0  ;;  %11177 = vmatprep.subr.bf16.mxu0 %v12072_v50  ;;  %11156 = vmatpush3.bf16.msra.mxu1 %v12071_v46  ;;  %v2289_v62 = vcombine.high %v2273_v58, %v2273_v58  ;;  %v12110_v43 = vld [vmem:[#allocation2 + $0x16b8] sm:$0xff]   ;;  %v12113_v50 = vld [vmem:[#allocation2 + $0x17c0] sm:$0xff]  }
 0x308   :  { %v12612_v53 = vadd.f32 %v10875_v48, %v8420_v47  ;;  %11157 = vmatprep.subr.bf16.mxu1 %v12074_v54  ;;  %v2307_v46 = vcombine.high %v2299_v42, %v2299_v42  ;;  %v2315_v47 = vrot.slane %v2299_v42, %v12413_v37  ;;  %v12112_v48 = vld [vmem:[#allocation2 + $0x1700] sm:$0xff]   ;;  %v12625_v49 = vrot.slane %v2292_v44, %v12413_v37  ;;  %v12148_v42 = vld [vmem:[#allocation2 + $0x1848] sm:$0xff]  }
 0x309   :  { %v12150_v44 = vld [vmem:[#allocation2 + $0x18c8] sm:$0xff]  }
 0x30a   :  { %11178 = vmatpush3.bf16.msra.mxu0 %v12073_v52  ;;  %v2329_v51 = vrot.slane %v2307_v46, %v12413_v37  ;;  %v12114_v52 = vld [vmem:[#allocation2 + $0x1780] sm:$0xff]   ;;  %v2337_v54 = vcombine.high %v2315_v47, %v2315_v47  ;;  %v12152_v46 = vld [vmem:[#allocation2 + $0x1850] sm:$0xff]  }
 0x30b   :  { %11179 = vmatprep.subr.bf16.mxu0 %v12076_v56  ;;  %11158 = vmatpush3.bf16.msra.mxu1 %v12075_v55  ;;  %v12115_v55 = vld [vmem:[#allocation2 + $0x1748] sm:$0xff]  }
 0x30c   :  { %11187 = vmatprep.subr.bf16.mxu1 %v12079_v59  ;;  %v2339_v56 = vcombine.high %v2329_v51, %v2329_v51  ;;  %v12117_v59 = vld [vmem:[#allocation2 + $0x17c8] sm:$0xff]  }
 0x30e   :  { %11180 = vmatpush3.bf16.msra.mxu0 %v12078_v57  ;;  %8978 = vmatmul.mubr.bf16.vlgmr.msra.gmra.mrb[84].mxu1 %v2273_v58  ;;  %v12116_v57 = vld [vmem:[#allocation2 + $0x1708] sm:$0xff]  }
 0x30f   :  { %11209 = vmatprep.subr.bf16.mxu0 %v12081_v61  ;;  %11188 = vmatpush3.bf16.msra.mxu1 %v12080_v60  ;;  %v12118_v60 = vld [vmem:[#allocation2 + $0x1788] sm:$0xff]  }
 0x310   :  { %11189 = vmatprep.subr.bf16.mxu1 %v12083_v1  ;;  %9057 = vmatprep.mubr.bf16.mxu1 %v2329_v51  ;;  %v12121_v1 = vld [vmem:[#allocation2 + $0x17d0] sm:$0xff]   ;;  %v12157_v51 = vld [vmem:[#allocation2 + $0x1818] sm:$0xff]  }
 0x311   :  { %9018 = vmatmul.mubr.bf16.vlgmr.msra.gmra.mrb[88].mxu0 %v2289_v62  ;;  %v12119_v62 = vld [vmem:[#allocation2 + $0x1750] sm:$0xff]  }
 0x312   :  { %11210 = vmatpush3.bf16.msra.mxu0 %v12082_v63  ;;  %9097 = vmatprep.mubr.bf16.mxu0 %v2339_v56  ;;  %v12120_v63 = vld [vmem:[#allocation2 + $0x1710] sm:$0xff]   ;;  %v12162_v56 = vld [vmem:[#allocation2 + $0x18e0] sm:$0xff]  }
 0x313   :  { %11211 = vmatprep.subr.bf16.mxu0 %v12085_v3  ;;  %11190 = vmatpush3.bf16.msra.mxu1 %v12084_v2  ;;  %v12122_v2 = vld [vmem:[#allocation2 + $0x1790] sm:$0xff]   ;;  %v12123_v3 = vld [vmem:[#allocation2 + $0x1758] sm:$0xff]  }
 0x314   :  { %11191 = vmatprep.subr.bf16.mxu1 %v12087_v5  ;;  %v12125_v5 = vld [vmem:[#allocation2 + $0x17d8] sm:$0xff]  }
 0x316   :  { %11212 = vmatpush3.bf16.msra.mxu0 %v12086_v4  ;;  %v12124_v4 = vld [vmem:[#allocation2 + $0x1718] sm:$0xff]  }
 0x317   :  { %11213 = vmatprep.subr.bf16.mxu0 %v12089_v7  ;;  %11192 = vmatpush3.bf16.msra.mxu1 %v12088_v6  ;;  %v12126_v6 = vld [vmem:[#allocation2 + $0x1798] sm:$0xff]   ;;  %v12127_v7 = vld [vmem:[#allocation2 + $0x1760] sm:$0xff]  }
 0x318   :  { %11193 = vmatprep.subr.bf16.mxu1 %v12091_v9  ;;  %v12129_v9 = vld [vmem:[#allocation2 + $0x17e0] sm:$0xff]  }
 0x31a   :  { %11214 = vmatpush3.bf16.msra.mxu0 %v12090_v8  ;;  %v12128_v8 = vld [vmem:[#allocation2 + $0x1720] sm:$0xff]  }
 0x31b   :  { %11215 = vmatprep.subr.bf16.mxu0 %v12093_v11  ;;  %11194 = vmatpush3.bf16.msra.mxu1 %v12092_v10  ;;  %v12130_v10 = vld [vmem:[#allocation2 + $0x17a0] sm:$0xff]   ;;  %v12131_v11 = vld [vmem:[#allocation2 + $0x1768] sm:$0xff]  }
 0x31c   :  { %11195 = vmatprep.subr.bf16.mxu1 %v12095_v13 }
 0x31e   :  { %11216 = vmatpush3.bf16.msra.mxu0 %v12094_v12  ;;  %v12132_v12 = vld [vmem:[#allocation2 + $0x1728] sm:$0xff]  }
 0x31f   :  { %11217 = vmatprep.subr.bf16.mxu0 %v12097_v15  ;;  %11196 = vmatpush3.bf16.msra.mxu1 %v12096_v14  ;;  %v12133_v14 = vld [vmem:[#allocation2 + $0x17e8] sm:$0xff]  }
 0x320   :  { %11197 = vmatprep.subr.bf16.mxu1 %v12099_v18 }
 0x321   :  { %v10895_v19 = vpop.f32.mrb[60].mxu1 }
 0x322   :  { %v10896_v21 = vpop.f32.mrb[61].mxu1  ;;  %11218 = vmatpush3.bf16.msra.mxu0 %v12098_v16  ;;  %v12134_v16 = vld [vmem:[#allocation2 + $0x17a8] sm:$0xff]  }
 0x323   :  { %v10897_v23 = vadd.f32 %v10896_v21, %v10895_v19  ;;  %v10898_v24 = vpop.f32.mrb[62].mxu1  ;;  %11219 = vmatprep.subr.bf16.mxu0 %v12101_v22  ;;  %11198 = vmatpush3.bf16.msra.mxu1 %v12100_v20 }
 0x324   :  { %v10917_v25 = vpop.f32.mrb[64].mxu0  ;;  %v10899_v17 = vpop.f32.mrb[63].mxu1  ;;  %11199 = vmatprep.subr.bf16.mxu1 %v12103_v27  ;;  %v12136_v24 = vld [vmem:[#allocation2 + $0x1730] sm:$0xff]  }
 0x325   :  { %v10918_v28 = vpop.f32.mrb[65].mxu0  ;;  %v8500_v29 = vadd.f32 %v10897_v23, %v12612_v53  ;;  %v2308_v53 = vcombine.high %v12625_v49, %v12625_v49  ;;  %v12135_v23 = vld [vmem:[#allocation2 + $0x1770] sm:$0xff]  }
 0x326   :  { %v10919_v30 = vadd.f32 %v10918_v28, %v10917_v25  ;;  %v10920_v31 = vpop.f32.mrb[66].mxu0  ;;  %11220 = vmatpush3.bf16.msra.mxu0 %v12102_v26  ;;  %v12137_v17 = vld [vmem:[#allocation2 + $0x17f0] sm:$0xff]  }
 0x327   :  { %v10921_v33 = vpop.f32.mrb[67].mxu0  ;;  %11221 = vmatprep.subr.bf16.mxu0 %v12105_v34  ;;  %11200 = vmatpush3.bf16.msra.mxu1 %v12104_v32  ;;  %v2336_v58 = vrot.slane %v2308_v53, %v12413_v37  ;;  %v12139_v31 = vld [vmem:[#allocation2 + $0x1778] sm:$0xff]  }
 0x328   :  { %v12617_v35 = vadd.f32 %v10919_v30, %v8500_v29  ;;  %11201 = vmatprep.subr.bf16.mxu1 %v12107_v38  ;;  %v12138_v29 = vld [vmem:[#allocation2 + $0x17b0] sm:$0xff]   ;;  %v12140_v32 = vld [vmem:[#allocation2 + $0x1738] sm:$0xff]   ;;  %v12145_v38 = vld [vmem:[#allocation2 + $0x1800] sm:$0xff]  }
 0x329   :  { %v2340_v61 = vcombine.high %v2336_v58, %v2336_v58  ;;  %v12141_v33 = vld [vmem:[#allocation2 + $0x17f8] sm:$0xff]  }
 0x32a   :  { %11222 = vmatpush3.bf16.msra.mxu0 %v12106_v36  ;;  %v12143_v34 = vld [vmem:[#allocation2 + $0x17b8] sm:$0xff]   ;;  %v12144_v36 = vld [vmem:[#allocation2 + $0x1840] sm:$0xff]  }
 0x32b   :  { %11223 = vmatprep.subr.bf16.mxu0 %v12109_v40  ;;  %11202 = vmatpush3.bf16.msra.mxu1 %v12108_v39  ;;  %v12146_v39 = vld [vmem:[#allocation2 + $0x18c0] sm:$0xff]   ;;  %v12159_v53 = vld [vmem:[#allocation2 + $0x1898] sm:$0xff]  }
 0x32c   :  { %11231 = vmatprep.subr.bf16.mxu1 %v12111_v45  ;;  %v12151_v45 = vld [vmem:[#allocation2 + $0x1888] sm:$0xff]  }
 0x32e   :  { %11224 = vmatpush3.bf16.msra.mxu0 %v12110_v43  ;;  %9058 = vmatmul.mubr.bf16.vlgmr.msra.gmra.mrb[88].mxu1 %v2315_v47  ;;  %v12149_v43 = vld [vmem:[#allocation2 + $0x1808] sm:$0xff]   ;;  %v12153_v47 = vld [vmem:[#allocation2 + $0x1810] sm:$0xff]  }
 0x32f   :  { %11253 = vmatprep.subr.bf16.mxu0 %v12113_v50  ;;  %11232 = vmatpush3.bf16.msra.mxu1 %v12112_v48  ;;  %v12154_v48 = vld [vmem:[#allocation2 + $0x18d0] sm:$0xff]   ;;  %v12156_v50 = vld [vmem:[#allocation2 + $0x1858] sm:$0xff]  }
 0x330   :  { %11233 = vmatprep.subr.bf16.mxu1 %v12115_v55  ;;  %9137 = vmatprep.mubr.bf16.mxu1 %v2336_v58  ;;  %v12161_v55 = vld [vmem:[#allocation2 + $0x1820] sm:$0xff]   ;;  %v12164_v58 = vld [vmem:[#allocation2 + $0x1868] sm:$0xff]  }
 0x331   :  { %9098 = vmatmul.mubr.bf16.vlgmr.msra.gmra.mrb[92].mxu0 %v2337_v54  ;;  %v12160_v54 = vld [vmem:[#allocation2 + $0x1860] sm:$0xff]  }
 0x332   :  { %11254 = vmatpush3.bf16.msra.mxu0 %v12114_v52  ;;  %9177 = vmatprep.mubr.bf16.mxu0 %v2340_v61  ;;  %v12158_v52 = vld [vmem:[#allocation2 + $0x18d8] sm:$0xff]  }
 0x333   :  { %11255 = vmatprep.subr.bf16.mxu0 %v12117_v59  ;;  %11234 = vmatpush3.bf16.msra.mxu1 %v12116_v57  ;;  %v12163_v57 = vld [vmem:[#allocation2 + $0x18a0] sm:$0xff]  }
 0x334   :  { %11235 = vmatprep.subr.bf16.mxu1 %v12119_v62  ;;  %v12166_v62 = vld [vmem:[#allocation2 + $0x18e8] sm:$0xff]  }
 0x336   :  { %11256 = vmatpush3.bf16.msra.mxu0 %v12118_v60  ;;  %v12165_v60 = vld [vmem:[#allocation2 + $0x1828] sm:$0xff]  }
 0x337   :  { %11257 = vmatprep.subr.bf16.mxu0 %v12121_v1  ;;  %11236 = vmatpush3.bf16.msra.mxu1 %v12120_v63 }
 0x338   :  { %11237 = vmatprep.subr.bf16.mxu1 %v12123_v3  ;;  %v12167_v3 = vld [vmem:[#allocation2 + $0x18a8] sm:$0xff]  }
 0x33a   :  { %11258 = vmatpush3.bf16.msra.mxu0 %v12122_v2 }
 0x33b   :  { %11259 = vmatprep.subr.bf16.mxu0 %v12125_v5  ;;  %11238 = vmatpush3.bf16.msra.mxu1 %v12124_v4  ;;  %v12168_v4 = vld [vmem:[#allocation2 + $0x1870] sm:$0xff]  }
 0x33c   :  { %11239 = vmatprep.subr.bf16.mxu1 %v12127_v7 }
 0x33e   :  { %11260 = vmatpush3.bf16.msra.mxu0 %v12126_v6 }
 0x33f   :  { %11261 = vmatprep.subr.bf16.mxu0 %v12129_v9  ;;  %11240 = vmatpush3.bf16.msra.mxu1 %v12128_v8 }
 0x340   :  { %11241 = vmatprep.subr.bf16.mxu1 %v12131_v11 }
 0x341   :  { %v10939_v13 = vpop.f32.mrb[64].mxu1 }
 0x342   :  { %v10940_v15 = vpop.f32.mrb[65].mxu1  ;;  %11262 = vmatpush3.bf16.msra.mxu0 %v12130_v10  ;;  %v12169_v10 = vld [vmem:[#allocation2 + $0x1830] sm:$0xff]  }
 0x343   :  { %v10941_v18 = vadd.f32 %v10940_v15, %v10939_v13  ;;  %v10942_v19 = vpop.f32.mrb[66].mxu1  ;;  %11263 = vmatprep.subr.bf16.mxu0 %v12133_v14  ;;  %11242 = vmatpush3.bf16.msra.mxu1 %v12132_v12  ;;  %v12170_v12 = vld [vmem:[#allocation2 + $0x18f0] sm:$0xff]   ;;  %v12172_v15 = vld [vmem:[#allocation2 + $0x1878] sm:$0xff]  }
 0x344   :  { %v10961_v20 = vpop.f32.mrb[68].mxu0  ;;  %v10943_v21 = vpop.f32.mrb[67].mxu1  ;;  %11243 = vmatprep.subr.bf16.mxu1 %v12135_v23  ;;  %v12171_v14 = vld [vmem:[#allocation2 + $0x18b0] sm:$0xff]  }
 0x345   :  { %v10962_v22 = vpop.f32.mrb[69].mxu0  ;;  %v8580_v25 = vadd.f32 %v10941_v18, %v12617_v35  ;;  %v2322_v35 = vrot.slane %v12625_v49, %v12413_v37  ;;  %v12155_v49 = vld [vmem:[#allocation2 + $0x1890] sm:$0xff]   ;;  %v12174_v18 = vld [vmem:[#allocation2 + $0x18f8] sm:$0xff]  }
 0x346   :  { %v10963_v26 = vadd.f32 %v10962_v22, %v10961_v20  ;;  %v10964_v27 = vpop.f32.mrb[70].mxu0  ;;  %11264 = vmatpush3.bf16.msra.mxu0 %v12134_v16  ;;  %v12173_v16 = vld [vmem:[#allocation2 + $0x1838] sm:$0xff]   ;;  %v9406_v19 = vld.sshfl [vmem:[%s12688_s0 + $0x60] sm:$0x33 pattern:$0x75316420] }
 0x347   :  { %v10965_v28 = vpop.f32.mrb[71].mxu0  ;;  %11265 = vmatprep.subr.bf16.mxu0 %v12137_v17  ;;  %11244 = vmatpush3.bf16.msra.mxu1 %v12136_v24  ;;  %v2338_v40 = vcombine.high %v2322_v35, %v2322_v35  ;;  %v2348_v20 = vcombine.high %v9406_v19, %v9406_v19  ;;  %v12175_v21 = vld [vmem:[#allocation2 + $0x18b8] sm:$0xff]   ;;  %v2355_v22 = vrot.slane %v9406_v19, %v12413_v37 }
 0x348   :  { %v12632_v30 = vadd.f32 %v10963_v26, %v8580_v25  ;;  %11245 = vmatprep.subr.bf16.mxu1 %v12139_v31 }
 0x349   :  { %v2362_v23 = vrot.slane %v2348_v20, %v12413_v37  ;;  %v2363_v24 = vcombine.high %v2355_v22, %v2355_v22 }
 0x34a   :  { %11266 = vmatpush3.bf16.msra.mxu0 %v12138_v29 }
 0x34b   :  { %11267 = vmatprep.subr.bf16.mxu0 %v12141_v33  ;;  %11246 = vmatpush3.bf16.msra.mxu1 %v12140_v32  ;;  %v2364_v25 = vcombine.high %v2362_v23, %v2362_v23 }
 0x34c   :  { %11275 = vmatprep.subr.bf16.mxu1 %v12144_v36 }
 0x34e   :  { %11268 = vmatpush3.bf16.msra.mxu0 %v12143_v34  ;;  %9138 = vmatmul.mubr.bf16.vlgmr.msra.gmra.mrb[92].mxu1 %v2322_v35 }
 0x34f   :  { %11297 = vmatprep.subr.bf16.mxu0 %v12146_v39  ;;  %11276 = vmatpush3.bf16.msra.mxu1 %v12145_v38 }
 0x350   :  { %11277 = vmatprep.subr.bf16.mxu1 %v12148_v42  ;;  %9217 = vmatprep.mubr.bf16.mxu1 %v2362_v23 }
 0x351   :  { %9178 = vmatmul.mubr.bf16.vlgmr.msra.gmra.mrb[96].mxu0 %v2338_v40 }
 0x352   :  { %11298 = vmatpush3.bf16.msra.mxu0 %v12147_v41  ;;  %9257 = vmatprep.mubr.bf16.mxu0 %v2364_v25 }
 0x353   :  { %11299 = vmatprep.subr.bf16.mxu0 %v12150_v44  ;;  %11278 = vmatpush3.bf16.msra.mxu1 %v12149_v43 }
 0x354   :  { %11279 = vmatprep.subr.bf16.mxu1 %v12152_v46 }
 0x356   :  { %11300 = vmatpush3.bf16.msra.mxu0 %v12151_v45 }
 0x357   :  { %11301 = vmatprep.subr.bf16.mxu0 %v12154_v48  ;;  %11280 = vmatpush3.bf16.msra.mxu1 %v12153_v47 }
 0x358   :  { %11281 = vmatprep.subr.bf16.mxu1 %v12156_v50  ;;  %v12177_v50 = vld [vmem:[%s12693_s5 + $0x8] sm:$0xff]  }
 0x35a   :  { %11302 = vmatpush3.bf16.msra.mxu0 %v12155_v49  ;;  %v12176_v49 = vld [vmem:[%s12693_s5] sm:$0xff]  }
 0x35b   :  { %11303 = vmatprep.subr.bf16.mxu0 %v12158_v52  ;;  %11282 = vmatpush3.bf16.msra.mxu1 %v12157_v51  ;;  %v12178_v51 = vld [vmem:[%s12693_s5 + $0x10] sm:$0xff]   ;;  %v12179_v52 = vld [vmem:[%s12693_s5 + $0x18] sm:$0xff]  }
 0x35c   :  { %11283 = vmatprep.subr.bf16.mxu1 %v12160_v54 }
 0x35e   :  { %11304 = vmatpush3.bf16.msra.mxu0 %v12159_v53  ;;  %v12180_v53 = vld [vmem:[%s12693_s5 + $0x20] sm:$0xff]  }
 0x35f   :  { %11305 = vmatprep.subr.bf16.mxu0 %v12162_v56  ;;  %11284 = vmatpush3.bf16.msra.mxu1 %v12161_v55 }
 0x360   :  { %11285 = vmatprep.subr.bf16.mxu1 %v12164_v58 }
 0x361   :  { %v10983_v59 = vpop.f32.mrb[68].mxu1 }
 0x362   :  { %v10984_v61 = vpop.f32.mrb[69].mxu1  ;;  %11306 = vmatpush3.bf16.msra.mxu0 %v12163_v57 }
 0x363   :  { %v10985_v63 = vadd.f32 %v10984_v61, %v10983_v59  ;;  %v10986_v1 = vpop.f32.mrb[70].mxu1  ;;  %11307 = vmatprep.subr.bf16.mxu0 %v12166_v62  ;;  %11286 = vmatpush3.bf16.msra.mxu1 %v12165_v60  ;;  %v12181_v61 = vld [vmem:[%s12693_s5 + $0x28] sm:$0xff]  }
 0x364   :  { %v11005_v2 = vpop.f32.mrb[72].mxu0  ;;  %v10987_v5 = vpop.f32.mrb[71].mxu1  ;;  %11287 = vmatprep.subr.bf16.mxu1 %v12168_v4  ;;  %v12182_v4 = vld [vmem:[%s12693_s5 + $0x30] sm:$0xff]  }
 0x365   :  { %v11006_v6 = vpop.f32.mrb[73].mxu0  ;;  %v8660_v7 = vadd.f32 %v10985_v63, %v12632_v30  ;;  %v12183_v5 = vld [vmem:[%s12693_s5 + $0x38] sm:$0xff]   ;;  %s12311_s5 = smov [#allocation10]  }
 0x366   :  { %v11007_v8 = vadd.f32 %v11006_v6, %v11005_v2  ;;  %v11008_v9 = vpop.f32.mrb[74].mxu0  ;;  %11308 = vmatpush3.bf16.msra.mxu0 %v12167_v3  ;;  %s9394_s15 = sshll.u32 %s12311_s5, 4  ;;  %s9395_s15 = int_to_ptr.vmem [resolvable:$true] %s9394_s15 }
 0x367   :  { %v11009_v11 = vpop.f32.mrb[75].mxu0  ;;  %11309 = vmatprep.subr.bf16.mxu0 %v12170_v12  ;;  %11288 = vmatpush3.bf16.msra.mxu1 %v12169_v10  ;;  %s12272_s16 = scalar_lea.vmem %s9395_s15, 32  ;;  %p12277_p5 = scmp.lt.s32.totalorder %s9395_s15, %s9395_s15 }
 0x368   :  { %v8700_v13 = vadd.f32 %v11007_v8, %v8660_v7  ;;  %11289 = vmatprep.subr.bf16.mxu1 %v12172_v15  ;;  %p12273_p4 = scmp.ne.s32.totalorder %s9395_s15, %s12272_s16  ;;  %p12278_p6 = scmp.lt.s32.totalorder %s12272_s16, %s12272_s16 }
 0x36a   :  { %11310 = vmatpush3.bf16.msra.mxu0 %v12171_v14  ;;  %p12279_p7 = por %p12278_p6, %p12277_p5 }
 0x36b   :  { %11311 = vmatprep.subr.bf16.mxu0 %v12174_v18  ;;  %11290 = vmatpush3.bf16.msra.mxu1 %v12173_v16 }
 0x36c   :  { %11334 = vmatprep.subr.bf16.mxu1 %v12308_v0  ;;  %p12280_p8 = pnand %p12279_p7, %p12273_p4 }
 0x36e   :  { %11312 = vmatpush3.bf16.msra.mxu0 %v12175_v21  ;;  %9218 = vmatmul.mubr.bf16.vlgmr.msra.gmra.mrb[96].mxu1 %v2355_v22 }
 0x36f   :  { %11350 = vmatprep.mubr.msk.bf16.mxu1 %vm12309_vm0, %v12308_v0  ;;  %11335 = vmatpush3.bf16.msra.mxu1 %v12176_v49 }
 0x370   :  { %11336 = vmatprep.subr.bf16.mxu1 %v12308_v0 }
 0x371   :  { %9258 = vmatmul.mubr.bf16.vlgmr.msra.gmra.mrb[100].mxu0 %v2363_v24 }
 0x373   :  { %11337 = vmatpush3.bf16.msra.mxu1 %v12177_v50 }
 0x374   :  { %11338 = vmatprep.subr.bf16.mxu1 %v12308_v0 }
 0x377   :  { %11339 = vmatpush3.bf16.msra.mxu1 %v12178_v51  ;;  %v10207_v51 = vld [vmem:[#allocation7] ss:$0 sm:$0xff] }
 0x378   :  { %11340 = vmatprep.subr.bf16.mxu1 %v12308_v0 }
 0x37b   :  { %11341 = vmatpush3.bf16.msra.mxu1 %v12179_v52 }
 0x37c   :  { %11342 = vmatprep.subr.bf16.mxu1 %v12308_v0 }
 0x37f   :  { %11343 = vmatpush3.bf16.msra.mxu1 %v12180_v53 }
 0x380   :  { %11344 = vmatprep.subr.bf16.mxu1 %v12308_v0 }
 0x381   :  { %v11027_v26 = vpop.f32.mrb[72].mxu1 }
 0x382   :  { %v11028_v27 = vpop.f32.mrb[73].mxu1 }
 0x383   :  { %v11029_v17 = vadd.f32 %v11028_v27, %v11027_v26  ;;  %v11030_v28 = vpop.f32.mrb[74].mxu1  ;;  %11345 = vmatpush3.bf16.msra.mxu1 %v12181_v61 }
 0x384   :  { %v11049_v29 = vpop.f32.mrb[76].mxu0  ;;  %v11031_v30 = vpop.f32.mrb[75].mxu1  ;;  %11346 = vmatprep.subr.bf16.mxu1 %v12308_v0 }
 0x385   :  { %v11050_v31 = vpop.f32.mrb[77].mxu0  ;;  %v8740_v37 = vadd.f32 %v11029_v17, %v8700_v13 }
 0x386   :  { %v11051_v32 = vadd.f32 %v11050_v31, %v11049_v29  ;;  %v11052_v33 = vpop.f32.mrb[78].mxu0 }
 0x387   :  { %v11053_v34 = vpop.f32.mrb[79].mxu0  ;;  %11347 = vmatpush3.bf16.msra.mxu1 %v12182_v4 }
 0x388   :  { %v8780_v35 = vadd.f32 %v11051_v32, %v8740_v37  ;;  %11348 = vmatprep.subr.bf16.mxu1 %v12308_v0 }
 0x38b   :  { %11349 = vmatpush3.bf16.msra.mxu1 %v12183_v5 }
 0x3a1   :  { %v11071_v36 = vpop.f32.mrb[76].mxu1 }
 0x3a2   :  { %v11072_v38 = vpop.f32.mrb[77].mxu1 }
 0x3a3   :  { %v11073_v39 = vadd.f32 %v11072_v38, %v11071_v36  ;;  %v11074_v40 = vpop.f32.mrb[78].mxu1 }
 0x3a4   :  { %v11093_v41 = vpop.f32.mrb[80].mxu0  ;;  %v11075_v42 = vpop.f32.mrb[79].mxu1 }
 0x3a5   :  { %v11094_v43 = vpop.f32.mrb[81].mxu0  ;;  %v8820_v44 = vadd.f32 %v11073_v39, %v8780_v35 }
 0x3a6   :  { %v11095_v45 = vadd.f32 %v11094_v43, %v11093_v41  ;;  %v11096_v46 = vpop.f32.mrb[82].mxu0 }
 0x3a7   :  { %v11097_v47 = vpop.f32.mrb[83].mxu0 }
 0x3a8   :  { %v8860_v48 = vadd.f32 %v11095_v45, %v8820_v44 }
 0x3c1   :  { %v11115_v54 = vpop.f32.mrb[80].mxu1 }
 0x3c2   :  { %v11116_v55 = vpop.f32.mrb[81].mxu1 }
 0x3c3   :  { %v11117_v56 = vadd.f32 %v11116_v55, %v11115_v54  ;;  %v11118_v57 = vpop.f32.mrb[82].mxu1 }
 0x3c4   :  { %v11137_v58 = vpop.f32.mrb[84].mxu0  ;;  %v11119_v59 = vpop.f32.mrb[83].mxu1  ;;  %v10208_v57 = vld [vmem:[#allocation8] ss:$0 sm:$0xff] }
 0x3c5   :  { %v11138_v60 = vpop.f32.mrb[85].mxu0  ;;  %v8900_v62 = vadd.f32 %v11117_v56, %v8860_v48 }
 0x3c6   :  { %v11139_v63 = vadd.f32 %v11138_v60, %v11137_v58  ;;  %v11140_v1 = vpop.f32.mrb[86].mxu0 }
 0x3c7   :  { %v11141_v2 = vpop.f32.mrb[87].mxu0 }
 0x3c8   :  { %v8940_v3 = vadd.f32 %v11139_v63, %v8900_v62 }
 0x3e1   :  { %v11159_v6 = vpop.f32.mrb[84].mxu1 }
 0x3e2   :  { %v11160_v7 = vpop.f32.mrb[85].mxu1 }
 0x3e3   :  { %v11161_v8 = vadd.f32 %v11160_v7, %v11159_v6  ;;  %v11162_v9 = vpop.f32.mrb[86].mxu1 }
 0x3e4   :  { %v11181_v10 = vpop.f32.mrb[88].mxu0  ;;  %v11163_v11 = vpop.f32.mrb[87].mxu1 }
 0x3e5   :  { %v11182_v12 = vpop.f32.mrb[89].mxu0  ;;  %v8980_v13 = vadd.f32 %v11161_v8, %v8940_v3 }
 0x3e6   :  { %v11183_v14 = vadd.f32 %v11182_v12, %v11181_v10  ;;  %v11184_v15 = vpop.f32.mrb[90].mxu0 }
 0x3e7   :  { %v11185_v16 = vpop.f32.mrb[91].mxu0 }
 0x3e8   :  { %v9020_v18 = vadd.f32 %v11183_v14, %v8980_v13 }
 0x401   :  { %v11203_v19 = vpop.f32.mrb[88].mxu1 }
 0x402   :  { %v11204_v20 = vpop.f32.mrb[89].mxu1 }
 0x403   :  { %v11205_v0 = vadd.f32 %v11204_v20, %v11203_v19  ;;  %v11206_v21 = vpop.f32.mrb[90].mxu1 }
 0x404   :  { %v11225_v22 = vpop.f32.mrb[92].mxu0  ;;  %v11207_v23 = vpop.f32.mrb[91].mxu1 }
 0x405   :  { %v11226_v24 = vpop.f32.mrb[93].mxu0  ;;  %v9060_v25 = vadd.f32 %v11205_v0, %v9020_v18 }
 0x406   :  { %v11227_v26 = vadd.f32 %v11226_v24, %v11225_v22  ;;  %v11228_v27 = vpop.f32.mrb[94].mxu0 }
 0x407   :  { %v11229_v17 = vpop.f32.mrb[95].mxu0 }
 0x408   :  { %v9100_v28 = vadd.f32 %v11227_v26, %v9060_v25 }
 0x421   :  { %v11247_v29 = vpop.f32.mrb[92].mxu1 }
 0x422   :  { %v11248_v30 = vpop.f32.mrb[93].mxu1 }
 0x423   :  { %v11249_v31 = vadd.f32 %v11248_v30, %v11247_v29  ;;  %v11250_v37 = vpop.f32.mrb[94].mxu1 }
 0x424   :  { %v11269_v32 = vpop.f32.mrb[96].mxu0  ;;  %v11251_v33 = vpop.f32.mrb[95].mxu1 }
 0x425   :  { %v11270_v34 = vpop.f32.mrb[97].mxu0  ;;  %v9140_v35 = vadd.f32 %v11249_v31, %v9100_v28 }
 0x426   :  { %v11271_v36 = vadd.f32 %v11270_v34, %v11269_v32  ;;  %v11272_v38 = vpop.f32.mrb[98].mxu0 }
 0x427   :  { %v11273_v39 = vpop.f32.mrb[99].mxu0 }
 0x428   :  { %v9180_v40 = vadd.f32 %v11271_v36, %v9140_v35 }
 0x441   :  { %v11291_v41 = vpop.f32.mrb[96].mxu1 }
 0x442   :  { %v11292_v42 = vpop.f32.mrb[97].mxu1 }
 0x443   :  { %v11293_v43 = vadd.f32 %v11292_v42, %v11291_v41  ;;  %v11294_v44 = vpop.f32.mrb[98].mxu1 }
 0x444   :  { %v11313_v45 = vpop.f32.mrb[100].mxu0  ;;  %v11295_v46 = vpop.f32.mrb[99].mxu1 }
 0x445   :  { %v11314_v47 = vpop.f32.mrb[101].mxu0  ;;  %v9220_v48 = vadd.f32 %v11293_v43, %v9180_v40 }
 0x446   :  { %v11315_v49 = vadd.f32 %v11314_v47, %v11313_v45  ;;  %v11316_v50 = vpop.f32.mrb[102].mxu0 }
 0x447   :  { %v11317_v52 = vpop.f32.mrb[103].mxu0 }
 0x448   :  { %v9260_v53 = vadd.f32 %v11315_v49, %v9220_v48 }
 0x44a   :  { %v9272_v54 = vadd.f32 %v10207_v51, %v9260_v53 }
 0x44c   :  { %v9273_v55 = vmax.f32 %v9272_v54, 0.0 }
 0x44e   :  { %v9274_v56 = vpack.c.bf16 %v9273_v55, %v9273_v55 }
 0x450   :  { %11351 = vmatmul.mubr.bf16.vlgmr.msra.gmra.mrb[100].mxu1 %v9274_v56 }
 0x523   :  { %v9380_v58 = vpop.f32.mrb[100].mxu1 }
 0x524   :  { %v9381_v59 = vadd.f32 %v10208_v57, %v9380_v58  ;;  %v11352_v60 = vpop.f32.mrb[101].mxu1 }
 0x525   :  { %v9383_v61 = vpop.f32.mrb[102].mxu1 }
 0x526   :  { %v11353_v62 = vpop.f32.mrb[103].mxu1  ;;  %9387 = vst.msk [vmem:[#allocation10] sm:$0x3] %vm9386_vm3, %v9381_v59 }
 0x527   :  { %12283 = shalt.err (!%p12280_p8)
}
 0x528   :  { %s12284_s19 = scalar_lea.hbm %s12695_s7, 32 }
 0x529   :  { %p12285_p9 = scmp.ne.s32.totalorder %s12695_s7, %s12284_s19  ;;  %p12288_p10 = scmp.lt.u32.totalorder %s12284_s19, %s12695_s7 }
 0x52b   :  { %p12290_p11 = pnand %p12288_p10, %p12285_p9 }
 0x52d   :  { %12293 = shalt.err (!%p12290_p11)
}
 0x52e   :  { %9397 = dma.vmem_to_hbm [thread:$0]  %s9395_s15, 32, %s12695_s7, [#allocation4]  }
 0x52f   :  { %12300 = dma.done.wait [#allocation4], 32  }
 0x530   :  { %12301 = vsyncadd [#allocation4], 4294967264 }
 0x531   :  { %9401 = vsyncpa [#allocation3], 1 }
 0x532   :  { %9402 = vsyncpa [#allocation6], 1 }
 0x533   :  { %9403 = vsyncpa [#allocation9], 1 }
 0x534   :  { %9404 = vsyncpa [#allocation4], 1 }

</bundles_post_ra>
